<compile_context>
chip_gen: v5e
topology: v5e:2x2
jax: 0.10.0
libtpu: 0.0.40
codegen_flags: <defaults>
</compile_context>

<pallas_src>
import functools
import math

import jax
import jax.numpy as jnp
from jax import lax
from jax.experimental import pallas as pl
from jax.experimental.pallas import tpu as pltpu


# ----------------------------- in-kernel helpers -----------------------------
def _layernorm(x, g, b, eps=1e-5):
    mean = jnp.mean(x, axis=-1, keepdims=True)
    var = jnp.mean((x - mean) ** 2, axis=-1, keepdims=True)
    return (x - mean) * lax.rsqrt(var + eps) * g + b


def _softmax_last(x):
    m = jnp.max(x, axis=-1, keepdims=True)
    e = jnp.exp(x - m)
    return e / jnp.sum(e, axis=-1, keepdims=True)


# ------------------------ fused full-decoder kernel --------------------------
def fused_decoder_kernel(pos_ref, tgt_ref, mem_ref,
                         wq_ref, bq_ref, wk_ref, bk_ref, wv_ref, bv_ref,
                         wo_ref, bo_ref, ln1_g_ref, ln1_b_ref,
                         w1_ref, b1_ref, w2_ref, b2_ref,
                         ln2_g_ref, ln2_b_ref,
                         wout_ref, bout_ref,
                         out_ref, *, num_layers, num_heads, dim_q, dim_k):
    # One grid step == one batch element; x stays in VMEM across all layers.
    x = tgt_ref[...] + pos_ref[...]          # (St, D)
    mem = mem_ref[...]                       # (Sm, D)
    inv_scale = 1.0 / (dim_q ** 0.5)         # folded as a constant multiply

    def mha(q_in, kv_in, wq, bq, wk, bk, wv, bv, wo, bo):
        # Stacked per-head projections: columns [h*d:(h+1)*d] belong to head h.
        Q = jnp.dot(q_in, wq, preferred_element_type=jnp.float32) + bq
        K = jnp.dot(kv_in, wk, preferred_element_type=jnp.float32) + bk
        V = jnp.dot(kv_in, wv, preferred_element_type=jnp.float32) + bv
        ctxs = []
        for h in range(num_heads):           # H=4, fully unrolled
            qh = Q[:, h * dim_q:(h + 1) * dim_q]
            kh = K[:, h * dim_k:(h + 1) * dim_k]
            vh = V[:, h * dim_k:(h + 1) * dim_k]
            # Contract on the last dim of both operands -> no explicit kh.T.
            scores = lax.dot_general(
                qh, kh, (((1,), (1,)), ((), ())),
                preferred_element_type=jnp.float32) * inv_scale
            probs = _softmax_last(scores)
            ctxs.append(jnp.dot(probs, vh, preferred_element_type=jnp.float32))
        # Single dense output projection: concat(heads) @ Wo + bo.
        ctx_all = jnp.concatenate(ctxs, axis=-1)          # (Sq, H*dk)
        return jnp.dot(ctx_all, wo, preferred_element_type=jnp.float32) + bo

    for l in range(num_layers):               # static unroll (L is small)
        wq = wq_ref[l]; bq = bq_ref[l]
        wk = wk_ref[l]; bk = bk_ref[l]
        wv = wv_ref[l]; bv = bv_ref[l]
        wo = wo_ref[l]; bo = bo_ref[l]
        ln1_g = ln1_g_ref[l]; ln1_b = ln1_b_ref[l]
        w1 = w1_ref[l]; b1 = b1_ref[l]
        w2 = w2_ref[l]; b2 = b2_ref[l]
        ln2_g = ln2_g_ref[l]; ln2_b = ln2_b_ref[l]

        # self-attention + residual + LN (dropout == identity)
        x = _layernorm(x + mha(x, x, wq, bq, wk, bk, wv, bv, wo, bo),
                       ln1_g, ln1_b)
        # cross-attention against memory: SAME shared weights and LayerNorm
        x = _layernorm(x + mha(x, mem, wq, bq, wk, bk, wv, bv, wo, bo),
                       ln1_g, ln1_b)
        # feed-forward + residual + LN
        h1 = jnp.maximum(
            jnp.dot(x, w1, preferred_element_type=jnp.float32) + b1, 0.0)
        ff = jnp.dot(h1, w2, preferred_element_type=jnp.float32) + b2
        x = _layernorm(x + ff, ln2_g, ln2_b)

    # final linear + softmax, written once per grid step (single store)
    logits = jnp.dot(x, wout_ref[...],
                     preferred_element_type=jnp.float32) + bout_ref[...]
    out_ref[...] = _softmax_last(logits)


# --------------------------------- wrappers ----------------------------------
def _const_spec(shape):
    # Full-array block, constant block index (weights / shared tensors).
    return pl.BlockSpec(shape, lambda b, _n=len(shape): (0,) * _n)


def position_encoding(seq_len, dim_feature):
    # Faithful to the reference: dim // dim_feature == 0 -> phase == pos.
    pos = jnp.arange(seq_len, dtype=jnp.float32).reshape(1, -1, 1)
    dim = jnp.arange(dim_feature, dtype=jnp.float32).reshape(1, 1, -1)
    phase = pos / 10000.0 ** jnp.floor(dim / dim_feature)
    return jnp.where(dim.astype(jnp.int32) % 2 == 0, jnp.sin(phase), jnp.cos(phase))


_WEIGHT_NAMES = ("wq", "bq", "wk", "bk", "wv", "bv", "wo", "bo",
                 "ln1_g", "ln1_b", "w1", "b1", "w2", "b2", "ln2_g", "ln2_b")


def transformer_decoder(tgt, memory, stacked_params, w_out, b_out,
                        num_heads, dim_q, dim_k):
    """Single fused pallas_call for the whole decoder forward pass."""
    B, St, D = tgt.shape
    Sm = memory.shape[1]
    L = stacked_params["wq"].shape[0]
    pos = position_encoding(St, D)[0]                      # (St, D)
    weights = [stacked_params[n] for n in _WEIGHT_NAMES]   # each has leading L dim

    kernel = functools.partial(fused_decoder_kernel, num_layers=L,
                               num_heads=num_heads, dim_q=dim_q, dim_k=dim_k)
    in_specs = ([_const_spec(pos.shape),
                 pl.BlockSpec((None, St, D), lambda b: (b, 0, 0)),
                 pl.BlockSpec((None, Sm, D), lambda b: (b, 0, 0))]
                + [_const_spec(w.shape) for w in weights]
                + [_const_spec(w_out.shape), _const_spec(b_out.shape)])

    return pl.pallas_call(
        kernel,
        out_shape=jax.ShapeDtypeStruct((B, St, D), jnp.float32),
        grid=(B,),
        in_specs=in_specs,
        out_specs=pl.BlockSpec((None, St, D), lambda b: (b, 0, 0)),
        compiler_params=pltpu.CompilerParams(
            # v7x: the two TensorCores each take one batch element.
            dimension_semantics=("parallel",)),
    )(pos, tgt, memory, *weights, w_out, b_out)


# -------------------------- pure-JAX reference (check) ------------------------
def reference_forward(tgt, memory, layer_params, w_out, b_out,
                      num_heads, dim_q, dim_k):
    def ln(x, g, b, eps=1e-5):
        m = jnp.mean(x, -1, keepdims=True)
        v = jnp.mean((x - m) ** 2, -1, keepdims=True)
        return (x - m) / jnp.sqrt(v + eps) * g + b

    def mha(q_in, kv_in, p):
        Q = q_in @ p["wq"] + p["bq"]
        K = kv_in @ p["wk"] + p["bk"]
        V = kv_in @ p["wv"] + p["bv"]
        ctxs = []
        for h in range(num_heads):
            qh = Q[..., h * dim_q:(h + 1) * dim_q]
            kh = K[..., h * dim_k:(h + 1) * dim_k]
            vh = V[..., h * dim_k:(h + 1) * dim_k]
            s = jnp.einsum("bqd,bkd->bqk", qh, kh) / (dim_q ** 0.5)
            ctxs.append(jnp.einsum("bqk,bkd->bqd", jax.nn.softmax(s, -1), vh))
        return jnp.concatenate(ctxs, axis=-1) @ p["wo"] + p["bo"]

    x = tgt + position_encoding(tgt.shape[1], tgt.shape[2])
    for p in layer_params:
        x = ln(x + mha(x, x, p), p["ln1_g"], p["ln1_b"])
        x = ln(x + mha(x, memory, p), p["ln1_g"], p["ln1_b"])
        h1 = jax.nn.relu(x @ p["w1"] + p["b1"])
        x = ln(x + h1 @ p["w2"] + p["b2"], p["ln2_g"], p["ln2_b"])
    return jax.nn.softmax(x @ w_out + b_out, axis=-1)


# ----------------------------------- main ------------------------------------
if __name__ == "__main__":
    B, St, Sm = 2, 8, 8
    D, H, Hd, L = 32, 4, 64, 2
    dq = dk = max(D // H, 1)

    key = jax.random.PRNGKey(0)
    k_tgt, k_mem, k_param = jax.random.split(key, 3)
    tgt = jax.random.normal(k_tgt, (B, St, D), jnp.float32)
    memory = jax.random.normal(k_mem, (B, Sm, D), jnp.float32)

    def linear_params(k, fan_in, fan_out):
        kw, kb = jax.random.split(k)
        lim = 1.0 / math.sqrt(fan_in)
        w = jax.random.uniform(kw, (fan_in, fan_out), jnp.float32, -lim, lim)
        b = jax.random.uniform(kb, (1, fan_out), jnp.float32, -lim, lim)
        return w, b

    layer_keys = jax.random.split(k_param, L + 1)
    layer_params = []
    for l in range(L):
        ks = jax.random.split(layer_keys[l], 6)
        wq, bq = linear_params(ks[0], D, H * dq)
        wk, bk = linear_params(ks[1], D, H * dk)
        wv, bv = linear_params(ks[2], D, H * dk)
        wo, bo = linear_params(ks[3], H * dk, D)
        w1, b1 = linear_params(ks[4], D, Hd)
        w2, b2 = linear_params(ks[5], Hd, D)
        layer_params.append(dict(
            wq=wq, bq=bq, wk=wk, bk=bk, wv=wv, bv=bv, wo=wo, bo=bo,
            ln1_g=jnp.ones((1, D), jnp.float32), ln1_b=jnp.zeros((1, D), jnp.float32),
            w1=w1, b1=b1, w2=w2, b2=b2,
            ln2_g=jnp.ones((1, D), jnp.float32), ln2_b=jnp.zeros((1, D), jnp.float32)))
    w_out, b_out = linear_params(layer_keys[L], D, D)

    # Stack per-layer weights along a leading L axis for the fused kernel.
    stacked = {n: jnp.stack([p[n] for p in layer_params], axis=0)
               for n in _WEIGHT_NAMES}

    out = transformer_decoder(tgt, memory, stacked, w_out, b_out, H, dq, dk)
    out = jax.block_until_ready(out)
    assert out.shape == (B, St, D)

    ref = reference_forward(tgt, memory, layer_params, w_out, b_out, H, dq, dk)
    assert bool(jnp.all(jnp.isfinite(out)))
    assert bool(jnp.allclose(out, ref, atol=1e-3, rtol=1e-3))
    print("KERNEL_OK")
</pallas_src>

<mosaic_0001>
module attributes {stable_mosaic.version = 11 : i64} {
  func.func @fused_decoder_kernel(%arg0: i32, %arg1: memref<8x32xf32, #tpu.memory_space<vmem>>, %arg2: memref<1x8x32xf32, #tpu.memory_space<vmem>>, %arg3: memref<1x8x32xf32, #tpu.memory_space<vmem>>, %arg4: memref<2x32x32xf32, #tpu.memory_space<vmem>>, %arg5: memref<2x1x32xf32, #tpu.memory_space<vmem>>, %arg6: memref<2x32x32xf32, #tpu.memory_space<vmem>>, %arg7: memref<2x1x32xf32, #tpu.memory_space<vmem>>, %arg8: memref<2x32x32xf32, #tpu.memory_space<vmem>>, %arg9: memref<2x1x32xf32, #tpu.memory_space<vmem>>, %arg10: memref<2x32x32xf32, #tpu.memory_space<vmem>>, %arg11: memref<2x1x32xf32, #tpu.memory_space<vmem>>, %arg12: memref<2x1x32xf32, #tpu.memory_space<vmem>>, %arg13: memref<2x1x32xf32, #tpu.memory_space<vmem>>, %arg14: memref<2x32x64xf32, #tpu.memory_space<vmem>>, %arg15: memref<2x1x64xf32, #tpu.memory_space<vmem>>, %arg16: memref<2x64x32xf32, #tpu.memory_space<vmem>>, %arg17: memref<2x1x32xf32, #tpu.memory_space<vmem>>, %arg18: memref<2x1x32xf32, #tpu.memory_space<vmem>>, %arg19: memref<2x1x32xf32, #tpu.memory_space<vmem>>, %arg20: memref<32x32xf32, #tpu.memory_space<vmem>>, %arg21: memref<1x32xf32, #tpu.memory_space<vmem>>, %arg22: memref<1x8x32xf32, #tpu.memory_space<vmem>>) attributes {dimension_semantics = [#tpu.dimension_semantics<parallel>], iteration_bounds = array<i64: 2>, scalar_prefetch = 0 : i64, scratch_operands = 0 : i64, tpu.core_type = #tpu.core_type<tc>, window_params = [{pipeline_mode = #tpu.pipeline_mode<synchronous>, transform_indices = @transform_0, window_bounds = array<i64: 8, 32>}, {transform_indices = @transform_1, window_bounds = array<i64: 1, 8, 32>}, {transform_indices = @transform_2, window_bounds = array<i64: 1, 8, 32>}, {pipeline_mode = #tpu.pipeline_mode<synchronous>, transform_indices = @transform_3, window_bounds = array<i64: 2, 32, 32>}, {pipeline_mode = #tpu.pipeline_mode<synchronous>, transform_indices = @transform_4, window_bounds = array<i64: 2, 1, 32>}, {pipeline_mode = #tpu.pipeline_mode<synchronous>, transform_indices = @transform_5, window_bounds = array<i64: 2, 32, 32>}, {pipeline_mode = #tpu.pipeline_mode<synchronous>, transform_indices = @transform_6, window_bounds = array<i64: 2, 1, 32>}, {pipeline_mode = #tpu.pipeline_mode<synchronous>, transform_indices = @transform_7, window_bounds = array<i64: 2, 32, 32>}, {pipeline_mode = #tpu.pipeline_mode<synchronous>, transform_indices = @transform_8, window_bounds = array<i64: 2, 1, 32>}, {pipeline_mode = #tpu.pipeline_mode<synchronous>, transform_indices = @transform_9, window_bounds = array<i64: 2, 32, 32>}, {pipeline_mode = #tpu.pipeline_mode<synchronous>, transform_indices = @transform_10, window_bounds = array<i64: 2, 1, 32>}, {pipeline_mode = #tpu.pipeline_mode<synchronous>, transform_indices = @transform_11, window_bounds = array<i64: 2, 1, 32>}, {pipeline_mode = #tpu.pipeline_mode<synchronous>, transform_indices = @transform_12, window_bounds = array<i64: 2, 1, 32>}, {pipeline_mode = #tpu.pipeline_mode<synchronous>, transform_indices = @transform_13, window_bounds = array<i64: 2, 32, 64>}, {pipeline_mode = #tpu.pipeline_mode<synchronous>, transform_indices = @transform_14, window_bounds = array<i64: 2, 1, 64>}, {pipeline_mode = #tpu.pipeline_mode<synchronous>, transform_indices = @transform_15, window_bounds = array<i64: 2, 64, 32>}, {pipeline_mode = #tpu.pipeline_mode<synchronous>, transform_indices = @transform_16, window_bounds = array<i64: 2, 1, 32>}, {pipeline_mode = #tpu.pipeline_mode<synchronous>, transform_indices = @transform_17, window_bounds = array<i64: 2, 1, 32>}, {pipeline_mode = #tpu.pipeline_mode<synchronous>, transform_indices = @transform_18, window_bounds = array<i64: 2, 1, 32>}, {pipeline_mode = #tpu.pipeline_mode<synchronous>, transform_indices = @transform_19, window_bounds = array<i64: 32, 32>}, {pipeline_mode = #tpu.pipeline_mode<synchronous>, transform_indices = @transform_20, window_bounds = array<i64: 1, 32>}, {transform_indices = @transform_21, window_bounds = array<i64: 1, 8, 32>}]} {
    %c0 = arith.constant 0 : index
    %c0_0 = arith.constant 0 : index
    %c0_1 = arith.constant 0 : index
    %0 = vector.load %arg2[%c0, %c0_0, %c0_1] : memref<1x8x32xf32, #tpu.memory_space<vmem>>, vector<1x8x32xf32>
    %1 = vector.shape_cast %0 : vector<1x8x32xf32> to vector<8x32xf32>
    %c0_2 = arith.constant 0 : index
    %c0_3 = arith.constant 0 : index
    %2 = vector.load %arg1[%c0_2, %c0_3] : memref<8x32xf32, #tpu.memory_space<vmem>>, vector<8x32xf32>
    %3 = arith.addf %1, %2 : vector<8x32xf32>
    %c0_4 = arith.constant 0 : index
    %c0_5 = arith.constant 0 : index
    %c0_6 = arith.constant 0 : index
    %4 = vector.load %arg3[%c0_4, %c0_5, %c0_6] : memref<1x8x32xf32, #tpu.memory_space<vmem>>, vector<1x8x32xf32>
    %5 = vector.shape_cast %4 : vector<1x8x32xf32> to vector<8x32xf32>
    %c0_7 = arith.constant 0 : index
    %c0_8 = arith.constant 0 : index
    %c0_9 = arith.constant 0 : index
    %6 = vector.load %arg4[%c0_7, %c0_8, %c0_9] : memref<2x32x32xf32, #tpu.memory_space<vmem>>, vector<1x32x32xf32>
    %7 = vector.shape_cast %6 : vector<1x32x32xf32> to vector<32x32xf32>
    %c0_10 = arith.constant 0 : index
    %c0_11 = arith.constant 0 : index
    %c0_12 = arith.constant 0 : index
    %8 = vector.load %arg5[%c0_10, %c0_11, %c0_12] : memref<2x1x32xf32, #tpu.memory_space<vmem>>, vector<1x1x32xf32>
    %9 = vector.shape_cast %8 : vector<1x1x32xf32> to vector<1x32xf32>
    %c0_13 = arith.constant 0 : index
    %c0_14 = arith.constant 0 : index
    %c0_15 = arith.constant 0 : index
    %10 = vector.load %arg6[%c0_13, %c0_14, %c0_15] : memref<2x32x32xf32, #tpu.memory_space<vmem>>, vector<1x32x32xf32>
    %11 = vector.shape_cast %10 : vector<1x32x32xf32> to vector<32x32xf32>
    %c0_16 = arith.constant 0 : index
    %c0_17 = arith.constant 0 : index
    %c0_18 = arith.constant 0 : index
    %12 = vector.load %arg7[%c0_16, %c0_17, %c0_18] : memref<2x1x32xf32, #tpu.memory_space<vmem>>, vector<1x1x32xf32>
    %13 = vector.shape_cast %12 : vector<1x1x32xf32> to vector<1x32xf32>
    %c0_19 = arith.constant 0 : index
    %c0_20 = arith.constant 0 : index
    %c0_21 = arith.constant 0 : index
    %14 = vector.load %arg8[%c0_19, %c0_20, %c0_21] : memref<2x32x32xf32, #tpu.memory_space<vmem>>, vector<1x32x32xf32>
    %15 = vector.shape_cast %14 : vector<1x32x32xf32> to vector<32x32xf32>
    %c0_22 = arith.constant 0 : index
    %c0_23 = arith.constant 0 : index
    %c0_24 = arith.constant 0 : index
    %16 = vector.load %arg9[%c0_22, %c0_23, %c0_24] : memref<2x1x32xf32, #tpu.memory_space<vmem>>, vector<1x1x32xf32>
    %17 = vector.shape_cast %16 : vector<1x1x32xf32> to vector<1x32xf32>
    %c0_25 = arith.constant 0 : index
    %c0_26 = arith.constant 0 : index
    %c0_27 = arith.constant 0 : index
    %18 = vector.load %arg10[%c0_25, %c0_26, %c0_27] : memref<2x32x32xf32, #tpu.memory_space<vmem>>, vector<1x32x32xf32>
    %19 = vector.shape_cast %18 : vector<1x32x32xf32> to vector<32x32xf32>
    %c0_28 = arith.constant 0 : index
    %c0_29 = arith.constant 0 : index
    %c0_30 = arith.constant 0 : index
    %20 = vector.load %arg11[%c0_28, %c0_29, %c0_30] : memref<2x1x32xf32, #tpu.memory_space<vmem>>, vector<1x1x32xf32>
    %21 = vector.shape_cast %20 : vector<1x1x32xf32> to vector<1x32xf32>
    %c0_31 = arith.constant 0 : index
    %c0_32 = arith.constant 0 : index
    %c0_33 = arith.constant 0 : index
    %22 = vector.load %arg12[%c0_31, %c0_32, %c0_33] : memref<2x1x32xf32, #tpu.memory_space<vmem>>, vector<1x1x32xf32>
    %23 = vector.shape_cast %22 : vector<1x1x32xf32> to vector<1x32xf32>
    %c0_34 = arith.constant 0 : index
    %c0_35 = arith.constant 0 : index
    %c0_36 = arith.constant 0 : index
    %24 = vector.load %arg13[%c0_34, %c0_35, %c0_36] : memref<2x1x32xf32, #tpu.memory_space<vmem>>, vector<1x1x32xf32>
    %25 = vector.shape_cast %24 : vector<1x1x32xf32> to vector<1x32xf32>
    %c0_37 = arith.constant 0 : index
    %c0_38 = arith.constant 0 : index
    %c0_39 = arith.constant 0 : index
    %26 = vector.load %arg14[%c0_37, %c0_38, %c0_39] : memref<2x32x64xf32, #tpu.memory_space<vmem>>, vector<1x32x64xf32>
    %27 = vector.shape_cast %26 : vector<1x32x64xf32> to vector<32x64xf32>
    %c0_40 = arith.constant 0 : index
    %c0_41 = arith.constant 0 : index
    %c0_42 = arith.constant 0 : index
    %28 = vector.load %arg15[%c0_40, %c0_41, %c0_42] : memref<2x1x64xf32, #tpu.memory_space<vmem>>, vector<1x1x64xf32>
    %29 = vector.shape_cast %28 : vector<1x1x64xf32> to vector<1x64xf32>
    %c0_43 = arith.constant 0 : index
    %c0_44 = arith.constant 0 : index
    %c0_45 = arith.constant 0 : index
    %30 = vector.load %arg16[%c0_43, %c0_44, %c0_45] : memref<2x64x32xf32, #tpu.memory_space<vmem>>, vector<1x64x32xf32>
    %31 = vector.shape_cast %30 : vector<1x64x32xf32> to vector<64x32xf32>
    %c0_46 = arith.constant 0 : index
    %c0_47 = arith.constant 0 : index
    %c0_48 = arith.constant 0 : index
    %32 = vector.load %arg17[%c0_46, %c0_47, %c0_48] : memref<2x1x32xf32, #tpu.memory_space<vmem>>, vector<1x1x32xf32>
    %33 = vector.shape_cast %32 : vector<1x1x32xf32> to vector<1x32xf32>
    %c0_49 = arith.constant 0 : index
    %c0_50 = arith.constant 0 : index
    %c0_51 = arith.constant 0 : index
    %34 = vector.load %arg18[%c0_49, %c0_50, %c0_51] : memref<2x1x32xf32, #tpu.memory_space<vmem>>, vector<1x1x32xf32>
    %35 = vector.shape_cast %34 : vector<1x1x32xf32> to vector<1x32xf32>
    %c0_52 = arith.constant 0 : index
    %c0_53 = arith.constant 0 : index
    %c0_54 = arith.constant 0 : index
    %36 = vector.load %arg19[%c0_52, %c0_53, %c0_54] : memref<2x1x32xf32, #tpu.memory_space<vmem>>, vector<1x1x32xf32>
    %37 = vector.shape_cast %36 : vector<1x1x32xf32> to vector<1x32xf32>
    %cst = arith.constant dense<0.000000e+00> : vector<8x32xf32>
    %38 = tpu.matmul %3, %7, %cst {dimension_numbers = #tpu.dot_dimension_numbers<[1], [0], [0], [1], [0, 0, 1, 1], [], []>} : vector<8x32xf32>, vector<32x32xf32>, vector<8x32xf32> -> vector<8x32xf32>
    %39 = vector.broadcast %9 : vector<1x32xf32> to vector<8x32xf32>
    %40 = arith.addf %38, %39 : vector<8x32xf32>
    %cst_55 = arith.constant dense<0.000000e+00> : vector<8x32xf32>
    %41 = tpu.matmul %3, %11, %cst_55 {dimension_numbers = #tpu.dot_dimension_numbers<[1], [0], [0], [1], [0, 0, 1, 1], [], []>} : vector<8x32xf32>, vector<32x32xf32>, vector<8x32xf32> -> vector<8x32xf32>
    %42 = vector.broadcast %13 : vector<1x32xf32> to vector<8x32xf32>
    %43 = arith.addf %41, %42 : vector<8x32xf32>
    %cst_56 = arith.constant dense<0.000000e+00> : vector<8x32xf32>
    %44 = tpu.matmul %3, %15, %cst_56 {dimension_numbers = #tpu.dot_dimension_numbers<[1], [0], [0], [1], [0, 0, 1, 1], [], []>} : vector<8x32xf32>, vector<32x32xf32>, vector<8x32xf32> -> vector<8x32xf32>
    %45 = vector.broadcast %17 : vector<1x32xf32> to vector<8x32xf32>
    %46 = arith.addf %44, %45 : vector<8x32xf32>
    %47 = vector.extract_strided_slice %40 {offsets = [0, 0], sizes = [8, 8], strides = [1, 1]} : vector<8x32xf32> to vector<8x8xf32>
    %48 = vector.extract_strided_slice %43 {offsets = [0, 0], sizes = [8, 8], strides = [1, 1]} : vector<8x32xf32> to vector<8x8xf32>
    %49 = vector.extract_strided_slice %46 {offsets = [0, 0], sizes = [8, 8], strides = [1, 1]} : vector<8x32xf32> to vector<8x8xf32>
    %cst_57 = arith.constant dense<0.000000e+00> : vector<8x8xf32>
    %50 = tpu.matmul %47, %48, %cst_57 {dimension_numbers = #tpu.dot_dimension_numbers<[1], [1], [0], [0], [0, 0, 1, 0], [], []>} : vector<8x8xf32>, vector<8x8xf32>, vector<8x8xf32> -> vector<8x8xf32>
    %cst_58 = arith.constant 0.353553385 : f32
    %51 = vector.broadcast %cst_58 : f32 to vector<8x8xf32>
    %52 = arith.mulf %50, %51 : vector<8x8xf32>
    %cst_59 = arith.constant dense<0xFF800000> : vector<8xf32>
    %53 = vector.multi_reduction <maximumf>, %52, %cst_59 [1] : vector<8x8xf32> to vector<8xf32>
    %54 = vector.shape_cast %53 : vector<8xf32> to vector<8x1xf32>
    %55 = vector.broadcast %54 : vector<8x1xf32> to vector<8x8xf32>
    %56 = arith.subf %52, %55 : vector<8x8xf32>
    %57 = math.exp %56 : vector<8x8xf32>
    %cst_60 = arith.constant dense<0.000000e+00> : vector<8xf32>
    %58 = vector.multi_reduction <add>, %57, %cst_60 [1] : vector<8x8xf32> to vector<8xf32>
    %59 = vector.shape_cast %58 : vector<8xf32> to vector<8x1xf32>
    %60 = vector.broadcast %59 : vector<8x1xf32> to vector<8x8xf32>
    %61 = arith.divf %57, %60 : vector<8x8xf32>
    %cst_61 = arith.constant dense<0.000000e+00> : vector<8x8xf32>
    %62 = tpu.matmul %61, %49, %cst_61 {dimension_numbers = #tpu.dot_dimension_numbers<[1], [0], [0], [1], [0, 0, 1, 1], [], []>} : vector<8x8xf32>, vector<8x8xf32>, vector<8x8xf32> -> vector<8x8xf32>
    %63 = vector.extract_strided_slice %40 {offsets = [0, 8], sizes = [8, 8], strides = [1, 1]} : vector<8x32xf32> to vector<8x8xf32>
    %64 = vector.extract_strided_slice %43 {offsets = [0, 8], sizes = [8, 8], strides = [1, 1]} : vector<8x32xf32> to vector<8x8xf32>
    %65 = vector.extract_strided_slice %46 {offsets = [0, 8], sizes = [8, 8], strides = [1, 1]} : vector<8x32xf32> to vector<8x8xf32>
    %cst_62 = arith.constant dense<0.000000e+00> : vector<8x8xf32>
    %66 = tpu.matmul %63, %64, %cst_62 {dimension_numbers = #tpu.dot_dimension_numbers<[1], [1], [0], [0], [0, 0, 1, 0], [], []>} : vector<8x8xf32>, vector<8x8xf32>, vector<8x8xf32> -> vector<8x8xf32>
    %cst_63 = arith.constant 0.353553385 : f32
    %67 = vector.broadcast %cst_63 : f32 to vector<8x8xf32>
    %68 = arith.mulf %66, %67 : vector<8x8xf32>
    %cst_64 = arith.constant dense<0xFF800000> : vector<8xf32>
    %69 = vector.multi_reduction <maximumf>, %68, %cst_64 [1] : vector<8x8xf32> to vector<8xf32>
    %70 = vector.shape_cast %69 : vector<8xf32> to vector<8x1xf32>
    %71 = vector.broadcast %70 : vector<8x1xf32> to vector<8x8xf32>
    %72 = arith.subf %68, %71 : vector<8x8xf32>
    %73 = math.exp %72 : vector<8x8xf32>
    %cst_65 = arith.constant dense<0.000000e+00> : vector<8xf32>
    %74 = vector.multi_reduction <add>, %73, %cst_65 [1] : vector<8x8xf32> to vector<8xf32>
    %75 = vector.shape_cast %74 : vector<8xf32> to vector<8x1xf32>
    %76 = vector.broadcast %75 : vector<8x1xf32> to vector<8x8xf32>
    %77 = arith.divf %73, %76 : vector<8x8xf32>
    %cst_66 = arith.constant dense<0.000000e+00> : vector<8x8xf32>
    %78 = tpu.matmul %77, %65, %cst_66 {dimension_numbers = #tpu.dot_dimension_numbers<[1], [0], [0], [1], [0, 0, 1, 1], [], []>} : vector<8x8xf32>, vector<8x8xf32>, vector<8x8xf32> -> vector<8x8xf32>
    %79 = vector.extract_strided_slice %40 {offsets = [0, 16], sizes = [8, 8], strides = [1, 1]} : vector<8x32xf32> to vector<8x8xf32>
    %80 = vector.extract_strided_slice %43 {offsets = [0, 16], sizes = [8, 8], strides = [1, 1]} : vector<8x32xf32> to vector<8x8xf32>
    %81 = vector.extract_strided_slice %46 {offsets = [0, 16], sizes = [8, 8], strides = [1, 1]} : vector<8x32xf32> to vector<8x8xf32>
    %cst_67 = arith.constant dense<0.000000e+00> : vector<8x8xf32>
    %82 = tpu.matmul %79, %80, %cst_67 {dimension_numbers = #tpu.dot_dimension_numbers<[1], [1], [0], [0], [0, 0, 1, 0], [], []>} : vector<8x8xf32>, vector<8x8xf32>, vector<8x8xf32> -> vector<8x8xf32>
    %cst_68 = arith.constant 0.353553385 : f32
    %83 = vector.broadcast %cst_68 : f32 to vector<8x8xf32>
    %84 = arith.mulf %82, %83 : vector<8x8xf32>
    %cst_69 = arith.constant dense<0xFF800000> : vector<8xf32>
    %85 = vector.multi_reduction <maximumf>, %84, %cst_69 [1] : vector<8x8xf32> to vector<8xf32>
    %86 = vector.shape_cast %85 : vector<8xf32> to vector<8x1xf32>
    %87 = vector.broadcast %86 : vector<8x1xf32> to vector<8x8xf32>
    %88 = arith.subf %84, %87 : vector<8x8xf32>
    %89 = math.exp %88 : vector<8x8xf32>
    %cst_70 = arith.constant dense<0.000000e+00> : vector<8xf32>
    %90 = vector.multi_reduction <add>, %89, %cst_70 [1] : vector<8x8xf32> to vector<8xf32>
    %91 = vector.shape_cast %90 : vector<8xf32> to vector<8x1xf32>
    %92 = vector.broadcast %91 : vector<8x1xf32> to vector<8x8xf32>
    %93 = arith.divf %89, %92 : vector<8x8xf32>
    %cst_71 = arith.constant dense<0.000000e+00> : vector<8x8xf32>
    %94 = tpu.matmul %93, %81, %cst_71 {dimension_numbers = #tpu.dot_dimension_numbers<[1], [0], [0], [1], [0, 0, 1, 1], [], []>} : vector<8x8xf32>, vector<8x8xf32>, vector<8x8xf32> -> vector<8x8xf32>
    %95 = vector.extract_strided_slice %40 {offsets = [0, 24], sizes = [8, 8], strides = [1, 1]} : vector<8x32xf32> to vector<8x8xf32>
    %96 = vector.extract_strided_slice %43 {offsets = [0, 24], sizes = [8, 8], strides = [1, 1]} : vector<8x32xf32> to vector<8x8xf32>
    %97 = vector.extract_strided_slice %46 {offsets = [0, 24], sizes = [8, 8], strides = [1, 1]} : vector<8x32xf32> to vector<8x8xf32>
    %cst_72 = arith.constant dense<0.000000e+00> : vector<8x8xf32>
    %98 = tpu.matmul %95, %96, %cst_72 {dimension_numbers = #tpu.dot_dimension_numbers<[1], [1], [0], [0], [0, 0, 1, 0], [], []>} : vector<8x8xf32>, vector<8x8xf32>, vector<8x8xf32> -> vector<8x8xf32>
    %cst_73 = arith.constant 0.353553385 : f32
    %99 = vector.broadcast %cst_73 : f32 to vector<8x8xf32>
    %100 = arith.mulf %98, %99 : vector<8x8xf32>
    %cst_74 = arith.constant dense<0xFF800000> : vector<8xf32>
    %101 = vector.multi_reduction <maximumf>, %100, %cst_74 [1] : vector<8x8xf32> to vector<8xf32>
    %102 = vector.shape_cast %101 : vector<8xf32> to vector<8x1xf32>
    %103 = vector.broadcast %102 : vector<8x1xf32> to vector<8x8xf32>
    %104 = arith.subf %100, %103 : vector<8x8xf32>
    %105 = math.exp %104 : vector<8x8xf32>
    %cst_75 = arith.constant dense<0.000000e+00> : vector<8xf32>
    %106 = vector.multi_reduction <add>, %105, %cst_75 [1] : vector<8x8xf32> to vector<8xf32>
    %107 = vector.shape_cast %106 : vector<8xf32> to vector<8x1xf32>
    %108 = vector.broadcast %107 : vector<8x1xf32> to vector<8x8xf32>
    %109 = arith.divf %105, %108 : vector<8x8xf32>
    %cst_76 = arith.constant dense<0.000000e+00> : vector<8x8xf32>
    %110 = tpu.matmul %109, %97, %cst_76 {dimension_numbers = #tpu.dot_dimension_numbers<[1], [0], [0], [1], [0, 0, 1, 1], [], []>} : vector<8x8xf32>, vector<8x8xf32>, vector<8x8xf32> -> vector<8x8xf32>
    %111 = tpu.concatenate %62, %78, %94, %110 in 1 : vector<8x8xf32>, vector<8x8xf32>, vector<8x8xf32>, vector<8x8xf32> -> vector<8x32xf32>
    %cst_77 = arith.constant dense<0.000000e+00> : vector<8x32xf32>
    %112 = tpu.matmul %111, %19, %cst_77 {dimension_numbers = #tpu.dot_dimension_numbers<[1], [0], [0], [1], [0, 0, 1, 1], [], []>} : vector<8x32xf32>, vector<32x32xf32>, vector<8x32xf32> -> vector<8x32xf32>
    %113 = vector.broadcast %21 : vector<1x32xf32> to vector<8x32xf32>
    %114 = arith.addf %112, %113 : vector<8x32xf32>
    %115 = arith.addf %3, %114 : vector<8x32xf32>
    %cst_78 = arith.constant dense<0.000000e+00> : vector<8xf32>
    %116 = vector.multi_reduction <add>, %115, %cst_78 [1] : vector<8x32xf32> to vector<8xf32>
    %117 = vector.shape_cast %116 : vector<8xf32> to vector<8x1xf32>
    %cst_79 = arith.constant 3.200000e+01 : f32
    %118 = vector.broadcast %cst_79 : f32 to vector<8x1xf32>
    %119 = arith.divf %117, %118 : vector<8x1xf32>
    %120 = vector.broadcast %119 : vector<8x1xf32> to vector<8x32xf32>
    %121 = arith.subf %115, %120 : vector<8x32xf32>
    %122 = arith.mulf %121, %121 : vector<8x32xf32>
    %cst_80 = arith.constant dense<0.000000e+00> : vector<8xf32>
    %123 = vector.multi_reduction <add>, %122, %cst_80 [1] : vector<8x32xf32> to vector<8xf32>
    %124 = vector.shape_cast %123 : vector<8xf32> to vector<8x1xf32>
    %cst_81 = arith.constant 3.200000e+01 : f32
    %125 = vector.broadcast %cst_81 : f32 to vector<8x1xf32>
    %126 = arith.divf %124, %125 : vector<8x1xf32>
    %127 = vector.broadcast %119 : vector<8x1xf32> to vector<8x32xf32>
    %128 = arith.subf %115, %127 : vector<8x32xf32>
    %cst_82 = arith.constant 9.99999974E-6 : f32
    %129 = vector.broadcast %cst_82 : f32 to vector<8x1xf32>
    %130 = arith.addf %126, %129 : vector<8x1xf32>
    %131 = math.rsqrt %130 : vector<8x1xf32>
    %132 = vector.broadcast %131 : vector<8x1xf32> to vector<8x32xf32>
    %133 = arith.mulf %128, %132 : vector<8x32xf32>
    %134 = vector.broadcast %23 : vector<1x32xf32> to vector<8x32xf32>
    %135 = arith.mulf %133, %134 : vector<8x32xf32>
    %136 = vector.broadcast %25 : vector<1x32xf32> to vector<8x32xf32>
    %137 = arith.addf %135, %136 : vector<8x32xf32>
    %cst_83 = arith.constant dense<0.000000e+00> : vector<8x32xf32>
    %138 = tpu.matmul %137, %7, %cst_83 {dimension_numbers = #tpu.dot_dimension_numbers<[1], [0], [0], [1], [0, 0, 1, 1], [], []>} : vector<8x32xf32>, vector<32x32xf32>, vector<8x32xf32> -> vector<8x32xf32>
    %139 = vector.broadcast %9 : vector<1x32xf32> to vector<8x32xf32>
    %140 = arith.addf %138, %139 : vector<8x32xf32>
    %cst_84 = arith.constant dense<0.000000e+00> : vector<8x32xf32>
    %141 = tpu.matmul %5, %11, %cst_84 {dimension_numbers = #tpu.dot_dimension_numbers<[1], [0], [0], [1], [0, 0, 1, 1], [], []>} : vector<8x32xf32>, vector<32x32xf32>, vector<8x32xf32> -> vector<8x32xf32>
    %142 = vector.broadcast %13 : vector<1x32xf32> to vector<8x32xf32>
    %143 = arith.addf %141, %142 : vector<8x32xf32>
    %cst_85 = arith.constant dense<0.000000e+00> : vector<8x32xf32>
    %144 = tpu.matmul %5, %15, %cst_85 {dimension_numbers = #tpu.dot_dimension_numbers<[1], [0], [0], [1], [0, 0, 1, 1], [], []>} : vector<8x32xf32>, vector<32x32xf32>, vector<8x32xf32> -> vector<8x32xf32>
    %145 = vector.broadcast %17 : vector<1x32xf32> to vector<8x32xf32>
    %146 = arith.addf %144, %145 : vector<8x32xf32>
    %147 = vector.extract_strided_slice %140 {offsets = [0, 0], sizes = [8, 8], strides = [1, 1]} : vector<8x32xf32> to vector<8x8xf32>
    %148 = vector.extract_strided_slice %143 {offsets = [0, 0], sizes = [8, 8], strides = [1, 1]} : vector<8x32xf32> to vector<8x8xf32>
    %149 = vector.extract_strided_slice %146 {offsets = [0, 0], sizes = [8, 8], strides = [1, 1]} : vector<8x32xf32> to vector<8x8xf32>
    %cst_86 = arith.constant dense<0.000000e+00> : vector<8x8xf32>
    %150 = tpu.matmul %147, %148, %cst_86 {dimension_numbers = #tpu.dot_dimension_numbers<[1], [1], [0], [0], [0, 0, 1, 0], [], []>} : vector<8x8xf32>, vector<8x8xf32>, vector<8x8xf32> -> vector<8x8xf32>
    %cst_87 = arith.constant 0.353553385 : f32
    %151 = vector.broadcast %cst_87 : f32 to vector<8x8xf32>
    %152 = arith.mulf %150, %151 : vector<8x8xf32>
    %cst_88 = arith.constant dense<0xFF800000> : vector<8xf32>
    %153 = vector.multi_reduction <maximumf>, %152, %cst_88 [1] : vector<8x8xf32> to vector<8xf32>
    %154 = vector.shape_cast %153 : vector<8xf32> to vector<8x1xf32>
    %155 = vector.broadcast %154 : vector<8x1xf32> to vector<8x8xf32>
    %156 = arith.subf %152, %155 : vector<8x8xf32>
    %157 = math.exp %156 : vector<8x8xf32>
    %cst_89 = arith.constant dense<0.000000e+00> : vector<8xf32>
    %158 = vector.multi_reduction <add>, %157, %cst_89 [1] : vector<8x8xf32> to vector<8xf32>
    %159 = vector.shape_cast %158 : vector<8xf32> to vector<8x1xf32>
    %160 = vector.broadcast %159 : vector<8x1xf32> to vector<8x8xf32>
    %161 = arith.divf %157, %160 : vector<8x8xf32>
    %cst_90 = arith.constant dense<0.000000e+00> : vector<8x8xf32>
    %162 = tpu.matmul %161, %149, %cst_90 {dimension_numbers = #tpu.dot_dimension_numbers<[1], [0], [0], [1], [0, 0, 1, 1], [], []>} : vector<8x8xf32>, vector<8x8xf32>, vector<8x8xf32> -> vector<8x8xf32>
    %163 = vector.extract_strided_slice %140 {offsets = [0, 8], sizes = [8, 8], strides = [1, 1]} : vector<8x32xf32> to vector<8x8xf32>
    %164 = vector.extract_strided_slice %143 {offsets = [0, 8], sizes = [8, 8], strides = [1, 1]} : vector<8x32xf32> to vector<8x8xf32>
    %165 = vector.extract_strided_slice %146 {offsets = [0, 8], sizes = [8, 8], strides = [1, 1]} : vector<8x32xf32> to vector<8x8xf32>
    %cst_91 = arith.constant dense<0.000000e+00> : vector<8x8xf32>
    %166 = tpu.matmul %163, %164, %cst_91 {dimension_numbers = #tpu.dot_dimension_numbers<[1], [1], [0], [0], [0, 0, 1, 0], [], []>} : vector<8x8xf32>, vector<8x8xf32>, vector<8x8xf32> -> vector<8x8xf32>
    %cst_92 = arith.constant 0.353553385 : f32
    %167 = vector.broadcast %cst_92 : f32 to vector<8x8xf32>
    %168 = arith.mulf %166, %167 : vector<8x8xf32>
    %cst_93 = arith.constant dense<0xFF800000> : vector<8xf32>
    %169 = vector.multi_reduction <maximumf>, %168, %cst_93 [1] : vector<8x8xf32> to vector<8xf32>
    %170 = vector.shape_cast %169 : vector<8xf32> to vector<8x1xf32>
    %171 = vector.broadcast %170 : vector<8x1xf32> to vector<8x8xf32>
    %172 = arith.subf %168, %171 : vector<8x8xf32>
    %173 = math.exp %172 : vector<8x8xf32>
    %cst_94 = arith.constant dense<0.000000e+00> : vector<8xf32>
    %174 = vector.multi_reduction <add>, %173, %cst_94 [1] : vector<8x8xf32> to vector<8xf32>
    %175 = vector.shape_cast %174 : vector<8xf32> to vector<8x1xf32>
    %176 = vector.broadcast %175 : vector<8x1xf32> to vector<8x8xf32>
    %177 = arith.divf %173, %176 : vector<8x8xf32>
    %cst_95 = arith.constant dense<0.000000e+00> : vector<8x8xf32>
    %178 = tpu.matmul %177, %165, %cst_95 {dimension_numbers = #tpu.dot_dimension_numbers<[1], [0], [0], [1], [0, 0, 1, 1], [], []>} : vector<8x8xf32>, vector<8x8xf32>, vector<8x8xf32> -> vector<8x8xf32>
    %179 = vector.extract_strided_slice %140 {offsets = [0, 16], sizes = [8, 8], strides = [1, 1]} : vector<8x32xf32> to vector<8x8xf32>
    %180 = vector.extract_strided_slice %143 {offsets = [0, 16], sizes = [8, 8], strides = [1, 1]} : vector<8x32xf32> to vector<8x8xf32>
    %181 = vector.extract_strided_slice %146 {offsets = [0, 16], sizes = [8, 8], strides = [1, 1]} : vector<8x32xf32> to vector<8x8xf32>
    %cst_96 = arith.constant dense<0.000000e+00> : vector<8x8xf32>
    %182 = tpu.matmul %179, %180, %cst_96 {dimension_numbers = #tpu.dot_dimension_numbers<[1], [1], [0], [0], [0, 0, 1, 0], [], []>} : vector<8x8xf32>, vector<8x8xf32>, vector<8x8xf32> -> vector<8x8xf32>
    %cst_97 = arith.constant 0.353553385 : f32
    %183 = vector.broadcast %cst_97 : f32 to vector<8x8xf32>
    %184 = arith.mulf %182, %183 : vector<8x8xf32>
    %cst_98 = arith.constant dense<0xFF800000> : vector<8xf32>
    %185 = vector.multi_reduction <maximumf>, %184, %cst_98 [1] : vector<8x8xf32> to vector<8xf32>
    %186 = vector.shape_cast %185 : vector<8xf32> to vector<8x1xf32>
    %187 = vector.broadcast %186 : vector<8x1xf32> to vector<8x8xf32>
    %188 = arith.subf %184, %187 : vector<8x8xf32>
    %189 = math.exp %188 : vector<8x8xf32>
    %cst_99 = arith.constant dense<0.000000e+00> : vector<8xf32>
    %190 = vector.multi_reduction <add>, %189, %cst_99 [1] : vector<8x8xf32> to vector<8xf32>
    %191 = vector.shape_cast %190 : vector<8xf32> to vector<8x1xf32>
    %192 = vector.broadcast %191 : vector<8x1xf32> to vector<8x8xf32>
    %193 = arith.divf %189, %192 : vector<8x8xf32>
    %cst_100 = arith.constant dense<0.000000e+00> : vector<8x8xf32>
    %194 = tpu.matmul %193, %181, %cst_100 {dimension_numbers = #tpu.dot_dimension_numbers<[1], [0], [0], [1], [0, 0, 1, 1], [], []>} : vector<8x8xf32>, vector<8x8xf32>, vector<8x8xf32> -> vector<8x8xf32>
    %195 = vector.extract_strided_slice %140 {offsets = [0, 24], sizes = [8, 8], strides = [1, 1]} : vector<8x32xf32> to vector<8x8xf32>
    %196 = vector.extract_strided_slice %143 {offsets = [0, 24], sizes = [8, 8], strides = [1, 1]} : vector<8x32xf32> to vector<8x8xf32>
    %197 = vector.extract_strided_slice %146 {offsets = [0, 24], sizes = [8, 8], strides = [1, 1]} : vector<8x32xf32> to vector<8x8xf32>
    %cst_101 = arith.constant dense<0.000000e+00> : vector<8x8xf32>
    %198 = tpu.matmul %195, %196, %cst_101 {dimension_numbers = #tpu.dot_dimension_numbers<[1], [1], [0], [0], [0, 0, 1, 0], [], []>} : vector<8x8xf32>, vector<8x8xf32>, vector<8x8xf32> -> vector<8x8xf32>
    %cst_102 = arith.constant 0.353553385 : f32
    %199 = vector.broadcast %cst_102 : f32 to vector<8x8xf32>
    %200 = arith.mulf %198, %199 : vector<8x8xf32>
    %cst_103 = arith.constant dense<0xFF800000> : vector<8xf32>
    %201 = vector.multi_reduction <maximumf>, %200, %cst_103 [1] : vector<8x8xf32> to vector<8xf32>
    %202 = vector.shape_cast %201 : vector<8xf32> to vector<8x1xf32>
    %203 = vector.broadcast %202 : vector<8x1xf32> to vector<8x8xf32>
    %204 = arith.subf %200, %203 : vector<8x8xf32>
    %205 = math.exp %204 : vector<8x8xf32>
    %cst_104 = arith.constant dense<0.000000e+00> : vector<8xf32>
    %206 = vector.multi_reduction <add>, %205, %cst_104 [1] : vector<8x8xf32> to vector<8xf32>
    %207 = vector.shape_cast %206 : vector<8xf32> to vector<8x1xf32>
    %208 = vector.broadcast %207 : vector<8x1xf32> to vector<8x8xf32>
    %209 = arith.divf %205, %208 : vector<8x8xf32>
    %cst_105 = arith.constant dense<0.000000e+00> : vector<8x8xf32>
    %210 = tpu.matmul %209, %197, %cst_105 {dimension_numbers = #tpu.dot_dimension_numbers<[1], [0], [0], [1], [0, 0, 1, 1], [], []>} : vector<8x8xf32>, vector<8x8xf32>, vector<8x8xf32> -> vector<8x8xf32>
    %211 = tpu.concatenate %162, %178, %194, %210 in 1 : vector<8x8xf32>, vector<8x8xf32>, vector<8x8xf32>, vector<8x8xf32> -> vector<8x32xf32>
    %cst_106 = arith.constant dense<0.000000e+00> : vector<8x32xf32>
    %212 = tpu.matmul %211, %19, %cst_106 {dimension_numbers = #tpu.dot_dimension_numbers<[1], [0], [0], [1], [0, 0, 1, 1], [], []>} : vector<8x32xf32>, vector<32x32xf32>, vector<8x32xf32> -> vector<8x32xf32>
    %213 = vector.broadcast %21 : vector<1x32xf32> to vector<8x32xf32>
    %214 = arith.addf %212, %213 : vector<8x32xf32>
    %215 = arith.addf %137, %214 : vector<8x32xf32>
    %cst_107 = arith.constant dense<0.000000e+00> : vector<8xf32>
    %216 = vector.multi_reduction <add>, %215, %cst_107 [1] : vector<8x32xf32> to vector<8xf32>
    %217 = vector.shape_cast %216 : vector<8xf32> to vector<8x1xf32>
    %cst_108 = arith.constant 3.200000e+01 : f32
    %218 = vector.broadcast %cst_108 : f32 to vector<8x1xf32>
    %219 = arith.divf %217, %218 : vector<8x1xf32>
    %220 = vector.broadcast %219 : vector<8x1xf32> to vector<8x32xf32>
    %221 = arith.subf %215, %220 : vector<8x32xf32>
    %222 = arith.mulf %221, %221 : vector<8x32xf32>
    %cst_109 = arith.constant dense<0.000000e+00> : vector<8xf32>
    %223 = vector.multi_reduction <add>, %222, %cst_109 [1] : vector<8x32xf32> to vector<8xf32>
    %224 = vector.shape_cast %223 : vector<8xf32> to vector<8x1xf32>
    %cst_110 = arith.constant 3.200000e+01 : f32
    %225 = vector.broadcast %cst_110 : f32 to vector<8x1xf32>
    %226 = arith.divf %224, %225 : vector<8x1xf32>
    %227 = vector.broadcast %219 : vector<8x1xf32> to vector<8x32xf32>
    %228 = arith.subf %215, %227 : vector<8x32xf32>
    %cst_111 = arith.constant 9.99999974E-6 : f32
    %229 = vector.broadcast %cst_111 : f32 to vector<8x1xf32>
    %230 = arith.addf %226, %229 : vector<8x1xf32>
    %231 = math.rsqrt %230 : vector<8x1xf32>
    %232 = vector.broadcast %231 : vector<8x1xf32> to vector<8x32xf32>
    %233 = arith.mulf %228, %232 : vector<8x32xf32>
    %234 = vector.broadcast %23 : vector<1x32xf32> to vector<8x32xf32>
    %235 = arith.mulf %233, %234 : vector<8x32xf32>
    %236 = vector.broadcast %25 : vector<1x32xf32> to vector<8x32xf32>
    %237 = arith.addf %235, %236 : vector<8x32xf32>
    %cst_112 = arith.constant dense<0.000000e+00> : vector<8x64xf32>
    %238 = tpu.matmul %237, %27, %cst_112 {dimension_numbers = #tpu.dot_dimension_numbers<[1], [0], [0], [1], [0, 0, 1, 1], [], []>} : vector<8x32xf32>, vector<32x64xf32>, vector<8x64xf32> -> vector<8x64xf32>
    %239 = vector.broadcast %29 : vector<1x64xf32> to vector<8x64xf32>
    %240 = arith.addf %238, %239 : vector<8x64xf32>
    %cst_113 = arith.constant 0.000000e+00 : f32
    %241 = vector.broadcast %cst_113 : f32 to vector<8x64xf32>
    %242 = arith.maximumf %240, %241 : vector<8x64xf32>
    %cst_114 = arith.constant dense<0.000000e+00> : vector<8x32xf32>
    %243 = tpu.matmul %242, %31, %cst_114 {dimension_numbers = #tpu.dot_dimension_numbers<[1], [0], [0], [1], [0, 0, 1, 1], [], []>} : vector<8x64xf32>, vector<64x32xf32>, vector<8x32xf32> -> vector<8x32xf32>
    %244 = vector.broadcast %33 : vector<1x32xf32> to vector<8x32xf32>
    %245 = arith.addf %243, %244 : vector<8x32xf32>
    %246 = arith.addf %237, %245 : vector<8x32xf32>
    %cst_115 = arith.constant dense<0.000000e+00> : vector<8xf32>
    %247 = vector.multi_reduction <add>, %246, %cst_115 [1] : vector<8x32xf32> to vector<8xf32>
    %248 = vector.shape_cast %247 : vector<8xf32> to vector<8x1xf32>
    %cst_116 = arith.constant 3.200000e+01 : f32
    %249 = vector.broadcast %cst_116 : f32 to vector<8x1xf32>
    %250 = arith.divf %248, %249 : vector<8x1xf32>
    %251 = vector.broadcast %250 : vector<8x1xf32> to vector<8x32xf32>
    %252 = arith.subf %246, %251 : vector<8x32xf32>
    %253 = arith.mulf %252, %252 : vector<8x32xf32>
    %cst_117 = arith.constant dense<0.000000e+00> : vector<8xf32>
    %254 = vector.multi_reduction <add>, %253, %cst_117 [1] : vector<8x32xf32> to vector<8xf32>
    %255 = vector.shape_cast %254 : vector<8xf32> to vector<8x1xf32>
    %cst_118 = arith.constant 3.200000e+01 : f32
    %256 = vector.broadcast %cst_118 : f32 to vector<8x1xf32>
    %257 = arith.divf %255, %256 : vector<8x1xf32>
    %258 = vector.broadcast %250 : vector<8x1xf32> to vector<8x32xf32>
    %259 = arith.subf %246, %258 : vector<8x32xf32>
    %cst_119 = arith.constant 9.99999974E-6 : f32
    %260 = vector.broadcast %cst_119 : f32 to vector<8x1xf32>
    %261 = arith.addf %257, %260 : vector<8x1xf32>
    %262 = math.rsqrt %261 : vector<8x1xf32>
    %263 = vector.broadcast %262 : vector<8x1xf32> to vector<8x32xf32>
    %264 = arith.mulf %259, %263 : vector<8x32xf32>
    %265 = vector.broadcast %35 : vector<1x32xf32> to vector<8x32xf32>
    %266 = arith.mulf %264, %265 : vector<8x32xf32>
    %267 = vector.broadcast %37 : vector<1x32xf32> to vector<8x32xf32>
    %268 = arith.addf %266, %267 : vector<8x32xf32>
    %c1 = arith.constant 1 : index
    %c0_120 = arith.constant 0 : index
    %c0_121 = arith.constant 0 : index
    %269 = vector.load %arg4[%c1, %c0_120, %c0_121] : memref<2x32x32xf32, #tpu.memory_space<vmem>>, vector<1x32x32xf32>
    %270 = vector.shape_cast %269 : vector<1x32x32xf32> to vector<32x32xf32>
    %c1_122 = arith.constant 1 : index
    %c0_123 = arith.constant 0 : index
    %c0_124 = arith.constant 0 : index
    %271 = vector.load %arg5[%c1_122, %c0_123, %c0_124] : memref<2x1x32xf32, #tpu.memory_space<vmem>>, vector<1x1x32xf32>
    %272 = vector.shape_cast %271 : vector<1x1x32xf32> to vector<1x32xf32>
    %c1_125 = arith.constant 1 : index
    %c0_126 = arith.constant 0 : index
    %c0_127 = arith.constant 0 : index
    %273 = vector.load %arg6[%c1_125, %c0_126, %c0_127] : memref<2x32x32xf32, #tpu.memory_space<vmem>>, vector<1x32x32xf32>
    %274 = vector.shape_cast %273 : vector<1x32x32xf32> to vector<32x32xf32>
    %c1_128 = arith.constant 1 : index
    %c0_129 = arith.constant 0 : index
    %c0_130 = arith.constant 0 : index
    %275 = vector.load %arg7[%c1_128, %c0_129, %c0_130] : memref<2x1x32xf32, #tpu.memory_space<vmem>>, vector<1x1x32xf32>
    %276 = vector.shape_cast %275 : vector<1x1x32xf32> to vector<1x32xf32>
    %c1_131 = arith.constant 1 : index
    %c0_132 = arith.constant 0 : index
    %c0_133 = arith.constant 0 : index
    %277 = vector.load %arg8[%c1_131, %c0_132, %c0_133] : memref<2x32x32xf32, #tpu.memory_space<vmem>>, vector<1x32x32xf32>
    %278 = vector.shape_cast %277 : vector<1x32x32xf32> to vector<32x32xf32>
    %c1_134 = arith.constant 1 : index
    %c0_135 = arith.constant 0 : index
    %c0_136 = arith.constant 0 : index
    %279 = vector.load %arg9[%c1_134, %c0_135, %c0_136] : memref<2x1x32xf32, #tpu.memory_space<vmem>>, vector<1x1x32xf32>
    %280 = vector.shape_cast %279 : vector<1x1x32xf32> to vector<1x32xf32>
    %c1_137 = arith.constant 1 : index
    %c0_138 = arith.constant 0 : index
    %c0_139 = arith.constant 0 : index
    %281 = vector.load %arg10[%c1_137, %c0_138, %c0_139] : memref<2x32x32xf32, #tpu.memory_space<vmem>>, vector<1x32x32xf32>
    %282 = vector.shape_cast %281 : vector<1x32x32xf32> to vector<32x32xf32>
    %c1_140 = arith.constant 1 : index
    %c0_141 = arith.constant 0 : index
    %c0_142 = arith.constant 0 : index
    %283 = vector.load %arg11[%c1_140, %c0_141, %c0_142] : memref<2x1x32xf32, #tpu.memory_space<vmem>>, vector<1x1x32xf32>
    %284 = vector.shape_cast %283 : vector<1x1x32xf32> to vector<1x32xf32>
    %c1_143 = arith.constant 1 : index
    %c0_144 = arith.constant 0 : index
    %c0_145 = arith.constant 0 : index
    %285 = vector.load %arg12[%c1_143, %c0_144, %c0_145] : memref<2x1x32xf32, #tpu.memory_space<vmem>>, vector<1x1x32xf32>
    %286 = vector.shape_cast %285 : vector<1x1x32xf32> to vector<1x32xf32>
    %c1_146 = arith.constant 1 : index
    %c0_147 = arith.constant 0 : index
    %c0_148 = arith.constant 0 : index
    %287 = vector.load %arg13[%c1_146, %c0_147, %c0_148] : memref<2x1x32xf32, #tpu.memory_space<vmem>>, vector<1x1x32xf32>
    %288 = vector.shape_cast %287 : vector<1x1x32xf32> to vector<1x32xf32>
    %c1_149 = arith.constant 1 : index
    %c0_150 = arith.constant 0 : index
    %c0_151 = arith.constant 0 : index
    %289 = vector.load %arg14[%c1_149, %c0_150, %c0_151] : memref<2x32x64xf32, #tpu.memory_space<vmem>>, vector<1x32x64xf32>
    %290 = vector.shape_cast %289 : vector<1x32x64xf32> to vector<32x64xf32>
    %c1_152 = arith.constant 1 : index
    %c0_153 = arith.constant 0 : index
    %c0_154 = arith.constant 0 : index
    %291 = vector.load %arg15[%c1_152, %c0_153, %c0_154] : memref<2x1x64xf32, #tpu.memory_space<vmem>>, vector<1x1x64xf32>
    %292 = vector.shape_cast %291 : vector<1x1x64xf32> to vector<1x64xf32>
    %c1_155 = arith.constant 1 : index
    %c0_156 = arith.constant 0 : index
    %c0_157 = arith.constant 0 : index
    %293 = vector.load %arg16[%c1_155, %c0_156, %c0_157] : memref<2x64x32xf32, #tpu.memory_space<vmem>>, vector<1x64x32xf32>
    %294 = vector.shape_cast %293 : vector<1x64x32xf32> to vector<64x32xf32>
    %c1_158 = arith.constant 1 : index
    %c0_159 = arith.constant 0 : index
    %c0_160 = arith.constant 0 : index
    %295 = vector.load %arg17[%c1_158, %c0_159, %c0_160] : memref<2x1x32xf32, #tpu.memory_space<vmem>>, vector<1x1x32xf32>
    %296 = vector.shape_cast %295 : vector<1x1x32xf32> to vector<1x32xf32>
    %c1_161 = arith.constant 1 : index
    %c0_162 = arith.constant 0 : index
    %c0_163 = arith.constant 0 : index
    %297 = vector.load %arg18[%c1_161, %c0_162, %c0_163] : memref<2x1x32xf32, #tpu.memory_space<vmem>>, vector<1x1x32xf32>
    %298 = vector.shape_cast %297 : vector<1x1x32xf32> to vector<1x32xf32>
    %c1_164 = arith.constant 1 : index
    %c0_165 = arith.constant 0 : index
    %c0_166 = arith.constant 0 : index
    %299 = vector.load %arg19[%c1_164, %c0_165, %c0_166] : memref<2x1x32xf32, #tpu.memory_space<vmem>>, vector<1x1x32xf32>
    %300 = vector.shape_cast %299 : vector<1x1x32xf32> to vector<1x32xf32>
    %cst_167 = arith.constant dense<0.000000e+00> : vector<8x32xf32>
    %301 = tpu.matmul %268, %270, %cst_167 {dimension_numbers = #tpu.dot_dimension_numbers<[1], [0], [0], [1], [0, 0, 1, 1], [], []>} : vector<8x32xf32>, vector<32x32xf32>, vector<8x32xf32> -> vector<8x32xf32>
    %302 = vector.broadcast %272 : vector<1x32xf32> to vector<8x32xf32>
    %303 = arith.addf %301, %302 : vector<8x32xf32>
    %cst_168 = arith.constant dense<0.000000e+00> : vector<8x32xf32>
    %304 = tpu.matmul %268, %274, %cst_168 {dimension_numbers = #tpu.dot_dimension_numbers<[1], [0], [0], [1], [0, 0, 1, 1], [], []>} : vector<8x32xf32>, vector<32x32xf32>, vector<8x32xf32> -> vector<8x32xf32>
    %305 = vector.broadcast %276 : vector<1x32xf32> to vector<8x32xf32>
    %306 = arith.addf %304, %305 : vector<8x32xf32>
    %cst_169 = arith.constant dense<0.000000e+00> : vector<8x32xf32>
    %307 = tpu.matmul %268, %278, %cst_169 {dimension_numbers = #tpu.dot_dimension_numbers<[1], [0], [0], [1], [0, 0, 1, 1], [], []>} : vector<8x32xf32>, vector<32x32xf32>, vector<8x32xf32> -> vector<8x32xf32>
    %308 = vector.broadcast %280 : vector<1x32xf32> to vector<8x32xf32>
    %309 = arith.addf %307, %308 : vector<8x32xf32>
    %310 = vector.extract_strided_slice %303 {offsets = [0, 0], sizes = [8, 8], strides = [1, 1]} : vector<8x32xf32> to vector<8x8xf32>
    %311 = vector.extract_strided_slice %306 {offsets = [0, 0], sizes = [8, 8], strides = [1, 1]} : vector<8x32xf32> to vector<8x8xf32>
    %312 = vector.extract_strided_slice %309 {offsets = [0, 0], sizes = [8, 8], strides = [1, 1]} : vector<8x32xf32> to vector<8x8xf32>
    %cst_170 = arith.constant dense<0.000000e+00> : vector<8x8xf32>
    %313 = tpu.matmul %310, %311, %cst_170 {dimension_numbers = #tpu.dot_dimension_numbers<[1], [1], [0], [0], [0, 0, 1, 0], [], []>} : vector<8x8xf32>, vector<8x8xf32>, vector<8x8xf32> -> vector<8x8xf32>
    %cst_171 = arith.constant 0.353553385 : f32
    %314 = vector.broadcast %cst_171 : f32 to vector<8x8xf32>
    %315 = arith.mulf %313, %314 : vector<8x8xf32>
    %cst_172 = arith.constant dense<0xFF800000> : vector<8xf32>
    %316 = vector.multi_reduction <maximumf>, %315, %cst_172 [1] : vector<8x8xf32> to vector<8xf32>
    %317 = vector.shape_cast %316 : vector<8xf32> to vector<8x1xf32>
    %318 = vector.broadcast %317 : vector<8x1xf32> to vector<8x8xf32>
    %319 = arith.subf %315, %318 : vector<8x8xf32>
    %320 = math.exp %319 : vector<8x8xf32>
    %cst_173 = arith.constant dense<0.000000e+00> : vector<8xf32>
    %321 = vector.multi_reduction <add>, %320, %cst_173 [1] : vector<8x8xf32> to vector<8xf32>
    %322 = vector.shape_cast %321 : vector<8xf32> to vector<8x1xf32>
    %323 = vector.broadcast %322 : vector<8x1xf32> to vector<8x8xf32>
    %324 = arith.divf %320, %323 : vector<8x8xf32>
    %cst_174 = arith.constant dense<0.000000e+00> : vector<8x8xf32>
    %325 = tpu.matmul %324, %312, %cst_174 {dimension_numbers = #tpu.dot_dimension_numbers<[1], [0], [0], [1], [0, 0, 1, 1], [], []>} : vector<8x8xf32>, vector<8x8xf32>, vector<8x8xf32> -> vector<8x8xf32>
    %326 = vector.extract_strided_slice %303 {offsets = [0, 8], sizes = [8, 8], strides = [1, 1]} : vector<8x32xf32> to vector<8x8xf32>
    %327 = vector.extract_strided_slice %306 {offsets = [0, 8], sizes = [8, 8], strides = [1, 1]} : vector<8x32xf32> to vector<8x8xf32>
    %328 = vector.extract_strided_slice %309 {offsets = [0, 8], sizes = [8, 8], strides = [1, 1]} : vector<8x32xf32> to vector<8x8xf32>
    %cst_175 = arith.constant dense<0.000000e+00> : vector<8x8xf32>
    %329 = tpu.matmul %326, %327, %cst_175 {dimension_numbers = #tpu.dot_dimension_numbers<[1], [1], [0], [0], [0, 0, 1, 0], [], []>} : vector<8x8xf32>, vector<8x8xf32>, vector<8x8xf32> -> vector<8x8xf32>
    %cst_176 = arith.constant 0.353553385 : f32
    %330 = vector.broadcast %cst_176 : f32 to vector<8x8xf32>
    %331 = arith.mulf %329, %330 : vector<8x8xf32>
    %cst_177 = arith.constant dense<0xFF800000> : vector<8xf32>
    %332 = vector.multi_reduction <maximumf>, %331, %cst_177 [1] : vector<8x8xf32> to vector<8xf32>
    %333 = vector.shape_cast %332 : vector<8xf32> to vector<8x1xf32>
    %334 = vector.broadcast %333 : vector<8x1xf32> to vector<8x8xf32>
    %335 = arith.subf %331, %334 : vector<8x8xf32>
    %336 = math.exp %335 : vector<8x8xf32>
    %cst_178 = arith.constant dense<0.000000e+00> : vector<8xf32>
    %337 = vector.multi_reduction <add>, %336, %cst_178 [1] : vector<8x8xf32> to vector<8xf32>
    %338 = vector.shape_cast %337 : vector<8xf32> to vector<8x1xf32>
    %339 = vector.broadcast %338 : vector<8x1xf32> to vector<8x8xf32>
    %340 = arith.divf %336, %339 : vector<8x8xf32>
    %cst_179 = arith.constant dense<0.000000e+00> : vector<8x8xf32>
    %341 = tpu.matmul %340, %328, %cst_179 {dimension_numbers = #tpu.dot_dimension_numbers<[1], [0], [0], [1], [0, 0, 1, 1], [], []>} : vector<8x8xf32>, vector<8x8xf32>, vector<8x8xf32> -> vector<8x8xf32>
    %342 = vector.extract_strided_slice %303 {offsets = [0, 16], sizes = [8, 8], strides = [1, 1]} : vector<8x32xf32> to vector<8x8xf32>
    %343 = vector.extract_strided_slice %306 {offsets = [0, 16], sizes = [8, 8], strides = [1, 1]} : vector<8x32xf32> to vector<8x8xf32>
    %344 = vector.extract_strided_slice %309 {offsets = [0, 16], sizes = [8, 8], strides = [1, 1]} : vector<8x32xf32> to vector<8x8xf32>
    %cst_180 = arith.constant dense<0.000000e+00> : vector<8x8xf32>
    %345 = tpu.matmul %342, %343, %cst_180 {dimension_numbers = #tpu.dot_dimension_numbers<[1], [1], [0], [0], [0, 0, 1, 0], [], []>} : vector<8x8xf32>, vector<8x8xf32>, vector<8x8xf32> -> vector<8x8xf32>
    %cst_181 = arith.constant 0.353553385 : f32
    %346 = vector.broadcast %cst_181 : f32 to vector<8x8xf32>
    %347 = arith.mulf %345, %346 : vector<8x8xf32>
    %cst_182 = arith.constant dense<0xFF800000> : vector<8xf32>
    %348 = vector.multi_reduction <maximumf>, %347, %cst_182 [1] : vector<8x8xf32> to vector<8xf32>
    %349 = vector.shape_cast %348 : vector<8xf32> to vector<8x1xf32>
    %350 = vector.broadcast %349 : vector<8x1xf32> to vector<8x8xf32>
    %351 = arith.subf %347, %350 : vector<8x8xf32>
    %352 = math.exp %351 : vector<8x8xf32>
    %cst_183 = arith.constant dense<0.000000e+00> : vector<8xf32>
    %353 = vector.multi_reduction <add>, %352, %cst_183 [1] : vector<8x8xf32> to vector<8xf32>
    %354 = vector.shape_cast %353 : vector<8xf32> to vector<8x1xf32>
    %355 = vector.broadcast %354 : vector<8x1xf32> to vector<8x8xf32>
    %356 = arith.divf %352, %355 : vector<8x8xf32>
    %cst_184 = arith.constant dense<0.000000e+00> : vector<8x8xf32>
    %357 = tpu.matmul %356, %344, %cst_184 {dimension_numbers = #tpu.dot_dimension_numbers<[1], [0], [0], [1], [0, 0, 1, 1], [], []>} : vector<8x8xf32>, vector<8x8xf32>, vector<8x8xf32> -> vector<8x8xf32>
    %358 = vector.extract_strided_slice %303 {offsets = [0, 24], sizes = [8, 8], strides = [1, 1]} : vector<8x32xf32> to vector<8x8xf32>
    %359 = vector.extract_strided_slice %306 {offsets = [0, 24], sizes = [8, 8], strides = [1, 1]} : vector<8x32xf32> to vector<8x8xf32>
    %360 = vector.extract_strided_slice %309 {offsets = [0, 24], sizes = [8, 8], strides = [1, 1]} : vector<8x32xf32> to vector<8x8xf32>
    %cst_185 = arith.constant dense<0.000000e+00> : vector<8x8xf32>
    %361 = tpu.matmul %358, %359, %cst_185 {dimension_numbers = #tpu.dot_dimension_numbers<[1], [1], [0], [0], [0, 0, 1, 0], [], []>} : vector<8x8xf32>, vector<8x8xf32>, vector<8x8xf32> -> vector<8x8xf32>
    %cst_186 = arith.constant 0.353553385 : f32
    %362 = vector.broadcast %cst_186 : f32 to vector<8x8xf32>
    %363 = arith.mulf %361, %362 : vector<8x8xf32>
    %cst_187 = arith.constant dense<0xFF800000> : vector<8xf32>
    %364 = vector.multi_reduction <maximumf>, %363, %cst_187 [1] : vector<8x8xf32> to vector<8xf32>
    %365 = vector.shape_cast %364 : vector<8xf32> to vector<8x1xf32>
    %366 = vector.broadcast %365 : vector<8x1xf32> to vector<8x8xf32>
    %367 = arith.subf %363, %366 : vector<8x8xf32>
    %368 = math.exp %367 : vector<8x8xf32>
    %cst_188 = arith.constant dense<0.000000e+00> : vector<8xf32>
    %369 = vector.multi_reduction <add>, %368, %cst_188 [1] : vector<8x8xf32> to vector<8xf32>
    %370 = vector.shape_cast %369 : vector<8xf32> to vector<8x1xf32>
    %371 = vector.broadcast %370 : vector<8x1xf32> to vector<8x8xf32>
    %372 = arith.divf %368, %371 : vector<8x8xf32>
    %cst_189 = arith.constant dense<0.000000e+00> : vector<8x8xf32>
    %373 = tpu.matmul %372, %360, %cst_189 {dimension_numbers = #tpu.dot_dimension_numbers<[1], [0], [0], [1], [0, 0, 1, 1], [], []>} : vector<8x8xf32>, vector<8x8xf32>, vector<8x8xf32> -> vector<8x8xf32>
    %374 = tpu.concatenate %325, %341, %357, %373 in 1 : vector<8x8xf32>, vector<8x8xf32>, vector<8x8xf32>, vector<8x8xf32> -> vector<8x32xf32>
    %cst_190 = arith.constant dense<0.000000e+00> : vector<8x32xf32>
    %375 = tpu.matmul %374, %282, %cst_190 {dimension_numbers = #tpu.dot_dimension_numbers<[1], [0], [0], [1], [0, 0, 1, 1], [], []>} : vector<8x32xf32>, vector<32x32xf32>, vector<8x32xf32> -> vector<8x32xf32>
    %376 = vector.broadcast %284 : vector<1x32xf32> to vector<8x32xf32>
    %377 = arith.addf %375, %376 : vector<8x32xf32>
    %378 = arith.addf %268, %377 : vector<8x32xf32>
    %cst_191 = arith.constant dense<0.000000e+00> : vector<8xf32>
    %379 = vector.multi_reduction <add>, %378, %cst_191 [1] : vector<8x32xf32> to vector<8xf32>
    %380 = vector.shape_cast %379 : vector<8xf32> to vector<8x1xf32>
    %cst_192 = arith.constant 3.200000e+01 : f32
    %381 = vector.broadcast %cst_192 : f32 to vector<8x1xf32>
    %382 = arith.divf %380, %381 : vector<8x1xf32>
    %383 = vector.broadcast %382 : vector<8x1xf32> to vector<8x32xf32>
    %384 = arith.subf %378, %383 : vector<8x32xf32>
    %385 = arith.mulf %384, %384 : vector<8x32xf32>
    %cst_193 = arith.constant dense<0.000000e+00> : vector<8xf32>
    %386 = vector.multi_reduction <add>, %385, %cst_193 [1] : vector<8x32xf32> to vector<8xf32>
    %387 = vector.shape_cast %386 : vector<8xf32> to vector<8x1xf32>
    %cst_194 = arith.constant 3.200000e+01 : f32
    %388 = vector.broadcast %cst_194 : f32 to vector<8x1xf32>
    %389 = arith.divf %387, %388 : vector<8x1xf32>
    %390 = vector.broadcast %382 : vector<8x1xf32> to vector<8x32xf32>
    %391 = arith.subf %378, %390 : vector<8x32xf32>
    %cst_195 = arith.constant 9.99999974E-6 : f32
    %392 = vector.broadcast %cst_195 : f32 to vector<8x1xf32>
    %393 = arith.addf %389, %392 : vector<8x1xf32>
    %394 = math.rsqrt %393 : vector<8x1xf32>
    %395 = vector.broadcast %394 : vector<8x1xf32> to vector<8x32xf32>
    %396 = arith.mulf %391, %395 : vector<8x32xf32>
    %397 = vector.broadcast %286 : vector<1x32xf32> to vector<8x32xf32>
    %398 = arith.mulf %396, %397 : vector<8x32xf32>
    %399 = vector.broadcast %288 : vector<1x32xf32> to vector<8x32xf32>
    %400 = arith.addf %398, %399 : vector<8x32xf32>
    %cst_196 = arith.constant dense<0.000000e+00> : vector<8x32xf32>
    %401 = tpu.matmul %400, %270, %cst_196 {dimension_numbers = #tpu.dot_dimension_numbers<[1], [0], [0], [1], [0, 0, 1, 1], [], []>} : vector<8x32xf32>, vector<32x32xf32>, vector<8x32xf32> -> vector<8x32xf32>
    %402 = vector.broadcast %272 : vector<1x32xf32> to vector<8x32xf32>
    %403 = arith.addf %401, %402 : vector<8x32xf32>
    %cst_197 = arith.constant dense<0.000000e+00> : vector<8x32xf32>
    %404 = tpu.matmul %5, %274, %cst_197 {dimension_numbers = #tpu.dot_dimension_numbers<[1], [0], [0], [1], [0, 0, 1, 1], [], []>} : vector<8x32xf32>, vector<32x32xf32>, vector<8x32xf32> -> vector<8x32xf32>
    %405 = vector.broadcast %276 : vector<1x32xf32> to vector<8x32xf32>
    %406 = arith.addf %404, %405 : vector<8x32xf32>
    %cst_198 = arith.constant dense<0.000000e+00> : vector<8x32xf32>
    %407 = tpu.matmul %5, %278, %cst_198 {dimension_numbers = #tpu.dot_dimension_numbers<[1], [0], [0], [1], [0, 0, 1, 1], [], []>} : vector<8x32xf32>, vector<32x32xf32>, vector<8x32xf32> -> vector<8x32xf32>
    %408 = vector.broadcast %280 : vector<1x32xf32> to vector<8x32xf32>
    %409 = arith.addf %407, %408 : vector<8x32xf32>
    %410 = vector.extract_strided_slice %403 {offsets = [0, 0], sizes = [8, 8], strides = [1, 1]} : vector<8x32xf32> to vector<8x8xf32>
    %411 = vector.extract_strided_slice %406 {offsets = [0, 0], sizes = [8, 8], strides = [1, 1]} : vector<8x32xf32> to vector<8x8xf32>
    %412 = vector.extract_strided_slice %409 {offsets = [0, 0], sizes = [8, 8], strides = [1, 1]} : vector<8x32xf32> to vector<8x8xf32>
    %cst_199 = arith.constant dense<0.000000e+00> : vector<8x8xf32>
    %413 = tpu.matmul %410, %411, %cst_199 {dimension_numbers = #tpu.dot_dimension_numbers<[1], [1], [0], [0], [0, 0, 1, 0], [], []>} : vector<8x8xf32>, vector<8x8xf32>, vector<8x8xf32> -> vector<8x8xf32>
    %cst_200 = arith.constant 0.353553385 : f32
    %414 = vector.broadcast %cst_200 : f32 to vector<8x8xf32>
    %415 = arith.mulf %413, %414 : vector<8x8xf32>
    %cst_201 = arith.constant dense<0xFF800000> : vector<8xf32>
    %416 = vector.multi_reduction <maximumf>, %415, %cst_201 [1] : vector<8x8xf32> to vector<8xf32>
    %417 = vector.shape_cast %416 : vector<8xf32> to vector<8x1xf32>
    %418 = vector.broadcast %417 : vector<8x1xf32> to vector<8x8xf32>
    %419 = arith.subf %415, %418 : vector<8x8xf32>
    %420 = math.exp %419 : vector<8x8xf32>
    %cst_202 = arith.constant dense<0.000000e+00> : vector<8xf32>
    %421 = vector.multi_reduction <add>, %420, %cst_202 [1] : vector<8x8xf32> to vector<8xf32>
    %422 = vector.shape_cast %421 : vector<8xf32> to vector<8x1xf32>
    %423 = vector.broadcast %422 : vector<8x1xf32> to vector<8x8xf32>
    %424 = arith.divf %420, %423 : vector<8x8xf32>
    %cst_203 = arith.constant dense<0.000000e+00> : vector<8x8xf32>
    %425 = tpu.matmul %424, %412, %cst_203 {dimension_numbers = #tpu.dot_dimension_numbers<[1], [0], [0], [1], [0, 0, 1, 1], [], []>} : vector<8x8xf32>, vector<8x8xf32>, vector<8x8xf32> -> vector<8x8xf32>
    %426 = vector.extract_strided_slice %403 {offsets = [0, 8], sizes = [8, 8], strides = [1, 1]} : vector<8x32xf32> to vector<8x8xf32>
    %427 = vector.extract_strided_slice %406 {offsets = [0, 8], sizes = [8, 8], strides = [1, 1]} : vector<8x32xf32> to vector<8x8xf32>
    %428 = vector.extract_strided_slice %409 {offsets = [0, 8], sizes = [8, 8], strides = [1, 1]} : vector<8x32xf32> to vector<8x8xf32>
    %cst_204 = arith.constant dense<0.000000e+00> : vector<8x8xf32>
    %429 = tpu.matmul %426, %427, %cst_204 {dimension_numbers = #tpu.dot_dimension_numbers<[1], [1], [0], [0], [0, 0, 1, 0], [], []>} : vector<8x8xf32>, vector<8x8xf32>, vector<8x8xf32> -> vector<8x8xf32>
    %cst_205 = arith.constant 0.353553385 : f32
    %430 = vector.broadcast %cst_205 : f32 to vector<8x8xf32>
    %431 = arith.mulf %429, %430 : vector<8x8xf32>
    %cst_206 = arith.constant dense<0xFF800000> : vector<8xf32>
    %432 = vector.multi_reduction <maximumf>, %431, %cst_206 [1] : vector<8x8xf32> to vector<8xf32>
    %433 = vector.shape_cast %432 : vector<8xf32> to vector<8x1xf32>
    %434 = vector.broadcast %433 : vector<8x1xf32> to vector<8x8xf32>
    %435 = arith.subf %431, %434 : vector<8x8xf32>
    %436 = math.exp %435 : vector<8x8xf32>
    %cst_207 = arith.constant dense<0.000000e+00> : vector<8xf32>
    %437 = vector.multi_reduction <add>, %436, %cst_207 [1] : vector<8x8xf32> to vector<8xf32>
    %438 = vector.shape_cast %437 : vector<8xf32> to vector<8x1xf32>
    %439 = vector.broadcast %438 : vector<8x1xf32> to vector<8x8xf32>
    %440 = arith.divf %436, %439 : vector<8x8xf32>
    %cst_208 = arith.constant dense<0.000000e+00> : vector<8x8xf32>
    %441 = tpu.matmul %440, %428, %cst_208 {dimension_numbers = #tpu.dot_dimension_numbers<[1], [0], [0], [1], [0, 0, 1, 1], [], []>} : vector<8x8xf32>, vector<8x8xf32>, vector<8x8xf32> -> vector<8x8xf32>
    %442 = vector.extract_strided_slice %403 {offsets = [0, 16], sizes = [8, 8], strides = [1, 1]} : vector<8x32xf32> to vector<8x8xf32>
    %443 = vector.extract_strided_slice %406 {offsets = [0, 16], sizes = [8, 8], strides = [1, 1]} : vector<8x32xf32> to vector<8x8xf32>
    %444 = vector.extract_strided_slice %409 {offsets = [0, 16], sizes = [8, 8], strides = [1, 1]} : vector<8x32xf32> to vector<8x8xf32>
    %cst_209 = arith.constant dense<0.000000e+00> : vector<8x8xf32>
    %445 = tpu.matmul %442, %443, %cst_209 {dimension_numbers = #tpu.dot_dimension_numbers<[1], [1], [0], [0], [0, 0, 1, 0], [], []>} : vector<8x8xf32>, vector<8x8xf32>, vector<8x8xf32> -> vector<8x8xf32>
    %cst_210 = arith.constant 0.353553385 : f32
    %446 = vector.broadcast %cst_210 : f32 to vector<8x8xf32>
    %447 = arith.mulf %445, %446 : vector<8x8xf32>
    %cst_211 = arith.constant dense<0xFF800000> : vector<8xf32>
    %448 = vector.multi_reduction <maximumf>, %447, %cst_211 [1] : vector<8x8xf32> to vector<8xf32>
    %449 = vector.shape_cast %448 : vector<8xf32> to vector<8x1xf32>
    %450 = vector.broadcast %449 : vector<8x1xf32> to vector<8x8xf32>
    %451 = arith.subf %447, %450 : vector<8x8xf32>
    %452 = math.exp %451 : vector<8x8xf32>
    %cst_212 = arith.constant dense<0.000000e+00> : vector<8xf32>
    %453 = vector.multi_reduction <add>, %452, %cst_212 [1] : vector<8x8xf32> to vector<8xf32>
    %454 = vector.shape_cast %453 : vector<8xf32> to vector<8x1xf32>
    %455 = vector.broadcast %454 : vector<8x1xf32> to vector<8x8xf32>
    %456 = arith.divf %452, %455 : vector<8x8xf32>
    %cst_213 = arith.constant dense<0.000000e+00> : vector<8x8xf32>
    %457 = tpu.matmul %456, %444, %cst_213 {dimension_numbers = #tpu.dot_dimension_numbers<[1], [0], [0], [1], [0, 0, 1, 1], [], []>} : vector<8x8xf32>, vector<8x8xf32>, vector<8x8xf32> -> vector<8x8xf32>
    %458 = vector.extract_strided_slice %403 {offsets = [0, 24], sizes = [8, 8], strides = [1, 1]} : vector<8x32xf32> to vector<8x8xf32>
    %459 = vector.extract_strided_slice %406 {offsets = [0, 24], sizes = [8, 8], strides = [1, 1]} : vector<8x32xf32> to vector<8x8xf32>
    %460 = vector.extract_strided_slice %409 {offsets = [0, 24], sizes = [8, 8], strides = [1, 1]} : vector<8x32xf32> to vector<8x8xf32>
    %cst_214 = arith.constant dense<0.000000e+00> : vector<8x8xf32>
    %461 = tpu.matmul %458, %459, %cst_214 {dimension_numbers = #tpu.dot_dimension_numbers<[1], [1], [0], [0], [0, 0, 1, 0], [], []>} : vector<8x8xf32>, vector<8x8xf32>, vector<8x8xf32> -> vector<8x8xf32>
    %cst_215 = arith.constant 0.353553385 : f32
    %462 = vector.broadcast %cst_215 : f32 to vector<8x8xf32>
    %463 = arith.mulf %461, %462 : vector<8x8xf32>
    %cst_216 = arith.constant dense<0xFF800000> : vector<8xf32>
    %464 = vector.multi_reduction <maximumf>, %463, %cst_216 [1] : vector<8x8xf32> to vector<8xf32>
    %465 = vector.shape_cast %464 : vector<8xf32> to vector<8x1xf32>
    %466 = vector.broadcast %465 : vector<8x1xf32> to vector<8x8xf32>
    %467 = arith.subf %463, %466 : vector<8x8xf32>
    %468 = math.exp %467 : vector<8x8xf32>
    %cst_217 = arith.constant dense<0.000000e+00> : vector<8xf32>
    %469 = vector.multi_reduction <add>, %468, %cst_217 [1] : vector<8x8xf32> to vector<8xf32>
    %470 = vector.shape_cast %469 : vector<8xf32> to vector<8x1xf32>
    %471 = vector.broadcast %470 : vector<8x1xf32> to vector<8x8xf32>
    %472 = arith.divf %468, %471 : vector<8x8xf32>
    %cst_218 = arith.constant dense<0.000000e+00> : vector<8x8xf32>
    %473 = tpu.matmul %472, %460, %cst_218 {dimension_numbers = #tpu.dot_dimension_numbers<[1], [0], [0], [1], [0, 0, 1, 1], [], []>} : vector<8x8xf32>, vector<8x8xf32>, vector<8x8xf32> -> vector<8x8xf32>
    %474 = tpu.concatenate %425, %441, %457, %473 in 1 : vector<8x8xf32>, vector<8x8xf32>, vector<8x8xf32>, vector<8x8xf32> -> vector<8x32xf32>
    %cst_219 = arith.constant dense<0.000000e+00> : vector<8x32xf32>
    %475 = tpu.matmul %474, %282, %cst_219 {dimension_numbers = #tpu.dot_dimension_numbers<[1], [0], [0], [1], [0, 0, 1, 1], [], []>} : vector<8x32xf32>, vector<32x32xf32>, vector<8x32xf32> -> vector<8x32xf32>
    %476 = vector.broadcast %284 : vector<1x32xf32> to vector<8x32xf32>
    %477 = arith.addf %475, %476 : vector<8x32xf32>
    %478 = arith.addf %400, %477 : vector<8x32xf32>
    %cst_220 = arith.constant dense<0.000000e+00> : vector<8xf32>
    %479 = vector.multi_reduction <add>, %478, %cst_220 [1] : vector<8x32xf32> to vector<8xf32>
    %480 = vector.shape_cast %479 : vector<8xf32> to vector<8x1xf32>
    %cst_221 = arith.constant 3.200000e+01 : f32
    %481 = vector.broadcast %cst_221 : f32 to vector<8x1xf32>
    %482 = arith.divf %480, %481 : vector<8x1xf32>
    %483 = vector.broadcast %482 : vector<8x1xf32> to vector<8x32xf32>
    %484 = arith.subf %478, %483 : vector<8x32xf32>
    %485 = arith.mulf %484, %484 : vector<8x32xf32>
    %cst_222 = arith.constant dense<0.000000e+00> : vector<8xf32>
    %486 = vector.multi_reduction <add>, %485, %cst_222 [1] : vector<8x32xf32> to vector<8xf32>
    %487 = vector.shape_cast %486 : vector<8xf32> to vector<8x1xf32>
    %cst_223 = arith.constant 3.200000e+01 : f32
    %488 = vector.broadcast %cst_223 : f32 to vector<8x1xf32>
    %489 = arith.divf %487, %488 : vector<8x1xf32>
    %490 = vector.broadcast %482 : vector<8x1xf32> to vector<8x32xf32>
    %491 = arith.subf %478, %490 : vector<8x32xf32>
    %cst_224 = arith.constant 9.99999974E-6 : f32
    %492 = vector.broadcast %cst_224 : f32 to vector<8x1xf32>
    %493 = arith.addf %489, %492 : vector<8x1xf32>
    %494 = math.rsqrt %493 : vector<8x1xf32>
    %495 = vector.broadcast %494 : vector<8x1xf32> to vector<8x32xf32>
    %496 = arith.mulf %491, %495 : vector<8x32xf32>
    %497 = vector.broadcast %286 : vector<1x32xf32> to vector<8x32xf32>
    %498 = arith.mulf %496, %497 : vector<8x32xf32>
    %499 = vector.broadcast %288 : vector<1x32xf32> to vector<8x32xf32>
    %500 = arith.addf %498, %499 : vector<8x32xf32>
    %cst_225 = arith.constant dense<0.000000e+00> : vector<8x64xf32>
    %501 = tpu.matmul %500, %290, %cst_225 {dimension_numbers = #tpu.dot_dimension_numbers<[1], [0], [0], [1], [0, 0, 1, 1], [], []>} : vector<8x32xf32>, vector<32x64xf32>, vector<8x64xf32> -> vector<8x64xf32>
    %502 = vector.broadcast %292 : vector<1x64xf32> to vector<8x64xf32>
    %503 = arith.addf %501, %502 : vector<8x64xf32>
    %cst_226 = arith.constant 0.000000e+00 : f32
    %504 = vector.broadcast %cst_226 : f32 to vector<8x64xf32>
    %505 = arith.maximumf %503, %504 : vector<8x64xf32>
    %cst_227 = arith.constant dense<0.000000e+00> : vector<8x32xf32>
    %506 = tpu.matmul %505, %294, %cst_227 {dimension_numbers = #tpu.dot_dimension_numbers<[1], [0], [0], [1], [0, 0, 1, 1], [], []>} : vector<8x64xf32>, vector<64x32xf32>, vector<8x32xf32> -> vector<8x32xf32>
    %507 = vector.broadcast %296 : vector<1x32xf32> to vector<8x32xf32>
    %508 = arith.addf %506, %507 : vector<8x32xf32>
    %509 = arith.addf %500, %508 : vector<8x32xf32>
    %cst_228 = arith.constant dense<0.000000e+00> : vector<8xf32>
    %510 = vector.multi_reduction <add>, %509, %cst_228 [1] : vector<8x32xf32> to vector<8xf32>
    %511 = vector.shape_cast %510 : vector<8xf32> to vector<8x1xf32>
    %cst_229 = arith.constant 3.200000e+01 : f32
    %512 = vector.broadcast %cst_229 : f32 to vector<8x1xf32>
    %513 = arith.divf %511, %512 : vector<8x1xf32>
    %514 = vector.broadcast %513 : vector<8x1xf32> to vector<8x32xf32>
    %515 = arith.subf %509, %514 : vector<8x32xf32>
    %516 = arith.mulf %515, %515 : vector<8x32xf32>
    %cst_230 = arith.constant dense<0.000000e+00> : vector<8xf32>
    %517 = vector.multi_reduction <add>, %516, %cst_230 [1] : vector<8x32xf32> to vector<8xf32>
    %518 = vector.shape_cast %517 : vector<8xf32> to vector<8x1xf32>
    %cst_231 = arith.constant 3.200000e+01 : f32
    %519 = vector.broadcast %cst_231 : f32 to vector<8x1xf32>
    %520 = arith.divf %518, %519 : vector<8x1xf32>
    %521 = vector.broadcast %513 : vector<8x1xf32> to vector<8x32xf32>
    %522 = arith.subf %509, %521 : vector<8x32xf32>
    %cst_232 = arith.constant 9.99999974E-6 : f32
    %523 = vector.broadcast %cst_232 : f32 to vector<8x1xf32>
    %524 = arith.addf %520, %523 : vector<8x1xf32>
    %525 = math.rsqrt %524 : vector<8x1xf32>
    %526 = vector.broadcast %525 : vector<8x1xf32> to vector<8x32xf32>
    %527 = arith.mulf %522, %526 : vector<8x32xf32>
    %528 = vector.broadcast %298 : vector<1x32xf32> to vector<8x32xf32>
    %529 = arith.mulf %527, %528 : vector<8x32xf32>
    %530 = vector.broadcast %300 : vector<1x32xf32> to vector<8x32xf32>
    %531 = arith.addf %529, %530 : vector<8x32xf32>
    %c0_233 = arith.constant 0 : index
    %c0_234 = arith.constant 0 : index
    %532 = vector.load %arg20[%c0_233, %c0_234] : memref<32x32xf32, #tpu.memory_space<vmem>>, vector<32x32xf32>
    %cst_235 = arith.constant dense<0.000000e+00> : vector<8x32xf32>
    %533 = tpu.matmul %531, %532, %cst_235 {dimension_numbers = #tpu.dot_dimension_numbers<[1], [0], [0], [1], [0, 0, 1, 1], [], []>} : vector<8x32xf32>, vector<32x32xf32>, vector<8x32xf32> -> vector<8x32xf32>
    %c0_236 = arith.constant 0 : index
    %c0_237 = arith.constant 0 : index
    %534 = vector.load %arg21[%c0_236, %c0_237] : memref<1x32xf32, #tpu.memory_space<vmem>>, vector<1x32xf32>
    %535 = vector.broadcast %534 : vector<1x32xf32> to vector<8x32xf32>
    %536 = arith.addf %533, %535 : vector<8x32xf32>
    %cst_238 = arith.constant dense<0xFF800000> : vector<8xf32>
    %537 = vector.multi_reduction <maximumf>, %536, %cst_238 [1] : vector<8x32xf32> to vector<8xf32>
    %538 = vector.shape_cast %537 : vector<8xf32> to vector<8x1xf32>
    %539 = vector.broadcast %538 : vector<8x1xf32> to vector<8x32xf32>
    %540 = arith.subf %536, %539 : vector<8x32xf32>
    %541 = math.exp %540 : vector<8x32xf32>
    %cst_239 = arith.constant dense<0.000000e+00> : vector<8xf32>
    %542 = vector.multi_reduction <add>, %541, %cst_239 [1] : vector<8x32xf32> to vector<8xf32>
    %543 = vector.shape_cast %542 : vector<8xf32> to vector<8x1xf32>
    %544 = vector.broadcast %543 : vector<8x1xf32> to vector<8x32xf32>
    %545 = arith.divf %541, %544 : vector<8x32xf32>
    %c0_240 = arith.constant 0 : index
    %c0_241 = arith.constant 0 : index
    %c0_242 = arith.constant 0 : index
    %546 = vector.load %arg22[%c0_240, %c0_241, %c0_242] : memref<1x8x32xf32, #tpu.memory_space<vmem>>, vector<1x8x32xf32>
    %547 = vector.shape_cast %546 : vector<1x8x32xf32> to vector<8x32xf32>
    %548 = vector.shape_cast %545 : vector<8x32xf32> to vector<1x8x32xf32>
    tpu.vector_store %arg22[%c0_240, %c0_241, %c0_242], %548 {strides = array<i32>} : memref<1x8x32xf32, #tpu.memory_space<vmem>>, vector<1x8x32xf32>,
    return
  }
  func.func @transform_0(%arg0: i32) -> (i32, i32) {
    %c0_i32 = arith.constant 0 : i32
    %c0_i32_0 = arith.constant 0 : i32
    %c0_i32_1 = arith.constant 0 : i32
    return %c0_i32, %c0_i32_0 : i32, i32
  }
  func.func @transform_1(%arg0: i32) -> (i32, i32, i32) {
    %c0_i32 = arith.constant 0 : i32
    %c0_i32_0 = arith.constant 0 : i32
    %c0_i32_1 = arith.constant 0 : i32
    return %arg0, %c0_i32, %c0_i32_0 : i32, i32, i32
  }
  func.func @transform_2(%arg0: i32) -> (i32, i32, i32) {
    %c0_i32 = arith.constant 0 : i32
    %c0_i32_0 = arith.constant 0 : i32
    %c0_i32_1 = arith.constant 0 : i32
    return %arg0, %c0_i32, %c0_i32_0 : i32, i32, i32
  }
  func.func @transform_3(%arg0: i32) -> (i32, i32, i32) {
    %c0_i32 = arith.constant 0 : i32
    %c0_i32_0 = arith.constant 0 : i32
    %c0_i32_1 = arith.constant 0 : i32
    %c0_i32_2 = arith.constant 0 : i32
    return %c0_i32, %c0_i32_0, %c0_i32_1 : i32, i32, i32
  }
  func.func @transform_4(%arg0: i32) -> (i32, i32, i32) {
    %c0_i32 = arith.constant 0 : i32
    %c0_i32_0 = arith.constant 0 : i32
    %c0_i32_1 = arith.constant 0 : i32
    %c0_i32_2 = arith.constant 0 : i32
    return %c0_i32, %c0_i32_0, %c0_i32_1 : i32, i32, i32
  }
  func.func @transform_5(%arg0: i32) -> (i32, i32, i32) {
    %c0_i32 = arith.constant 0 : i32
    %c0_i32_0 = arith.constant 0 : i32
    %c0_i32_1 = arith.constant 0 : i32
    %c0_i32_2 = arith.constant 0 : i32
    return %c0_i32, %c0_i32_0, %c0_i32_1 : i32, i32, i32
  }
  func.func @transform_6(%arg0: i32) -> (i32, i32, i32) {
    %c0_i32 = arith.constant 0 : i32
    %c0_i32_0 = arith.constant 0 : i32
    %c0_i32_1 = arith.constant 0 : i32
    %c0_i32_2 = arith.constant 0 : i32
    return %c0_i32, %c0_i32_0, %c0_i32_1 : i32, i32, i32
  }
  func.func @transform_7(%arg0: i32) -> (i32, i32, i32) {
    %c0_i32 = arith.constant 0 : i32
    %c0_i32_0 = arith.constant 0 : i32
    %c0_i32_1 = arith.constant 0 : i32
    %c0_i32_2 = arith.constant 0 : i32
    return %c0_i32, %c0_i32_0, %c0_i32_1 : i32, i32, i32
  }
  func.func @transform_8(%arg0: i32) -> (i32, i32, i32) {
    %c0_i32 = arith.constant 0 : i32
    %c0_i32_0 = arith.constant 0 : i32
    %c0_i32_1 = arith.constant 0 : i32
    %c0_i32_2 = arith.constant 0 : i32
    return %c0_i32, %c0_i32_0, %c0_i32_1 : i32, i32, i32
  }
  func.func @transform_9(%arg0: i32) -> (i32, i32, i32) {
    %c0_i32 = arith.constant 0 : i32
    %c0_i32_0 = arith.constant 0 : i32
    %c0_i32_1 = arith.constant 0 : i32
    %c0_i32_2 = arith.constant 0 : i32
    return %c0_i32, %c0_i32_0, %c0_i32_1 : i32, i32, i32
  }
  func.func @transform_10(%arg0: i32) -> (i32, i32, i32) {
    %c0_i32 = arith.constant 0 : i32
    %c0_i32_0 = arith.constant 0 : i32
    %c0_i32_1 = arith.constant 0 : i32
    %c0_i32_2 = arith.constant 0 : i32
    return %c0_i32, %c0_i32_0, %c0_i32_1 : i32, i32, i32
  }
  func.func @transform_11(%arg0: i32) -> (i32, i32, i32) {
    %c0_i32 = arith.constant 0 : i32
    %c0_i32_0 = arith.constant 0 : i32
    %c0_i32_1 = arith.constant 0 : i32
    %c0_i32_2 = arith.constant 0 : i32
    return %c0_i32, %c0_i32_0, %c0_i32_1 : i32, i32, i32
  }
  func.func @transform_12(%arg0: i32) -> (i32, i32, i32) {
    %c0_i32 = arith.constant 0 : i32
    %c0_i32_0 = arith.constant 0 : i32
    %c0_i32_1 = arith.constant 0 : i32
    %c0_i32_2 = arith.constant 0 : i32
    return %c0_i32, %c0_i32_0, %c0_i32_1 : i32, i32, i32
  }
  func.func @transform_13(%arg0: i32) -> (i32, i32, i32) {
    %c0_i32 = arith.constant 0 : i32
    %c0_i32_0 = arith.constant 0 : i32
    %c0_i32_1 = arith.constant 0 : i32
    %c0_i32_2 = arith.constant 0 : i32
    return %c0_i32, %c0_i32_0, %c0_i32_1 : i32, i32, i32
  }
  func.func @transform_14(%arg0: i32) -> (i32, i32, i32) {
    %c0_i32 = arith.constant 0 : i32
    %c0_i32_0 = arith.constant 0 : i32
    %c0_i32_1 = arith.constant 0 : i32
    %c0_i32_2 = arith.constant 0 : i32
    return %c0_i32, %c0_i32_0, %c0_i32_1 : i32, i32, i32
  }
  func.func @transform_15(%arg0: i32) -> (i32, i32, i32) {
    %c0_i32 = arith.constant 0 : i32
    %c0_i32_0 = arith.constant 0 : i32
    %c0_i32_1 = arith.constant 0 : i32
    %c0_i32_2 = arith.constant 0 : i32
    return %c0_i32, %c0_i32_0, %c0_i32_1 : i32, i32, i32
  }
  func.func @transform_16(%arg0: i32) -> (i32, i32, i32) {
    %c0_i32 = arith.constant 0 : i32
    %c0_i32_0 = arith.constant 0 : i32
    %c0_i32_1 = arith.constant 0 : i32
    %c0_i32_2 = arith.constant 0 : i32
    return %c0_i32, %c0_i32_0, %c0_i32_1 : i32, i32, i32
  }
  func.func @transform_17(%arg0: i32) -> (i32, i32, i32) {
    %c0_i32 = arith.constant 0 : i32
    %c0_i32_0 = arith.constant 0 : i32
    %c0_i32_1 = arith.constant 0 : i32
    %c0_i32_2 = arith.constant 0 : i32
    return %c0_i32, %c0_i32_0, %c0_i32_1 : i32, i32, i32
  }
  func.func @transform_18(%arg0: i32) -> (i32, i32, i32) {
    %c0_i32 = arith.constant 0 : i32
    %c0_i32_0 = arith.constant 0 : i32
    %c0_i32_1 = arith.constant 0 : i32
    %c0_i32_2 = arith.constant 0 : i32
    return %c0_i32, %c0_i32_0, %c0_i32_1 : i32, i32, i32
  }
  func.func @transform_19(%arg0: i32) -> (i32, i32) {
    %c0_i32 = arith.constant 0 : i32
    %c0_i32_0 = arith.constant 0 : i32
    %c0_i32_1 = arith.constant 0 : i32
    return %c0_i32, %c0_i32_0 : i32, i32
  }
  func.func @transform_20(%arg0: i32) -> (i32, i32) {
    %c0_i32 = arith.constant 0 : i32
    %c0_i32_0 = arith.constant 0 : i32
    %c0_i32_1 = arith.constant 0 : i32
    return %c0_i32, %c0_i32_0 : i32, i32
  }
  func.func @transform_21(%arg0: i32) -> (i32, i32, i32) {
    %c0_i32 = arith.constant 0 : i32
    %c0_i32_0 = arith.constant 0 : i32
    %c0_i32_1 = arith.constant 0 : i32
    return %arg0, %c0_i32, %c0_i32_0 : i32, i32, i32
  }
}

</mosaic_0001>

<bundles_post_ra>
// kernel: tpu_custom_call.1
= control target key start
LH: loop header
LB: loop body
LE: loop exit
PB: predicated region body
PF: predicated region fallthrough
CT: control target
= control target key end

     0   :  { %s4725_s0 = inlined_call_operand.hbm [shape: f32[8,32], index: 0, kind: input, shape index: {}]   ;;  %s4726_s1 = inlined_call_operand.hbm [shape: f32[2,8,32], index: 1, kind: input, shape index: {}]   ;;  %s4727_s2 = inlined_call_operand.hbm [shape: f32[2,8,32], index: 2, kind: input, shape index: {}]   ;;  %s4728_s3 = inlined_call_operand.vmem [shape: f32[2,32,32], index: 3, kind: input, shape index: {}]   ;;  %s4729_s4 = inlined_call_operand.vmem [shape: f32[2,1,32], index: 4, kind: input, shape index: {}]   ;;  %s4730_s5 = inlined_call_operand.vmem [shape: f32[2,32,32], index: 5, kind: input, shape index: {}]   ;;  %s4731_s6 = inlined_call_operand.vmem [shape: f32[2,1,32], index: 6, kind: input, shape index: {}]   ;;  %s4732_s7 = inlined_call_operand.vmem [shape: f32[2,32,32], index: 7, kind: input, shape index: {}]   ;;  %s4733_s8 = inlined_call_operand.hbm [shape: f32[2,1,32], index: 8, kind: input, shape index: {}]   ;;  %s4734_s9 = inlined_call_operand.hbm [shape: f32[2,32,32], index: 9, kind: input, shape index: {}]   ;;  %s4735_s10 = inlined_call_operand.vmem [shape: f32[2,1,32], index: 10, kind: input, shape index: {}]   ;;  %s4736_s11 = inlined_call_operand.vmem [shape: f32[2,1,32], index: 11, kind: input, shape index: {}]   ;;  %s4737_s12 = inlined_call_operand.vmem [shape: f32[2,1,32], index: 12, kind: input, shape index: {}]   ;;  %s4738_s13 = inlined_call_operand.hbm [shape: f32[2,32,64], index: 13, kind: input, shape index: {}]   ;;  %s4739_s14 = inlined_call_operand.hbm [shape: f32[2,1,64], index: 14, kind: input, shape index: {}]   ;;  %s4740_s15 = inlined_call_operand.vmem [shape: f32[2,64,32], index: 15, kind: input, shape index: {}]   ;;  %s4741_s16 = inlined_call_operand.vmem [shape: f32[2,1,32], index: 16, kind: input, shape index: {}]   ;;  %s4742_s17 = inlined_call_operand.vmem [shape: f32[2,1,32], index: 17, kind: input, shape index: {}]   ;;  %s4743_s18 = inlined_call_operand.vmem [shape: f32[2,1,32], index: 18, kind: input, shape index: {}]   ;;  %s4744_s19 = inlined_call_operand.hbm [shape: f32[32,32], index: 19, kind: input, shape index: {}]   ;;  %s4745_s20 = inlined_call_operand.vmem [shape: f32[1,32], index: 20, kind: input, shape index: {}]   ;;  %s4746_s21 = inlined_call_operand.hbm [shape: f32[2,8,32], index: 21, kind: output, shape index: {}]  }
   0x1   :  { %4774 = sst [smem:[#allocation30_spill]] %s4725_s0 }
   0x2   :  { %4775 = sst [smem:[#allocation31_spill]] %s4726_s1 }
   0x3   :  { %4776 = sst [smem:[#allocation32_spill]] %s4727_s2 }
   0x4   :  { %4777 = sst [smem:[#allocation33_spill]] %s4728_s3 }
   0x5   :  { %4778 = sst [smem:[#allocation34_spill]] %s4729_s4 }
   0x6   :  { %4779 = sst [smem:[#allocation35_spill]] %s4730_s5 }
   0x7   :  { %4780 = sst [smem:[#allocation36_spill]] %s4733_s8 }
   0x8   :  { %4781 = sst [smem:[#allocation37_spill]] %s4734_s9 }
   0x9   :  { %4782 = sst [smem:[#allocation38_spill]] %s4737_s12 }
   0xa   :  { %4783 = sst [smem:[#allocation39_spill]] %s4738_s13 }
   0xb   :  { %4784 = sst [smem:[#allocation40_spill]] %s4739_s14 }
   0xc   :  { %4785 = sst [smem:[#allocation41_spill]] %s4740_s15 }
   0xd   :  { %4786 = sst [smem:[#allocation42_spill]] %s4741_s16 }
   0xe   :  { %4787 = sst [smem:[#allocation43_spill]] %s4742_s17 }
   0xf   :  { %4788 = sst [smem:[#allocation44_spill]] %s4743_s18 }
  0x10   :  { %4789 = sst [smem:[#allocation45_spill]] %s4745_s20 }
  0x11   :  { %4790 = sst [smem:[#allocation46_spill]] %s4746_s21 }
  0x12   :  { %26 = vsyncpa [#allocation3], 0 }
  0x13   :  { %27 = vsyncpa [#allocation6], 0 }
  0x14   :  { %29 = vsyncpa [#allocation6 + $0x1], 0 }
  0x15   :  { %30 = vsyncpa [#allocation9], 0 }
  0x16   :  { %31 = vsyncpa [#allocation12], 0 }
  0x17   :  { %32 = vsyncpa [#allocation15], 0 }
  0x18   :  { %33 = vsyncpa [#allocation4], 0 }
  0x19   :  { %35 = vsyncpa [#allocation4 + $0x1], 0  ;;  %s3898_s2 = smov 0   ;;  %s3900_s25 = smov 0  }
  0x1a   :  { %s3902_s26 = smov 0   ;;  %s3904_s27 = smov 0  }
  0x1b LB: > { %4791 = sst [smem:[#allocation23_spill]] %s3757_s2  ;;  %s3922_s0 = sadd.s32 4294967295, %s3769_s27   ;;  %s3769_s27 = sphi %s3904_s27, %s4840_s27   ;;  %s3765_s26 = sphi %s3902_s26, %s4842_s26   ;;  %s3761_s25 = sphi %s3900_s25, %s4844_s25   ;;  %s3757_s2 = sphi %s3898_s2, %s4843_s2  }
  0x1c   : > { %4792 = sst [smem:[#allocation24_spill]] %s3765_s26  ;;  %p3098_p0 = scmp.ge.s32.totalorder %s3769_s27, 1 }
  0x1d   : > { %4793 = sst [smem:[#allocation25_spill]] %s3769_s27  ;;  %p4772_p1 = scmp.eq.s32.totalorder %s3922_s0, 0 }
  0x1e   : > { %s4794_s8 = sld [smem:[#allocation36_spill]]  ;;  %p523_p2 = scmp.lt.s32.totalorder %s3769_s27, 3 }
  0x1f   : > { %s3771_s30 = smov [#allocation8]   ;;  %s4797_s13 = sld [smem:[#allocation39_spill]] }
  0x20   : > { %p3927_p3 = pnand %p3098_p0, %p523_p2  ;;  %s563_s5 = sshll.u32 %s3771_s30, 4  ;;  %s564_s5 = int_to_ptr.vmem [resolvable:$true] %s563_s5 }
  0x21   : > { %s4753_s3 = smov 16   ;;  %s4754_s28 = smov 1  }
  0x22   : > { %p3251_p4 = pneg %p3927_p3  ;;  %s3774_s30 = smov [#allocation11]  }
  0x23   : > { %s600_s23 = sshll.u32 %s3774_s30, 4  ;;  %s4755_s1 = smov 128   ;;  %s601_s23 = int_to_ptr.vmem [resolvable:$true] %s600_s23 }
  0x24   : > { %s561_s29 = sshll.u32 %s4794_s8, 4  ;;  %p3936_p6 = pnand %p3251_p4, %p4772_p1  ;;  %s562_s29 = int_to_ptr.hbm [resolvable:$true] %s561_s29 }
  0x25   : > { %s598_s24 = sshll.u32 %s4797_s13, 4  ;;  %s4757_s8 = smov 8   ;;  %s599_s24 = int_to_ptr.hbm [resolvable:$true] %s598_s24 }
  0x26   : > { %3257 = dma.hbm_to_vmem [thread:$0]  (!%p3936_p6), %s562_s29, 32, %s564_s5, [#allocation9], %s4753_s3, %s4753_s3, %s4754_s28  }
  0x27   : > { %3263 = dma.hbm_to_vmem [thread:$0]  (!%p3936_p6), %s599_s24, 1024, %s601_s23, [#allocation12], %s4755_s1, %s4755_s1, %s4757_s8  }
  0x28   : > { %s3097_s13 = sadd.s32 4294967294, %s3769_s27   ;;  %s3955_s21 = sadd.s32 1, %s3769_s27  }
  0x29   : > { %4798 = sst [smem:[#allocation26_spill]] %s3955_s21  ;;  %s66_s29 = ssub.s32 %s3769_s27, %s3955_s21 }
  0x2a   : > { %s69_s5 = sadd.s32 1, %s3765_s26  ;;  %p67_p7 = scmp.eq.s32.totalorder %s66_s29, 0 }
  0x2b   : > { %p76_p8 = scmp.ne.s32.totalorder %s3765_s26, %s3761_s25  ;;  %p77_p9 = scmp.eq.s32.totalorder %s3769_s27, 0 }
  0x2c   : > { %p82_p10 = scmp.ne.s32.totalorder %s3761_s25, %s3757_s2  ;;  %p510_p13 = scmp.eq.s32.totalorder %s3922_s0, 1 }
  0x2d   : > { %s3966_s30 = scalar_select %p67_p7, %s3765_s26, %s69_s5  }
  0x2e   : > { %p3968_p11 = por %p77_p9, %p76_p8  ;;  %p3974_p12 = por %p4772_p1, %p82_p10 }
  0x2f   : > { %4799 = sst [smem:[#allocation27_spill]] %s3966_s30  ;;  %p516_p0 = scmp.eq.s32.totalorder %s3097_s13, 1 }
  0x30   : > { %p3287_p2 = scmp.lt.s32.totalorder %s3769_s27, 2  ;;  %s657_s23 = sand.u32 1, %s3769_s27  }
  0x31   : > { %p3981_p4 = por %p510_p13, %p76_p8  ;;  %p3985_p7 = por %p516_p0, %p82_p10 }
  0x32   : > { %s659_s28 = sand.u32 1, %s3765_s26   ;;  %s3107_s8 = sshll.u32 %s3769_s27, 3 }
  0x33   : > { %s4802_s29 = scalar_select %p3981_p4, 1, 0 }
  0x34   : > { %s4804_s5 = scalar_select %p3985_p7, 1, 0 }
  0x35   : > { %4803 = sst [smem:[#allocation28_spill]] %s4802_s29  ;;  %s3990_s1 = sshll.u32 %s659_s28, 3 }
  0x36   : > { %4805 = sst [smem:[#allocation29_spill]] %s4804_s5  ;;  %s661_s17 = scalar_lea.vmem [#allocation5], %s3990_s1 }
  0x37   : > { %s4806_s2 = sld [smem:[#allocation31_spill]]  ;;  %s669_s16 = sshll.u32 %s661_s17, 4  ;;  %s670_s16 = int_to_ptr.vmem [resolvable:$true] %s669_s16 }
  0x38   : > { %p4001_p8 = pnand %p3287_p2, %p3968_p11  ;;  %s4809_s5 = sld [smem:[#allocation32_spill]] }
  0x39   : > { %s4013_s17 = scalar_lea.sflag [#allocation6], %s657_s23 }
  0x3a   : > { %p3511_p10 = pneg %p4001_p8 }
  0x3d   : > { %s4807_s20 = smov %s4806_s2  ;;  %s665_s18 = scalar_lea.hbm %s4806_s2, %s3107_s8 }
  0x3e   : > { %s667_s13 = sshll.u32 %s665_s18, 4  ;;  %s4008_s15 = scalar_lea.hbm %s4809_s5, %s3107_s8  ;;  %s668_s13 = int_to_ptr.hbm [resolvable:$true] %s667_s13 }
  0x3f   : > { %s4810_s18 = sld [smem:[#allocation30_spill]]  ;;  %s3507_s3 = sshra.s32 %s668_s13, 4  ;;  %s3508_s3 = int_to_ptr.hbm [resolvable:$true] %s3507_s3 }
  0x40   : > { %s3509_s27 = scalar_lea.hbm %s3508_s3, 8  ;;  %s3514_s28 = scalar_lea.hbm %s4807_s20, 16 }
  0x41   : > { %p3510_p9 = scmp.ne.s32.totalorder %s3508_s3, %s3509_s27  ;;  %p3515_p0 = scmp.lt.s32.totalorder %s3508_s3, %s4807_s20 }
  0x42   : > { %p3516_p2 = scmp.lt.s32.totalorder %s3514_s28, %s3509_s27 }
  0x43   : > { %p3512_p11 = pnand %p3511_p10, %p3510_p9 }
  0x44   : > { %p3517_p5 = por %p3516_p2, %p3515_p0 }
  0x45   : > { %s535_s30 = sshll.u32 %s4810_s18, 4  ;;  %p3513_p13 = pneg %p3512_p11  ;;  %s536_s30 = int_to_ptr.hbm [resolvable:$true] %s535_s30 }
  0x47   : > { %p3518_p1 = pnand %p3517_p5, %p3513_p13 }
  0x49   : > { %3521 = shalt.err (!%p3518_p1)
}
  0x4a   : > { %3273 = dma.hbm_to_vmem [thread:$0]  (!%p4001_p8), %s668_s13, 128, %s670_s16, %s4013_s17  }
  0x4b   : > { %s4811_s9 = sld [smem:[#allocation37_spill]]  ;;  %s3777_s26 = smov [#allocation2]  }
  0x4c   : > { %s537_s8 = sshll.u32 %s3777_s26, 4  ;;  %s3778_s12 = smov [#allocation10]   ;;  %s538_s8 = int_to_ptr.vmem [resolvable:$true] %s537_s8 }
  0x4d   : > { %3254 = dma.hbm_to_vmem [thread:$0]  (!%p3936_p6), %s536_s30, 128, %s538_s8, [#allocation3]  }
  0x4e   : > { %s577_s27 = sshll.u32 %s3778_s12, 4  ;;  %s4812_s14 = sld [smem:[#allocation40_spill]]  ;;  %s578_s27 = int_to_ptr.vmem [resolvable:$true] %s577_s27 }
  0x4f   : > { %s4813_s16 = smov 8   ;;  %s4814_s13 = smov 128  }
  0x50   : > { %s638_s26 = sshll.u32 %s4744_s19, 4  ;;  %s3779_s30 = smov [#allocation13]   ;;  %s639_s26 = int_to_ptr.hbm [resolvable:$true] %s638_s26 }
  0x51   : > { %s575_s18 = sshll.u32 %s4811_s9, 4  ;;  %s614_s8 = sshll.u32 %s3779_s30, 4  ;;  %s576_s18 = int_to_ptr.hbm [resolvable:$true] %s575_s18  ;;  %s615_s8 = int_to_ptr.vmem [resolvable:$true] %s614_s8 }
  0x52   : > { %3260 = dma.hbm_to_vmem [thread:$0]  (!%p3936_p6), %s576_s18, 1024, %s578_s27, [#allocation9], %s4814_s13, %s4814_s13, %s4813_s16  }
  0x53   : > { %s4815_s12 = smov 1   ;;  %s4816_s3 = smov 16  }
  0x54   : > { %s612_s21 = sshll.u32 %s4812_s14, 4  ;;  %s3780_s28 = smov [#allocation14]   ;;  %s613_s21 = int_to_ptr.hbm [resolvable:$true] %s612_s21 }
  0x55   : > { %3266 = dma.hbm_to_vmem [thread:$0]  (!%p3936_p6), %s613_s21, 32, %s615_s8, [#allocation12], %s4816_s3, %s4816_s3, %s4815_s12  }
  0x56   : > { %s640_s9 = sshll.u32 %s3780_s28, 4  ;;  %s686_s14 = sshll.u32 %s4008_s15, 4  ;;  %s641_s9 = int_to_ptr.vmem [resolvable:$true] %s640_s9  ;;  %s687_s14 = int_to_ptr.hbm [resolvable:$true] %s686_s14 }
  0x57   : > { %3269 = dma.hbm_to_vmem [thread:$0]  (!%p3936_p6), %s639_s26, 512, %s641_s9, [#allocation15], %s4814_s13, %s4814_s13, %s4813_s16  }
  0x58   : > { %s680_s18 = scalar_lea.vmem [#allocation7], %s3990_s1  ;;  %s3657_s23 = sshra.s32 %s687_s14, 4  ;;  %s3658_s23 = int_to_ptr.hbm [resolvable:$true] %s3657_s23 }
  0x59   : > { %s688_s27 = sshll.u32 %s680_s18, 4  ;;  %s3659_s2 = scalar_lea.hbm %s3658_s23, 8  ;;  %s689_s27 = int_to_ptr.vmem [resolvable:$true] %s688_s27 }
  0x5a   : > { %p3660_p1 = scmp.ne.s32.totalorder %s3658_s23, %s3659_s2  ;;  %s3664_s30 = scalar_lea.hbm %s4809_s5, 16 }
  0x5b   : > { %p3665_p11 = scmp.lt.s32.totalorder %s3658_s23, %s4809_s5  ;;  %p3666_p6 = scmp.lt.s32.totalorder %s3664_s30, %s3659_s2 }
  0x5c   : > { %p3662_p5 = pnand %p3660_p1, %p3511_p10 }
  0x5d   : > { %p3667_p13 = por %p3666_p6, %p3665_p11 }
  0x5e   : > { %p3663_p9 = pneg %p3662_p5 }
  0x60   : > { %p3668_p0 = pnand %p3667_p13, %p3663_p9 }
  0x62   : > { %3671 = shalt.err (!%p3668_p0)
}
  0x63   : > { %3276 = dma.hbm_to_vmem [thread:$0]  (!%p4001_p8), %s687_s14, 128, %s689_s27, %s4013_s17  }
  0x64   : > { %697 = sbr.rel (%p3927_p3) target bundleno = 6809 (0x1a99), region = 104  ;;  %p4817_p10 = scmp.eq.s32.totalorder (!%p3927_p3), %s3922_s0, 0 }
  0x69   : > { %3732 = dma.done.wait (%p4817_p10), [#allocation3], 128   ;;  %p4818_p2 = pmov %p4817_p10 }
  0x6a   : > { %s704_s9 = sand.u32 1, %s3922_s0   ;;  %s706_s1 = sand.u32 1, %s3761_s25  }
  0x6b   : > { %3734 = vsyncadd (%p4818_p2), [#allocation3], 4294967168  ;;  %s4079_s16 = sshll.u32 %s706_s1, 3  ;;  %s705_s14 = scalar_lea.sflag [#allocation6], %s704_s9 }
  0x6c   : > { %s708_s29 = scalar_lea.vmem [#allocation5], %s4079_s16 }
  0x6d   : > { %3736 = dma.done.wait (%p3974_p12), %s705_s14, 256  }
  0x6e   : > { %3738 = vsyncadd (%p3974_p12), %s705_s14, 4294967040  ;;  %s718_s4 = scalar_lea.vmem [#allocation7], %s4079_s16  ;;  %p4819_p3 = pmov %p4818_p2 }
  0x6f   : > { %p4820_p8 = pmov %p4818_p2 }
  0x70   : > { %3740 = dma.done.wait (%p4819_p3), [#allocation9], 1056  }
  0x71   : > { %3742 = vsyncadd (%p4820_p8), [#allocation9], 4294966240  ;;  %p4821_p1 = pmov %p4818_p2 }
  0x73   : > { %3744 = dma.done.wait (%p4821_p1), [#allocation12], 1056   ;;  %p4822_p5 = pmov %p4821_p1 }
  0x74   : > { %p4823_p9 = pmov %p4821_p1 }
  0x75   : > { %3746 = vsyncadd (%p4822_p5), [#allocation12], 4294966240 }
  0x76   : > { %3748 = dma.done.wait (%p4823_p9), [#allocation15], 512   ;;  %p4824_p11 = pmov %p4821_p1 }
  0x77   : > { %s4825_s13 = sld [smem:[#allocation35_spill]]  ;;  %v808_v6 = vld [vmem:[%s708_s29] sm:$0xff]  ;;  %v809_v7 = vld [vmem:[#allocation2] sm:$0xff]  ;;  %vm853_vm0 = vcmask 261120   ;;  %vm923_vm1 = vcmask 64512   ;;  %s3781_s3 = smov 104  }
  0x78   : > { %3750 = vsyncadd (%p4824_p11), [#allocation15], 4294966784  ;;  %s4826_s18 = sld [smem:[#allocation33_spill]]  ;;  %v4133_v10 = vadd.f32 %v809_v7, %v808_v6  ;;  %v4144_v11 = vld [vmem:[%s4731_s6] ss:$0 sm:$0xff]  ;;  %s3782_s28 = smov 120  }
  0x79   : > { %s4827_s12 = sld [smem:[#allocation34_spill]]  ;;  %s3783_s27 = smov 112   ;;  %v4164_v17 = vld [vmem:[%s4732_s7 + $0x18] sm:$0xff]  ;;  %v4169_v18 = vld [vmem:[%s4732_s7 + $0x10] sm:$0xff]  ;;  %v4175_v19 = vld [vmem:[%s4732_s7 + $0x8] sm:$0xff] }
  0x7a   : > { %915 = vmatpush.msra.mxu2 %v4164_v17  ;;  %v4181_v20 = vld [vmem:[%s4732_s7] sm:$0xff]  ;;  %v4194_v30 = vld [vmem:[#allocation8] ss:$0 sm:$0xff]  ;;  %s3784_s14 = smov 8   ;;  %s3785_s29 = smov 16  }
  0x7b   : > { %s3786_s24 = smov 24   ;;  %s4828_s15 = sld [smem:[#allocation38_spill]] }
  0x7c   : > { %916 = vmatpush.msra.mxu2 %v4169_v18  ;;  %s4829_s8 = sld [smem:[#allocation41_spill]] }
  0x7d   : > { %v820_v0 = vld [vmem:[%s4825_s13 + $0x18] sm:$0xff]  ;;  %v819_v1 = vld [vmem:[%s4825_s13 + $0x10] sm:$0xff]  ;;  %v818_v3 = vld [vmem:[%s4825_s13 + $0x8] sm:$0xff]  ;;  %s4830_s30 = sld [smem:[#allocation42_spill]] }
  0x7e   : > { %v4108_v2 = vld [vmem:[%s4826_s18 + $0x18] sm:$0xff]  ;;  %892 = vmatpush.msra.mxu1 %v820_v0  ;;  %v4117_v4 = vld [vmem:[%s4826_s18 + $0x10] sm:$0xff]  ;;  %v4122_v5 = vld [vmem:[%s4826_s18 + $0x8] sm:$0xff]  ;;  %917 = vmatpush.msra.mxu2 %v4175_v19  ;;  %s4831_s17 = sld [smem:[#allocation43_spill]] }
  0x7f   : > { %869 = vmatpush.msra.mxu0 %v4108_v2  ;;  %v817_v8 = vld [vmem:[%s4825_s13] sm:$0xff]  ;;  %s4832_s23 = sld [smem:[#allocation44_spill]] }
  0x80   : > { %893 = vmatpush.msra.mxu1 %v819_v1  ;;  %v4131_v9 = vld [vmem:[%s4826_s18] sm:$0xff]  ;;  %918 = vmatpush.msra.mxu2 %v4181_v20 }
  0x81   : > { %870 = vmatpush.msra.mxu0 %v4117_v4  ;;  %v4149_v12 = vld [vmem:[%s4827_s12] ss:$0 sm:$0xff]  ;;  %3122 = vmatmul.msk.f32.vlgmr.msra.gmra.mxu2 %vm853_vm0, %v4133_v10 }
  0x82   : > { %894 = vmatpush.msra.mxu1 %v818_v3 }
  0x83   : > { %871 = vmatpush.msra.mxu0 %v4122_v5 }
  0x84   : > { %895 = vmatpush.msra.mxu1 %v817_v8 }
  0x85   : > { %872 = vmatpush.msra.mxu0 %v4131_v9  ;;  %3121 = vmatmul.msk.f32.vlgmr.msra.gmra.mxu1 %vm853_vm0, %v4133_v10 }
  0x86   : > { %3120 = vmatmul.msk.f32.vlgmr.msra.gmra.mxu0 %vm853_vm0, %v4133_v10 }
 0x102   : > { %v897_v13 = vpop.f32.mrf.mxu1 }
 0x103   : > { %v874_v14 = vpop.f32.mrf.mxu0  ;;  %v898_v15 = vadd.f32 %v4144_v11, %v897_v13 }
 0x104   : > { %v875_v16 = vadd.f32 %v4149_v12, %v874_v14  ;;  %v920_v31 = vpop.f32.mrf.mxu2 }
 0x105   : > { %1159 = vrot.lane.b32.xlu2 %v898_v15, %s3781_s3  ;;  %1000 = vrot.lane.b32.xlu1 %v898_v15, %s3782_s28  ;;  %v921_v32 = vadd.f32 %v4194_v30, %v920_v31 }
 0x106   : > { %1080 = vrot.lane.b32.xlu0 %v898_v15, %s3783_s27  ;;  %3123 = vmatpush.xpose.msk.msrb.mxu1 %vm923_vm1, %v898_v15 }
 0x107   : > { %993 = vmatpush.msra.mxu3 %v921_v32 }
 0x109   : > { %3124 = vmatmul.msk.f32.vlgmr.msrb.gmra.mxu1 %vm923_vm1, %v875_v16 }
 0x10d   : > { %1157 = vrot.lane.b32.xlu2 %v875_v16, %s3781_s3  ;;  %998 = vrot.lane.b32.xlu1 %v875_v16, %s3782_s28 }
 0x10e   : > { %1078 = vrot.lane.b32.xlu0 %v875_v16, %s3783_s27 }
 0x15f   : > { %v1160_v22 = vpop.permute.xlu2 %1159 }
 0x167   : > { %v1158_v27 = vpop.permute.xlu2 %1157 }
 0x177   : > { %v1001_v21 = vpop.permute.xlu1 %1000 }
 0x178   : > { %v1081_v23 = vpop.permute.xlu0 %1080  ;;  %3126 = vmatpush.xpose.msk.msrb.mxu0 %vm923_vm1, %v1001_v21 }
 0x179   : > { %3129 = vmatpush.xpose.msk.msrb.mxu2 %vm923_vm1, %v1081_v23 }
 0x17c   : > { %3132 = vmatpush.xpose.msk.msra.mxu0 %vm923_vm1, %v1160_v22 }
 0x17f   : > { %v999_v24 = vpop.permute.xlu1 %998 }
 0x180   : > { %v1079_v25 = vpop.permute.xlu0 %1078  ;;  %3127 = vmatmul.msk.f32.vlgmr.msrb.gmra.mxu0 %vm923_vm1, %v999_v24 }
 0x181   : > { %3130 = vmatmul.msk.f32.vlgmr.msrb.gmra.mxu2 %vm923_vm1, %v1079_v25  ;;  %1355 = vmatpush.msrb.mxu0 %v820_v0 }
 0x183   : > { %1356 = vmatpush.msrb.mxu0 %v819_v1 }
 0x185   : > { %1357 = vmatpush.msrb.mxu0 %v818_v3 }
 0x186   : > { %v947_v26 = vpop.f32.mrf.mxu1 }
 0x187   : > { %v950_v28 = vmul.f32 0.35355338, %v947_v26  ;;  %1358 = vmatpush.msrb.mxu0 %v817_v8 }
 0x188   : > { %3133 = vmatmul.msk.f32.vlgmr.msra.gmra.mxu0 %vm923_vm1, %v1158_v27 }
 0x189   : > { %v951_v29 = vsel %vm923_vm1, %v950_v28, -inf }
 0x18a   : > { %952 = vmax.xlane.f32.xlu0 %v951_v29 }
 0x1fd   : > { %v953_v33 = vpop.xlane.xlu0 %952  ;;  %v1023_v34 = vpop.f32.mrf.mxu0 }
 0x1fe   : > { %v954_v35 = vsub.f32 %v950_v28, %v953_v33  ;;  %v1026_v36 = vmul.f32 0.35355338, %v1023_v34 }
 0x200   : > { %v955_v37 = vmul.f32 1.442695, %v954_v35  ;;  %v1027_v38 = vsel %vm923_vm1, %v1026_v36, -inf }
 0x201   : > { %1028 = vmax.xlane.f32.xlu1 %v1027_v38 }
 0x202   : > { %3365 = vpow2.f32 %v955_v37 }
 0x204   : > { %v1103_v39 = vpop.f32.mrf.mxu2 }
 0x205   : > { %v1106_v40 = vmul.f32 0.35355338, %v1103_v39  ;;  %v1182_v43 = vpop.f32.mrf.mxu0 }
 0x206   : > { %v1185_v45 = vmul.f32 0.35355338, %v1182_v43 }
 0x207   : > { %v1107_v41 = vsel %vm923_vm1, %v1106_v40, -inf }
 0x208   : > { %v3366_v42 = vpop.eup %3365  ;;  %1108 = vmax.xlane.f32.xlu2 %v1107_v41  ;;  %v1186_v46 = vsel %vm923_vm1, %v1185_v45, -inf }
 0x209   : > { %v957_v44 = vsel %vm923_vm1, %v3366_v42, 0.0 }
 0x20a   : > { %958 = vadd.xlane.f32.xlu0 %v957_v44 }
 0x210   : > { %1187 = vmax.xlane.f32.xlu2 %v1186_v46 }
 0x274   : > { %v1029_v47 = vpop.xlane.xlu1 %1028 }
 0x275   : > { %v1030_v48 = vsub.f32 %v1026_v36, %v1029_v47 }
 0x277   : > { %v1031_v49 = vmul.f32 1.442695, %v1030_v48 }
 0x279   : > { %3367 = vpow2.f32 %v1031_v49 }
 0x27b   : > { %v1109_v50 = vpop.xlane.xlu2 %1108 }
 0x27c   : > { %v1110_v51 = vsub.f32 %v1106_v40, %v1109_v50 }
 0x27d   : > { %v959_v52 = vpop.xlane.xlu0 %958 }
 0x27e   : > { %v1111_v53 = vmul.f32 1.442695, %v1110_v51  ;;  %3369 = vrcp.f32 %v959_v52  ;;  %v971_v0 = vand.u32 2147483648, %v959_v52  ;;  %v969_v3 = vand.u32 2147483647, %v959_v52 }
 0x27f   : > { %v4201_v54 = vpop.eup %3367  ;;  %vm965_vm3 = vweird.f32 %v959_v52 }
 0x280   : > { %3371 = vpow2.f32 %v1111_v53  ;;  %v1033_v55 = vsel %vm923_vm1, %v4201_v54, 0.0  ;;  %v972_v7 = vor.u32 1.1754944e-38, %v971_v0  ;;  %vm970_vm5 = vcmp.eq.f32.partialorder %v969_v3, 8.507059e+37 }
 0x281   : > { %1034 = vadd.xlane.f32.xlu1 %v1033_v55 }
 0x283   : > { %v1188_v56 = vpop.xlane.xlu2 %1187 }
 0x284   : > { %v3370_v57 = vpop.eup %3369  ;;  %v1189_v58 = vsub.f32 %v1185_v45, %v1188_v56 }
 0x285   : > { %v961_v59 = vmul.f32 %v3370_v57, %v959_v52  ;;  %vm966_vm2 = vweird.f32 %v3370_v57 }
 0x286   : > { %v4205_v60 = vpop.eup %3371  ;;  %v1190_v61 = vmul.f32 1.442695, %v1189_v58  ;;  %vm967_vm4 = vmor %vm965_vm3, %vm966_vm2 }
 0x287   : > { %v962_v62 = vsub.f32 1.0, %v961_v59  ;;  %v1113_v63 = vsel %vm923_vm1, %v4205_v60, 0.0 }
 0x288   : > { %3373 = vpow2.f32 %v1190_v61  ;;  %1114 = vadd.xlane.f32.xlu2 %v1113_v63 }
 0x289   : > { %v963_v1 = vmul.f32 %v3370_v57, %v962_v62 }
 0x28b   : > { %v964_v6 = vadd.f32 %v3370_v57, %v963_v1 }
 0x28d   : > { %v968_v8 = vsel %vm967_vm4, %v3370_v57, %v964_v6  ;;  %vm1249_vm4 = vcmask 130048   ;;  %v4253_v6 = vld [vmem:[%s4735_s10] ss:$0 sm:$0xff] }
 0x28e   : > { %v4209_v13 = vpop.eup %3373  ;;  %v973_v14 = vsel %vm970_vm5, %v972_v7, %v968_v8  ;;  %vm1251_vm5 = vcmask 195584  }
 0x28f   : > { %v1192_v15 = vsel %vm923_vm1, %v4209_v13, 0.0  ;;  %v974_v16 = vmul.f32 %v3366_v42, %v973_v14 }
 0x290   : > { %1193 = vadd.xlane.f32.xlu0 %v1192_v15  ;;  %v3787_v15 = vmov 32.0  }
 0x291   : > { %3125 = vmatmul.msk.f32.vlgmr.msra.gmra.mxu3 %vm923_vm1, %v974_v16 }
 0x29a   : > { %1052 = vrot.lane.b32.xlu1 %v921_v32, %s3782_s28 }
 0x2a0   : > { %1131 = vrot.lane.b32.xlu2 %v921_v32, %s3783_s27 }
 0x2a4   : > { %1210 = vrot.lane.b32.xlu0 %v921_v32, %s3781_s3 }
 0x2f4   : > { %v1035_v21 = vpop.xlane.xlu1 %1034 }
 0x2f5   : > { %3375 = vrcp.f32 %v1035_v21  ;;  %v1047_v29 = vand.u32 2147483648, %v1035_v21  ;;  %vm1041_vm7 = vweird.f32 %v1035_v21  ;;  %v1045_v35 = vand.u32 2147483647, %v1035_v21 }
 0x2f7   : > { %v1048_v38 = vor.u32 1.1754944e-38, %v1047_v29  ;;  %vm1046_vm10 = vcmp.eq.f32.partialorder %v1045_v35, 8.507059e+37 }
 0x2fb   : > { %v3376_v22 = vpop.eup %3375  ;;  %v1115_v23 = vpop.xlane.xlu2 %1114 }
 0x2fc   : > { %v1037_v24 = vmul.f32 %v3376_v22, %v1035_v21  ;;  %3377 = vrcp.f32 %v1115_v23  ;;  %vm1042_vm6 = vweird.f32 %v3376_v22  ;;  %v1127_v37 = vand.u32 2147483648, %v1115_v23 }
 0x2fd   : > { %vm1043_vm8 = vmor %vm1041_vm7, %vm1042_vm6  ;;  %v1125_v40 = vand.u32 2147483647, %v1115_v23  ;;  %vm1121_vm11 = vweird.f32 %v1115_v23 }
 0x2fe   : > { %v1038_v25 = vsub.f32 1.0, %v1037_v24  ;;  %v1128_v44 = vor.u32 1.1754944e-38, %v1127_v37 }
 0x2ff   : > { %vm1126_vm13 = vcmp.eq.f32.partialorder %v1125_v40, 8.507059e+37 }
 0x300   : > { %v1039_v26 = vmul.f32 %v3376_v22, %v1038_v25 }
 0x302   : > { %v3378_v27 = vpop.eup %3377  ;;  %v1040_v28 = vadd.f32 %v3376_v22, %v1039_v26 }
 0x303   : > { %v1117_v31 = vmul.f32 %v3378_v27, %v1115_v23  ;;  %v1132_v33 = vpop.permute.xlu2 %1131  ;;  %v1194_v34 = vpop.xlane.xlu0 %1193  ;;  %vm1122_vm9 = vweird.f32 %v3378_v27 }
 0x304   : > { %3379 = vrcp.f32 %v1194_v34  ;;  %1152 = vmatpush.msrb.mxu3 %v1132_v33  ;;  %v1044_v36 = vsel %vm1043_vm8, %v3376_v22, %v1040_v28  ;;  %vm1123_vm12 = vmor %vm1121_vm11, %vm1122_vm9  ;;  %v1206_v50 = vand.u32 2147483648, %v1194_v34  ;;  %v1204_v51 = vand.u32 2147483647, %v1194_v34 }
 0x305   : > { %v1118_v32 = vsub.f32 1.0, %v1117_v31  ;;  %v1049_v41 = vsel %vm1046_vm10, %v1048_v38, %v1044_v36  ;;  %vm1200_vm15 = vweird.f32 %v1194_v34  ;;  %3381 = vrcp.f32 %v3787_v15  ;;  %v4264_v31 = vld [vmem:[%s718_s4] sm:$0xff]  ;;  %s807_s4 = scalar_lea.vmem [#allocation16], %s4079_s16 }
 0x306   : > { %1332 = vmatpush.msra.mxu3 %v4108_v2  ;;  %v1050_v47 = vmul.f32 %v4201_v54, %v1049_v41  ;;  %vm1205_vm3 = vcmp.eq.f32.partialorder %v1204_v51, 8.507059e+37  ;;  %3137 = vmatmul.msk.f32.vlgmr.msrb.gmra.mxu0 %vm853_vm0, %v4264_v31  ;;  %v4274_v41 = vld [vmem:[%s4736_s11] ss:$0 sm:$0xff]  ;;  %s2944_s2 = sshll.u32 %s807_s4, 4  ;;  %s2945_s2 = int_to_ptr.vmem [resolvable:$true] %s2944_s2 }
 0x307   : > { %v1119_v39 = vmul.f32 %v3378_v27, %v1118_v32 }
 0x308   : > { %1333 = vmatpush.msra.mxu3 %v4117_v4 }
 0x309   : > { %v1120_v42 = vadd.f32 %v3378_v27, %v1119_v39 }
 0x30a   : > { %1334 = vmatpush.msra.mxu3 %v4122_v5  ;;  %v3380_v43 = vpop.eup %3379 }
 0x30b   : > { %v1196_v45 = vmul.f32 %v3380_v43, %v1194_v34  ;;  %v1124_v2 = vsel %vm1123_vm12, %v3378_v27, %v1120_v42  ;;  %vm1201_vm14 = vweird.f32 %v3380_v43  ;;  %v3382_v16 = vpop.eup %3381 }
 0x30c   : > { %1335 = vmatpush.msra.mxu3 %v4131_v9  ;;  %v1053_v46 = vpop.permute.xlu1 %1052  ;;  %v1129_v48 = vsel %vm1126_vm13, %v1128_v44, %v1124_v2  ;;  %vm1202_vm2 = vmor %vm1200_vm15, %vm1201_vm14  ;;  %v1207_v9 = vor.u32 1.1754944e-38, %v1206_v50  ;;  %v1284_v21 = vmul.f32 32.0, %v3382_v16  ;;  %vm1288_vm6 = vweird.f32 %v3382_v16  ;;  %v4279_v44 = vld [vmem:[%s4828_s15] ss:$0 sm:$0xff] }
 0x30d   : > { %v1197_v49 = vsub.f32 1.0, %v1196_v45  ;;  %1073 = vmatpush.msra.mxu1 %v1053_v46  ;;  %v1130_v4 = vmul.f32 %v4205_v60, %v1129_v48 }
 0x30e   : > { %3128 = vmatmul.msk.f32.vlgmr.msra.gmra.mxu1 %vm923_vm1, %v1050_v47  ;;  %v1285_v22 = vsub.f32 1.0, %v1284_v21 }
 0x30f   : > { %v1198_v5 = vmul.f32 %v3380_v43, %v1197_v49  ;;  %3131 = vmatmul.msk.f32.vlgmr.msrb.gmra.mxu3 %vm923_vm1, %v1130_v4 }
 0x310   : > { %v1286_v23 = vmul.f32 %v3382_v16, %v1285_v22 }
 0x311   : > { %v1199_v52 = vadd.f32 %v3380_v43, %v1198_v5 }
 0x312   : > { %v1287_v24 = vadd.f32 %v3382_v16, %v1286_v23 }
 0x313   : > { %v1203_v53 = vsel %vm1202_vm2, %v3380_v43, %v1199_v52 }
 0x314   : > { %v1208_v54 = vsel %vm1205_vm3, %v1207_v9, %v1203_v53  ;;  %v995_v57 = vpop.f32.mrf.mxu3  ;;  %v4258_v25 = vsel %vm1288_vm6, %v3382_v16, %v1287_v24 }
 0x315   : > { %v1209_v55 = vmul.f32 %v4209_v13, %v1208_v54 }
 0x316   : > { %v1211_v56 = vpop.permute.xlu0 %1210 }
 0x317   : > { %1231 = vmatpush.msrb.mxu1 %v1211_v56 }
 0x318   : > { %3134 = vmatmul.msk.f32.vlgmr.msrb.gmra.mxu1 %vm923_vm1, %v1209_v55 }
 0x319   : > { %1375 = vmatpush.msra.mxu1 %v4164_v17  ;;  %v4234_v17 = vld [vmem:[#allocation10 + $0x18] sm:$0xff] }
 0x31a   : > { %1271 = vmatpush.msra.mxu2 %v4234_v17 }
 0x31b   : > { %1376 = vmatpush.msra.mxu1 %v4169_v18  ;;  %v4236_v18 = vld [vmem:[#allocation10 + $0x10] sm:$0xff] }
 0x31c   : > { %1272 = vmatpush.msra.mxu2 %v4236_v18 }
 0x31d   : > { %1377 = vmatpush.msra.mxu1 %v4175_v19  ;;  %v4239_v19 = vld [vmem:[#allocation10 + $0x8] sm:$0xff] }
 0x31e   : > { %1273 = vmatpush.msra.mxu2 %v4239_v19 }
 0x31f   : > { %1378 = vmatpush.msra.mxu1 %v4181_v20  ;;  %v4243_v20 = vld [vmem:[#allocation10] sm:$0xff] }
 0x320   : > { %1274 = vmatpush.msra.mxu2 %v4243_v20  ;;  %3138 = vmatmul.msk.f32.vlgmr.msra.gmra.mxu1 %vm853_vm0, %v4264_v31 }
 0x383   : > { %v1360_v46 = vpop.f32.mrf.mxu0 }
 0x384   : > { %v1361_v47 = vadd.f32 %v4144_v11, %v1360_v46 }
 0x386   : > { %3139 = vmatpush.xpose.msk.msrb.mxu2 %vm923_vm1, %v1361_v47 }
 0x38b   : > { %v1075_v58 = vpop.f32.mrf.mxu1 }
 0x38c   : > { %1237 = vrot.lane.b32.xlu1 %v1075_v58, %s3784_s14 }
 0x392   : > { %v1154_v59 = vpop.f32.mrf.mxu3 }
 0x393   : > { %1241 = vrot.lane.b32.xlu0 %v1154_v59, %s3785_s29 }
 0x395   : > { %v1233_v60 = vpop.f32.mrf.mxu1 }
 0x396   : > { %1245 = vrot.lane.b32.xlu2 %v1233_v60, %s3786_s24 }
 0x39d   : > { %v1380_v16 = vpop.f32.mrf.mxu1 }
 0x39e   : > { %1539 = vrot.lane.b32.xlu2 %v1361_v47, %s3783_s27  ;;  %v1381_v21 = vadd.f32 %v4194_v30, %v1380_v16 }
 0x3a0   : > { %1452 = vmatpush.msrb.mxu3 %v1381_v21 }
 0x3a6   : > { %1459 = vrot.lane.b32.xlu2 %v1361_v47, %s3782_s28 }
 0x3f0   : > { %v1246_v0 = vpop.permute.xlu2 %1245 }
 0x3f8   : > { %v1540_v11 = vpop.permute.xlu2 %1539 }
 0x3fe   : > { %v1238_v61 = vpop.permute.xlu1 %1237 }
 0x3ff   : > { %v1248_v62 = vsel %vm923_vm1, %v995_v57, %v1238_v61 }
 0x405   : > { %v1242_v63 = vpop.permute.xlu0 %1241 }
 0x406   : > { %v1250_v1 = vsel %vm1249_vm4, %v1248_v62, %v1242_v63 }
 0x407   : > { %v1252_v3 = vsel %vm1251_vm5, %v1250_v1, %v1246_v0 }
 0x408   : > { %3135 = vmatmul.msk.f32.vlgmr.msra.gmra.mxu2 %vm853_vm0, %v1252_v3 }
 0x409   : > { %3145 = vmatpush.xpose.msk.msra.mxu2 %vm923_vm1, %v1540_v11 }
 0x48b   : > { %v1276_v7 = vpop.f32.mrf.mxu2 }
 0x48c   : > { %v1277_v8 = vadd.f32 %v4253_v6, %v1276_v7 }
 0x48e   : > { %v1279_v13 = vadd.f32 %v1277_v8, %v4133_v10 }
 0x490   : > { %v1280_v14 = vsel %vm853_vm0, %v1279_v13, 0.0 }
 0x491   : > { %1281 = vadd.xlane.f32.xlu1 %v1280_v14 }
 0x504   : > { %v1282_v26 = vpop.xlane.xlu1 %1281 }
 0x505   : > { %v1290_v27 = vmul.f32 %v4258_v25, %v1282_v26 }
 0x507   : > { %v1291_v28 = vsub.f32 %v1279_v13, %v1290_v27 }
 0x509   : > { %v1292_v29 = vmul.f32 %v1291_v28, %v1291_v28 }
 0x50b   : > { %v1293_v10 = vsel %vm853_vm0, %v1292_v29, 0.0 }
 0x50c   : > { %1294 = vadd.xlane.f32.xlu0 %v1293_v10 }
 0x57f   : > { %v1295_v33 = vpop.xlane.xlu0 %1294 }
 0x580   : > { %v1296_v34 = vmul.f32 %v1295_v33, %v4258_v25 }
 0x582   : > { %v1297_v35 = vadd.f32 1e-05, %v1296_v34 }
 0x584   : > { %3383 = vrsqrt.f32 %v1297_v35  ;;  %vm1304_vm8 = vweird.f32 %v1297_v35 }
 0x58a   : > { %v3384_v32 = vpop.eup %3383 }
 0x58b   : > { %v1299_v36 = vmul.f32 %v3384_v32, %v1297_v35  ;;  %vm1305_vm7 = vweird.f32 %v3384_v32 }
 0x58c   : > { %vm1306_vm9 = vmor %vm1304_vm8, %vm1305_vm7 }
 0x58d   : > { %v1300_v37 = vmul.f32 %v3384_v32, %v1299_v36 }
 0x58f   : > { %v1301_v38 = vmul.f32 0.5, %v1300_v37 }
 0x591   : > { %v1302_v39 = vsub.f32 1.5, %v1301_v38 }
 0x593   : > { %v1303_v40 = vmul.f32 %v3384_v32, %v1302_v39 }
 0x595   : > { %v1307_v42 = vsel %vm1306_vm9, %v3384_v32, %v1303_v40 }
 0x596   : > { %v1308_v43 = vmul.f32 %v1307_v42, %v1291_v28 }
 0x598   : > { %v1312_v45 = vmul.f32 %v4274_v41, %v1308_v43 }
 0x59a   : > { %v4283_v2 = vadd.f32 %v4279_v44, %v1312_v45 }
 0x59c   : > { %3136 = vmatmul.msk.f32.vlgmr.msra.gmra.mxu3 %vm853_vm0, %v4283_v2 }
 0x61f   : > { %v1337_v48 = vpop.f32.mrf.mxu3 }
 0x620   : > { %v1338_v49 = vadd.f32 %v4149_v12, %v1337_v48  ;;  %v1460_v12 = vpop.permute.xlu2 %1459 }
 0x621   : > { %3142 = vmatpush.xpose.msk.msra.mxu0 %vm923_vm1, %v1460_v12 }
 0x622   : > { %1616 = vrot.lane.b32.xlu1 %v1338_v49, %s3781_s3  ;;  %1537 = vrot.lane.b32.xlu2 %v1338_v49, %s3783_s27 }
 0x623   : > { %3140 = vmatmul.msk.f32.vlgmr.msrb.gmra.mxu2 %vm923_vm1, %v1338_v49 }
 0x624   : > { %1725 = vmatpush.msrb.mxu2 %v4234_v17 }
 0x626   : > { %1726 = vmatpush.msrb.mxu2 %v4236_v18 }
 0x628   : > { %1727 = vmatpush.msrb.mxu2 %v4239_v19 }
 0x62a   : > { %1457 = vrot.lane.b32.xlu2 %v1338_v49, %s3782_s28  ;;  %1728 = vmatpush.msrb.mxu2 %v4243_v20 }
 0x632   : > { %1618 = vrot.lane.b32.xlu2 %v1361_v47, %s3781_s3 }
 0x67c   : > { %v1538_v4 = vpop.permute.xlu2 %1537 }
 0x67d   : > { %3146 = vmatmul.msk.f32.vlgmr.msra.gmra.mxu2 %vm923_vm1, %v1538_v4 }
 0x684   : > { %v1458_v50 = vpop.permute.xlu2 %1457 }
 0x685   : > { %3143 = vmatmul.msk.f32.vlgmr.msra.gmra.mxu0 %vm923_vm1, %v1458_v50 }
 0x68c   : > { %v1619_v5 = vpop.permute.xlu2 %1618 }
 0x68d   : > { %3148 = vmatpush.xpose.msk.msrb.mxu0 %vm923_vm1, %v1619_v5 }
 0x694   : > { %v1617_v51 = vpop.permute.xlu1 %1616 }
 0x695   : > { %3149 = vmatmul.msk.f32.vlgmr.msrb.gmra.mxu0 %vm923_vm1, %v1617_v51 }
 0x6a6   : > { %v1406_v52 = vpop.f32.mrf.mxu2 }
 0x6a7   : > { %v1409_v9 = vmul.f32 0.35355338, %v1406_v52 }
 0x6a9   : > { %v1410_v53 = vsel %vm923_vm1, %v1409_v9, -inf }
 0x6aa   : > { %1411 = vmax.xlane.f32.xlu0 %v1410_v53 }
 0x700   : > { %v1562_v54 = vpop.f32.mrf.mxu2 }
 0x701   : > { %v1565_v55 = vmul.f32 0.35355338, %v1562_v54 }
 0x702   : > { %v1482_v56 = vpop.f32.mrf.mxu0 }
 0x703   : > { %v1485_v57 = vmul.f32 0.35355338, %v1482_v56  ;;  %v1566_v58 = vsel %vm923_vm1, %v1565_v55, -inf }
 0x704   : > { %1567 = vmax.xlane.f32.xlu0 %v1566_v58 }
 0x705   : > { %v1486_v59 = vsel %vm923_vm1, %v1485_v57, -inf }
 0x706   : > { %1487 = vmax.xlane.f32.xlu2 %v1486_v59 }
 0x712   : > { %v1641_v60 = vpop.f32.mrf.mxu0 }
 0x713   : > { %v1644_v17 = vmul.f32 0.35355338, %v1641_v60 }
 0x715   : > { %v1645_v18 = vsel %vm923_vm1, %v1644_v17, -inf }
 0x716   : > { %1646 = vmax.xlane.f32.xlu0 %v1645_v18 }
 0x71d   : > { %v1412_v19 = vpop.xlane.xlu0 %1411 }
 0x71e   : > { %v1413_v20 = vsub.f32 %v1409_v9, %v1412_v19  ;;  %1511 = vrot.lane.b32.xlu2 %v1381_v21, %s3782_s28 }
 0x720   : > { %v1414_v61 = vmul.f32 1.442695, %v1413_v20 }
 0x722   : > { %3385 = vpow2.f32 %v1414_v61 }
 0x728   : > { %v3386_v62 = vpop.eup %3385 }
 0x729   : > { %v1416_v63 = vsel %vm923_vm1, %v3386_v62, 0.0 }
 0x72a   : > { %1417 = vadd.xlane.f32.xlu1 %v1416_v63 }
 0x743   : > { %1669 = vrot.lane.b32.xlu1 %v1381_v21, %s3781_s3 }
 0x777   : > { %v1568_v0 = vpop.xlane.xlu0 %1567 }
 0x778   : > { %v1569_v7 = vsub.f32 %v1565_v55, %v1568_v0 }
 0x779   : > { %v1488_v1 = vpop.xlane.xlu2 %1487 }
 0x77a   : > { %v1489_v3 = vsub.f32 %v1485_v57, %v1488_v1  ;;  %v1570_v13 = vmul.f32 1.442695, %v1569_v7 }
 0x77c   : > { %v1490_v8 = vmul.f32 1.442695, %v1489_v3 }
 0x77e   : > { %3387 = vpow2.f32 %v1490_v8 }
 0x77f   : > { %3389 = vpow2.f32 %v1570_v13 }
 0x781   : > { %v1512_v43 = vpop.permute.xlu2 %1511 }
 0x782   : > { %1532 = vmatpush.msrb.mxu1 %v1512_v43  ;;  %v837_v43 = vld [vmem:[#allocation11 + $0x18] sm:$0xff] }
 0x784   : > { %v4312_v14 = vpop.eup %3387 }
 0x785   : > { %v1492_v15 = vsel %vm923_vm1, %v4312_v14, 0.0  ;;  %v4317_v23 = vpop.eup %3389 }
 0x786   : > { %1493 = vadd.xlane.f32.xlu0 %v1492_v15  ;;  %v1572_v27 = vsel %vm923_vm1, %v4317_v23, 0.0 }
 0x789   : > { %v1647_v22 = vpop.xlane.xlu0 %1646 }
 0x78a   : > { %v1648_v24 = vsub.f32 %v1644_v17, %v1647_v22 }
 0x78c   : > { %v1649_v26 = vmul.f32 1.442695, %v1648_v24 }
 0x78e   : > { %3391 = vpow2.f32 %v1649_v26  ;;  %1573 = vadd.xlane.f32.xlu0 %v1572_v27 }
 0x794   : > { %v4323_v28 = vpop.eup %3391 }
 0x795   : > { %v1651_v30 = vsel %vm923_vm1, %v4323_v28, 0.0 }
 0x796   : > { %1652 = vadd.xlane.f32.xlu0 %v1651_v30 }
 0x79d   : > { %v1418_v29 = vpop.xlane.xlu1 %1417 }
 0x79e   : > { %3393 = vrcp.f32 %v1418_v29  ;;  %v1430_v35 = vand.u32 2147483648, %v1418_v29  ;;  %v1428_v36 = vand.u32 2147483647, %v1418_v29  ;;  %vm1424_vm11 = vweird.f32 %v1418_v29 }
 0x7a0   : > { %v1431_v38 = vor.u32 1.1754944e-38, %v1430_v35  ;;  %vm1429_vm13 = vcmp.eq.f32.partialorder %v1428_v36, 8.507059e+37 }
 0x7a4   : > { %v3394_v10 = vpop.eup %3393 }
 0x7a5   : > { %v1420_v33 = vmul.f32 %v3394_v10, %v1418_v29  ;;  %vm1425_vm10 = vweird.f32 %v3394_v10 }
 0x7a6   : > { %vm1426_vm12 = vmor %vm1424_vm11, %vm1425_vm10 }
 0x7a7   : > { %v1421_v34 = vsub.f32 1.0, %v1420_v33 }
 0x7a9   : > { %v1422_v32 = vmul.f32 %v3394_v10, %v1421_v34 }
 0x7aa   : > { %1590 = vrot.lane.b32.xlu0 %v1381_v21, %s3783_s27 }
 0x7ab   : > { %v1423_v37 = vadd.f32 %v3394_v10, %v1422_v32 }
 0x7ad   : > { %v1427_v39 = vsel %vm1426_vm12, %v3394_v10, %v1423_v37 }
 0x7ae   : > { %v1432_v40 = vsel %vm1429_vm13, %v1431_v38, %v1427_v39 }
 0x7af   : > { %v1433_v42 = vmul.f32 %v3386_v62, %v1432_v40 }
 0x7b1   : > { %3141 = vmatmul.msk.f32.vlgmr.msrb.gmra.mxu3 %vm923_vm1, %v1433_v42 }
 0x7b5   : > { %v1670_v46 = vpop.permute.xlu1 %1669 }
 0x7b6   : > { %1690 = vmatpush.msra.mxu1 %v1670_v46  ;;  %v835_v46 = vld [vmem:[#allocation11 + $0x8] sm:$0xff] }
 0x7f9   : > { %v1494_v45 = vpop.xlane.xlu0 %1493 }
 0x7fa   : > { %3395 = vrcp.f32 %v1494_v45  ;;  %v1506_v12 = vand.u32 2147483648, %v1494_v45  ;;  %v1504_v50 = vand.u32 2147483647, %v1494_v45  ;;  %vm1500_vm15 = vweird.f32 %v1494_v45 }
 0x7fc   : > { %v1507_v52 = vor.u32 1.1754944e-38, %v1506_v12  ;;  %vm1505_vm3 = vcmp.eq.f32.partialorder %v1504_v50, 8.507059e+37  ;;  %v843_v12 = vld [vmem:[%s4829_s8 + $0x20] sm:$0xff]  ;;  %v842_v50 = vld [vmem:[%s4829_s8 + $0x18] sm:$0xff] }
 0x800   : > { %v3396_v47 = vpop.eup %3395 }
 0x801   : > { %v1496_v48 = vmul.f32 %v3396_v47, %v1494_v45  ;;  %v1574_v49 = vpop.xlane.xlu0 %1573  ;;  %vm1501_vm14 = vweird.f32 %v3396_v47  ;;  %v836_v45 = vld [vmem:[#allocation11 + $0x10] sm:$0xff] }
 0x802   : > { %3397 = vrcp.f32 %v1574_v49  ;;  %vm1502_vm2 = vmor %vm1500_vm15, %vm1501_vm14  ;;  %v1586_v18 = vand.u32 2147483648, %v1574_v49  ;;  %vm1580_vm7 = vweird.f32 %v1574_v49  ;;  %v1584_v20 = vand.u32 2147483647, %v1574_v49 }
 0x803   : > { %v1497_v11 = vsub.f32 1.0, %v1496_v48  ;;  %v844_v48 = vld [vmem:[%s4829_s8 + $0x28] sm:$0xff] }
 0x804   : > { %v1587_v1 = vor.u32 1.1754944e-38, %v1586_v18  ;;  %vm1585_vm11 = vcmp.eq.f32.partialorder %v1584_v20, 8.507059e+37  ;;  %v3351_v20 = vld [vmem:[%s4830_s30] ss:$0 sm:$0xff] }
 0x805   : > { %v1498_v4 = vmul.f32 %v3396_v47, %v1497_v11 }
 0x807   : > { %v1499_v5 = vadd.f32 %v3396_v47, %v1498_v4 }
 0x808   : > { %v3398_v51 = vpop.eup %3397 }
 0x809   : > { %v1503_v9 = vsel %vm1502_vm2, %v3396_v47, %v1499_v5  ;;  %v1576_v53 = vmul.f32 %v3398_v51, %v1574_v49  ;;  %v1653_v54 = vpop.xlane.xlu0 %1652  ;;  %vm1581_vm6 = vweird.f32 %v3398_v51  ;;  %v834_v47 = vld [vmem:[#allocation11] sm:$0xff] }
 0x80a   : > { %v1508_v55 = vsel %vm1505_vm3, %v1507_v52, %v1503_v9  ;;  %3399 = vrcp.f32 %v1653_v54  ;;  %v1665_v61 = vand.u32 2147483648, %v1653_v54  ;;  %vm1582_vm8 = vmor %vm1580_vm7, %vm1581_vm6  ;;  %v1663_v63 = vand.u32 2147483647, %v1653_v54 }
 0x80b   : > { %v1577_v56 = vsub.f32 1.0, %v1576_v53  ;;  %v1509_v57 = vmul.f32 %v4312_v14, %v1508_v55  ;;  %vm1659_vm10 = vweird.f32 %v1653_v54  ;;  %vm1788_vm3 = vcmask 523264  }
 0x80c   : > { %v1666_v7 = vor.u32 1.1754944e-38, %v1665_v61  ;;  %vm1664_vm13 = vcmp.eq.f32.partialorder %v1663_v63, 8.507059e+37 }
 0x80d   : > { %3144 = vmatmul.msk.f32.vlgmr.msrb.gmra.mxu1 %vm923_vm1, %v1509_v57  ;;  %v1578_v58 = vmul.f32 %v3398_v51, %v1577_v56 }
 0x80f   : > { %v1579_v17 = vadd.f32 %v3398_v51, %v1578_v58 }
 0x810   : > { %v3400_v59 = vpop.eup %3399 }
 0x811   : > { %v1655_v60 = vmul.f32 %v3400_v59, %v1653_v54  ;;  %vm1660_vm9 = vweird.f32 %v3400_v59  ;;  %v1583_v0 = vsel %vm1582_vm8, %v3398_v51, %v1579_v17  ;;  %v839_v17 = vld [vmem:[%s4829_s8] sm:$0xff] }
 0x812   : > { %vm1661_vm12 = vmor %vm1659_vm10, %vm1660_vm9  ;;  %v1588_v8 = vsel %vm1585_vm11, %v1587_v1, %v1583_v0 }
 0x813   : > { %v1656_v19 = vsub.f32 1.0, %v1655_v60  ;;  %v1589_v21 = vmul.f32 %v4317_v23, %v1588_v8  ;;  %v840_v60 = vld [vmem:[%s4829_s8 + $0x8] sm:$0xff] }
 0x815   : > { %v1657_v62 = vmul.f32 %v3400_v59, %v1656_v19 }
 0x817   : > { %v1658_v3 = vadd.f32 %v3400_v59, %v1657_v62 }
 0x819   : > { %v1662_v13 = vsel %vm1661_vm12, %v3400_v59, %v1658_v3  ;;  %v841_v59 = vld [vmem:[%s4829_s8 + $0x10] sm:$0xff] }
 0x81a   : > { %v1667_v14 = vsel %vm1664_vm13, %v1666_v7, %v1662_v13 }
 0x81b   : > { %v1668_v15 = vmul.f32 %v4323_v28, %v1667_v14  ;;  %v4385_v14 = vld [vmem:[%s4826_s18 + $0x38] sm:$0xff] }
 0x81c   : > { %v1591_v16 = vpop.permute.xlu0 %1590  ;;  %1915 = vmatpush.msrb.mxu1 %v4385_v14 }
 0x81d   : > { %1611 = vmatpush.msra.mxu3 %v1591_v16  ;;  %3150 = vmatmul.msk.f32.vlgmr.msra.gmra.mxu1 %vm923_vm1, %v1668_v15  ;;  %v4390_v15 = vld [vmem:[%s4825_s13 + $0x38] sm:$0xff] }
 0x81e   : > { %3147 = vmatmul.msk.f32.vlgmr.msra.gmra.mxu3 %vm923_vm1, %v1589_v21  ;;  %v4395_v16 = vld [vmem:[%s4732_s7 + $0x38] sm:$0xff]  ;;  %1938 = vmatpush.msra.mxu2 %v4390_v15  ;;  %v4403_v21 = vld [vmem:[%s4826_s18 + $0x30] sm:$0xff] }
 0x81f   : > { %1776 = vmatpush.msrb.mxu3 %v837_v43  ;;  %1916 = vmatpush.msrb.mxu1 %v4403_v21 }
 0x821   : > { %1777 = vmatpush.msrb.mxu3 %v836_v45  ;;  %v3353_v45 = vld [vmem:[%s4832_s23] ss:$0 sm:$0xff] }
 0x823   : > { %1778 = vmatpush.msrb.mxu3 %v835_v46 }
 0x825   : > { %1779 = vmatpush.msrb.mxu3 %v834_v47 }
 0x827   : > { %1961 = vmatpush.msra.mxu3 %v4395_v16 }
 0x834   : > { %v1454_v24 = vpop.f32.mrf.mxu3 }
 0x88a   : > { %v1534_v22 = vpop.f32.mrf.mxu1 }
 0x88b   : > { %1696 = vrot.lane.b32.xlu2 %v1534_v22, %s3784_s14  ;;  %v4408_v22 = vld [vmem:[%s4825_s13 + $0x30] sm:$0xff] }
 0x88c   : > { %1939 = vmatpush.msra.mxu2 %v4408_v22 }
 0x89a   : > { %v1692_v26 = vpop.f32.mrf.mxu1 }
 0x89b   : > { %1704 = vrot.lane.b32.xlu2 %v1692_v26, %s3786_s24  ;;  %v4420_v26 = vld [vmem:[%s4826_s18 + $0x28] sm:$0xff] }
 0x89c   : > { %1917 = vmatpush.msrb.mxu1 %v4420_v26 }
 0x8a1   : > { %v1613_v27 = vpop.f32.mrf.mxu3 }
 0x8a2   : > { %1700 = vrot.lane.b32.xlu0 %v1613_v27, %s3785_s29  ;;  %v4425_v27 = vld [vmem:[%s4825_s13 + $0x28] sm:$0xff] }
 0x8a3   : > { %1940 = vmatpush.msra.mxu2 %v4425_v27 }
 0x8e5   : > { %v1697_v30 = vpop.permute.xlu2 %1696 }
 0x8e6   : > { %v1707_v28 = vsel %vm923_vm1, %v1454_v24, %v1697_v30  ;;  %v4413_v24 = vld [vmem:[%s4732_s7 + $0x30] sm:$0xff]  ;;  %v4430_v30 = vld [vmem:[%s4732_s7 + $0x28] sm:$0xff] }
 0x8e7   : > { %1962 = vmatpush.msra.mxu3 %v4413_v24 }
 0x8e9   : > { %1963 = vmatpush.msra.mxu3 %v4430_v30 }
 0x8f5   : > { %v1705_v23 = vpop.permute.xlu2 %1704 }
 0x914   : > { %v1701_v29 = vpop.permute.xlu0 %1700 }
 0x915   : > { %v1708_v10 = vsel %vm1249_vm4, %v1707_v28, %v1701_v29  ;;  %v4436_v28 = vld [vmem:[%s4826_s18 + $0x20] sm:$0xff] }
 0x916   : > { %v1709_v33 = vsel %vm1251_vm5, %v1708_v10, %v1705_v23  ;;  %v3159_v29 = vld [vmem:[%s4825_s13 + $0x20] sm:$0xff]  ;;  %1918 = vmatpush.msrb.mxu1 %v4436_v28 }
 0x917   : > { %3151 = vmatmul.msk.f32.vlgmr.msrb.gmra.mxu2 %vm853_vm0, %v1709_v33  ;;  %v4446_v23 = vld [vmem:[%s4732_s7 + $0x20] sm:$0xff] }
 0x918   : > { %1941 = vmatpush.msra.mxu2 %v3159_v29  ;;  %1964 = vmatpush.msra.mxu3 %v4446_v23 }
 0x99a   : > { %v1730_v34 = vpop.f32.mrf.mxu2 }
 0x99b   : > { %v1731_v35 = vadd.f32 %v4253_v6, %v1730_v34  ;;  %v846_v6 = vld [vmem:[%s4829_s8 + $0x38] sm:$0xff] }
 0x99c   : > { %1800 = vmatpush.msra.mxu0 %v846_v6  ;;  %v4469_v6 = vld [vmem:[%s4827_s12 + $0x1] ss:$0 sm:$0xff] }
 0x99d   : > { %v1733_v32 = vadd.f32 %v1731_v35, %v4283_v2  ;;  %v845_v2 = vld [vmem:[%s4829_s8 + $0x30] sm:$0xff] }
 0x99e   : > { %1801 = vmatpush.msra.mxu0 %v845_v2 }
 0x99f   : > { %v1734_v36 = vsel %vm853_vm0, %v1733_v32, 0.0 }
 0x9a0   : > { %1735 = vadd.xlane.f32.xlu0 %v1734_v36  ;;  %1802 = vmatpush.msra.mxu0 %v844_v48 }
 0x9a2   : > { %1803 = vmatpush.msra.mxu0 %v843_v12 }
 0x9a4   : > { %1804 = vmatpush.msra.mxu0 %v842_v50 }
 0x9a6   : > { %1805 = vmatpush.msra.mxu0 %v841_v59 }
 0x9a8   : > { %1806 = vmatpush.msra.mxu0 %v840_v60 }
 0x9aa   : > { %1807 = vmatpush.msra.mxu0 %v839_v17 }
 0xa13   : > { %v1736_v37 = vpop.xlane.xlu0 %1735 }
 0xa14   : > { %v1737_v38 = vmul.f32 %v1736_v37, %v4258_v25 }
 0xa16   : > { %v1738_v39 = vsub.f32 %v1733_v32, %v1737_v38 }
 0xa18   : > { %v1739_v40 = vmul.f32 %v1738_v39, %v1738_v39 }
 0xa1a   : > { %v1740_v42 = vsel %vm853_vm0, %v1739_v40, 0.0  ;;  %v3352_v40 = vld [vmem:[%s4831_s17] ss:$0 sm:$0xff] }
 0xa1b   : > { %1741 = vadd.xlane.f32.xlu2 %v1740_v42 }
 0xa8e   : > { %v1742_v49 = vpop.xlane.xlu2 %1741 }
 0xa8f   : > { %v1743_v11 = vmul.f32 %v1742_v49, %v4258_v25  ;;  %v4476_v49 = vld [vmem:[%s4731_s6 + $0x1] ss:$0 sm:$0xff] }
 0xa91   : > { %v1744_v4 = vadd.f32 1e-05, %v1743_v11  ;;  %v4478_v11 = vld [vmem:[#allocation8 + $0x1] ss:$0 sm:$0xff] }
 0xa93   : > { %3401 = vrsqrt.f32 %v1744_v4  ;;  %vm1751_vm15 = vweird.f32 %v1744_v4 }
 0xa99   : > { %v3402_v5 = vpop.eup %3401 }
 0xa9a   : > { %v1746_v51 = vmul.f32 %v3402_v5, %v1744_v4  ;;  %vm1752_vm14 = vweird.f32 %v3402_v5 }
 0xa9b   : > { %vm1753_vm2 = vmor %vm1751_vm15, %vm1752_vm14 }
 0xa9c   : > { %v1747_v52 = vmul.f32 %v3402_v5, %v1746_v51 }
 0xa9e   : > { %v1748_v9 = vmul.f32 0.5, %v1747_v52 }
 0xaa0   : > { %v1749_v53 = vsub.f32 1.5, %v1748_v9 }
 0xaa2   : > { %v1750_v54 = vmul.f32 %v3402_v5, %v1749_v53 }
 0xaa4   : > { %v1754_v55 = vsel %vm1753_vm2, %v3402_v5, %v1750_v54 }
 0xaa5   : > { %v1755_v56 = vmul.f32 %v1754_v55, %v1738_v39 }
 0xaa7   : > { %v1756_v57 = vmul.f32 %v4274_v41, %v1755_v56  ;;  %v3350_v41 = vld [vmem:[#allocation13] ss:$0 sm:$0xff] }
 0xaa9   : > { %v1757_v58 = vadd.f32 %v4279_v44, %v1756_v57 }
 0xaab   : > { %3152 = vmatmul.msk.f32.vlgmr.msrb.gmra.mxu3 %vm853_vm0, %v1757_v58 }
 0xb2e   : > { %v1781_v18 = vpop.f32.mrf.mxu3 }
 0xb2f   : > { %v1782_v44 = vadd.f32 %v3350_v41, %v1781_v18 }
 0xb31   : > { %v1784_v19 = vmax.f32 %v1782_v44, 0.0 }
 0xb33   : > { %3153 = vmatmul.msk.f32.vlgmr.msra.gmra.mxu0 %vm1788_vm3, %v1784_v19 }
 0xbb0   : > { %v1809_v61 = vpop.f32.mrf.mxu0 }
 0xbb1   : > { %v1810_v62 = vadd.f32 %v3351_v20, %v1809_v61 }
 0xbb3   : > { %v1812_v63 = vadd.f32 %v1810_v62, %v1757_v58 }
 0xbb5   : > { %v1813_v0 = vsel %vm853_vm0, %v1812_v63, 0.0 }
 0xbb6   : > { %1814 = vadd.xlane.f32.xlu1 %v1813_v0 }
 0xc29   : > { %v1815_v1 = vpop.xlane.xlu1 %1814 }
 0xc2a   : > { %v1816_v3 = vmul.f32 %v1815_v1, %v4258_v25 }
 0xc2c   : > { %v1817_v7 = vsub.f32 %v1812_v63, %v1816_v3 }
 0xc2e   : > { %v1818_v8 = vmul.f32 %v1817_v7, %v1817_v7 }
 0xc30   : > { %v1819_v13 = vsel %vm853_vm0, %v1818_v8, 0.0 }
 0xc31   : > { %1820 = vadd.xlane.f32.xlu0 %v1819_v13 }
 0xca4   : > { %v1821_v10 = vpop.xlane.xlu0 %1820 }
 0xca5   : > { %v1822_v33 = vmul.f32 %v1821_v10, %v4258_v25 }
 0xca7   : > { %v1823_v34 = vadd.f32 1e-05, %v1822_v33 }
 0xca9   : > { %3403 = vrsqrt.f32 %v1823_v34  ;;  %vm1830_vm7 = vweird.f32 %v1823_v34 }
 0xcaf   : > { %v3404_v35 = vpop.eup %3403 }
 0xcb0   : > { %v1825_v32 = vmul.f32 %v3404_v35, %v1823_v34  ;;  %vm1831_vm6 = vweird.f32 %v3404_v35 }
 0xcb1   : > { %vm1832_vm8 = vmor %vm1830_vm7, %vm1831_vm6 }
 0xcb2   : > { %v1826_v36 = vmul.f32 %v3404_v35, %v1825_v32 }
 0xcb4   : > { %v1827_v37 = vmul.f32 0.5, %v1826_v36 }
 0xcb6   : > { %v1828_v38 = vsub.f32 1.5, %v1827_v37 }
 0xcb8   : > { %v1829_v39 = vmul.f32 %v3404_v35, %v1828_v38 }
 0xcba   : > { %v1833_v42 = vsel %vm1832_vm8, %v3404_v35, %v1829_v39 }
 0xcbb   : > { %v1834_v43 = vmul.f32 %v1833_v42, %v1817_v7 }
 0xcbd   : > { %v1838_v46 = vmul.f32 %v3352_v40, %v1834_v43 }
 0xcbf   : > { %v4458_v47 = vadd.f32 %v3353_v45, %v1838_v46 }
 0xcc1   : > { %3182 = vmatmul.msk.f32.vlgmr.msrb.gmra.mxu1 %vm853_vm0, %v4458_v47  ;;  %3183 = vmatmul.msk.f32.vlgmr.msra.gmra.mxu2 %vm853_vm0, %v4458_v47 }
 0xcc2   : > { %3184 = vmatmul.msk.f32.vlgmr.msra.gmra.mxu3 %vm853_vm0, %v4458_v47 }
 0xd3e   : > { %v1920_v2 = vpop.f32.mrf.mxu1 }
 0xd3f   : > { %v1921_v48 = vadd.f32 %v4469_v6, %v1920_v2 }
 0xd41   : > { %2043 = vrot.lane.b32.xlu0 %v1921_v48, %s3782_s28 }
 0xd44   : > { %v1943_v12 = vpop.f32.mrf.mxu2 }
 0xd45   : > { %v1944_v4 = vadd.f32 %v4476_v49, %v1943_v12  ;;  %v1966_v50 = vpop.f32.mrf.mxu3 }
 0xd46   : > { %v4482_v5 = vadd.f32 %v4478_v11, %v1966_v50 }
 0xd47   : > { %2125 = vrot.lane.b32.xlu1 %v1944_v4, %s3783_s27  ;;  %2045 = vrot.lane.b32.xlu2 %v1944_v4, %s3782_s28 }
 0xd48   : > { %2038 = vmatpush.msrb.mxu2 %v4482_v5  ;;  %3185 = vmatpush.xpose.msk.msra.mxu1 %vm923_vm1, %v1944_v4 }
 0xd49   : > { %2204 = vrot.lane.b32.xlu0 %v1944_v4, %s3781_s3 }
 0xd4b   : > { %3186 = vmatmul.msk.f32.vlgmr.msra.gmra.mxu1 %vm923_vm1, %v1921_v48 }
 0xd4f   : > { %2123 = vrot.lane.b32.xlu2 %v1921_v48, %s3783_s27 }
 0xd51   : > { %2202 = vrot.lane.b32.xlu0 %v1921_v48, %s3781_s3 }
 0xda1   : > { %v2046_v51 = vpop.permute.xlu2 %2045 }
 0xda2   : > { %3188 = vmatpush.xpose.msk.msrb.mxu3 %vm923_vm1, %v2046_v51 }
 0xda9   : > { %v2124_v54 = vpop.permute.xlu2 %2123 }
 0xdb3   : > { %v2044_v52 = vpop.permute.xlu0 %2043 }
 0xdb4   : > { %3189 = vmatmul.msk.f32.vlgmr.msrb.gmra.mxu3 %vm923_vm1, %v2044_v52 }
 0xdb9   : > { %v2126_v9 = vpop.permute.xlu1 %2125 }
 0xdba   : > { %3191 = vmatpush.xpose.msk.msrb.mxu1 %vm923_vm1, %v2126_v9 }
 0xdbb   : > { %v2205_v53 = vpop.permute.xlu0 %2204 }
 0xdbc   : > { %3194 = vmatpush.xpose.msk.msra.mxu3 %vm923_vm1, %v2205_v53 }
 0xdbd   : > { %3192 = vmatmul.msk.f32.vlgmr.msrb.gmra.mxu1 %vm923_vm1, %v2124_v54 }
 0xdc0   : > { %2388 = vmatpush.msrb.mxu3 %v4390_v15 }
 0xdc2   : > { %2389 = vmatpush.msrb.mxu3 %v4408_v22 }
 0xdc3   : > { %v2203_v55 = vpop.permute.xlu0 %2202 }
 0xdc4   : > { %2390 = vmatpush.msrb.mxu3 %v4425_v27 }
 0xdc5   : > { %3195 = vmatmul.msk.f32.vlgmr.msra.gmra.mxu3 %vm923_vm1, %v2203_v55 }
 0xdc6   : > { %2391 = vmatpush.msrb.mxu3 %v3159_v29 }
 0xdc8   : > { %v1992_v56 = vpop.f32.mrf.mxu1 }
 0xdc9   : > { %v1995_v57 = vmul.f32 0.35355338, %v1992_v56 }
 0xdcb   : > { %v1996_v58 = vsel %vm923_vm1, %v1995_v57, -inf }
 0xdcc   : > { %1997 = vmax.xlane.f32.xlu2 %v1996_v58 }
 0xdcd   : > { %3199 = vmatmul.msk.f32.vlgmr.msrb.gmra.mxu3 %vm853_vm0, %v4264_v31 }
 0xe37   : > { %v2068_v59 = vpop.f32.mrf.mxu3 }
 0xe38   : > { %v2071_v60 = vmul.f32 0.35355338, %v2068_v59 }
 0xe3a   : > { %v2148_v17 = vpop.f32.mrf.mxu1  ;;  %v2072_v41 = vsel %vm923_vm1, %v2071_v60, -inf }
 0xe3b   : > { %v2151_v18 = vmul.f32 0.35355338, %v2148_v17  ;;  %2073 = vmax.xlane.f32.xlu1 %v2072_v41 }
 0xe3d   : > { %v2152_v44 = vsel %vm923_vm1, %v2151_v18, -inf }
 0xe3e   : > { %2153 = vmax.xlane.f32.xlu0 %v2152_v44 }
 0xe3f   : > { %v1998_v19 = vpop.xlane.xlu2 %1997 }
 0xe40   : > { %v1999_v20 = vsub.f32 %v1995_v57, %v1998_v19 }
 0xe42   : > { %v2000_v61 = vmul.f32 1.442695, %v1999_v20 }
 0xe44   : > { %3405 = vpow2.f32 %v2000_v61 }
 0xe48   : > { %v2227_v62 = vpop.f32.mrf.mxu3 }
 0xe49   : > { %v2230_v63 = vmul.f32 0.35355338, %v2227_v62 }
 0xe4a   : > { %v3406_v0 = vpop.eup %3405 }
 0xe4b   : > { %v2231_v1 = vsel %vm923_vm1, %v2230_v63, -inf  ;;  %v2002_v3 = vsel %vm923_vm1, %v3406_v0, 0.0 }
 0xe4c   : > { %2232 = vmax.xlane.f32.xlu2 %v2231_v1  ;;  %2003 = vadd.xlane.f32.xlu1 %v2002_v3 }
 0xeae   : > { %v2074_v7 = vpop.xlane.xlu1 %2073 }
 0xeaf   : > { %v2075_v8 = vsub.f32 %v2071_v60, %v2074_v7 }
 0xeb1   : > { %v2076_v13 = vmul.f32 1.442695, %v2075_v8  ;;  %v2154_v15 = vpop.xlane.xlu0 %2153 }
 0xeb2   : > { %v2155_v22 = vsub.f32 %v2151_v18, %v2154_v15 }
 0xeb3   : > { %3407 = vpow2.f32 %v2076_v13 }
 0xeb4   : > { %v2156_v27 = vmul.f32 1.442695, %v2155_v22 }
 0xeb6   : > { %3409 = vpow2.f32 %v2156_v27 }
 0xeb9   : > { %v4508_v29 = vpop.eup %3407 }
 0xeba   : > { %v2078_v10 = vsel %vm923_vm1, %v4508_v29, 0.0 }
 0xebb   : > { %2079 = vadd.xlane.f32.xlu0 %v2078_v10 }
 0xebc   : > { %v4512_v33 = vpop.eup %3409 }
 0xebd   : > { %v2158_v34 = vsel %vm923_vm1, %v4512_v33, 0.0 }
 0xebe   : > { %2159 = vadd.xlane.f32.xlu2 %v2158_v34 }
 0xebf   : > { %v2233_v35 = vpop.xlane.xlu2 %2232  ;;  %v2004_v32 = vpop.xlane.xlu1 %2003 }
 0xec0   : > { %v2234_v36 = vsub.f32 %v2230_v63, %v2233_v35  ;;  %3411 = vrcp.f32 %v2004_v32  ;;  %v2016_v43 = vand.u32 2147483648, %v2004_v32  ;;  %v2014_v2 = vand.u32 2147483647, %v2004_v32 }
 0xec1   : > { %vm2010_vm10 = vweird.f32 %v2004_v32 }
 0xec2   : > { %v2235_v37 = vmul.f32 1.442695, %v2234_v36  ;;  %v2017_v12 = vor.u32 1.1754944e-38, %v2016_v43  ;;  %vm2015_vm12 = vcmp.eq.f32.partialorder %v2014_v2, 8.507059e+37  ;;  %v4559_v2 = vld [vmem:[%s4735_s10 + $0x1] ss:$0 sm:$0xff] }
 0xec4   : > { %3413 = vpow2.f32 %v2235_v37 }
 0xec6   : > { %v3412_v38 = vpop.eup %3411 }
 0xec7   : > { %v2006_v39 = vmul.f32 %v3412_v38, %v2004_v32  ;;  %vm2011_vm9 = vweird.f32 %v3412_v38 }
 0xec8   : > { %vm2012_vm11 = vmor %vm2010_vm10, %vm2011_vm9 }
 0xec9   : > { %v2007_v42 = vsub.f32 1.0, %v2006_v39 }
 0xeca   : > { %v4516_v40 = vpop.eup %3413 }
 0xecb   : > { %v2237_v45 = vsel %vm923_vm1, %v4516_v40, 0.0  ;;  %v2008_v46 = vmul.f32 %v3412_v38, %v2007_v42 }
 0xecc   : > { %2238 = vadd.xlane.f32.xlu1 %v2237_v45 }
 0xecd   : > { %v2009_v48 = vadd.f32 %v3412_v38, %v2008_v46 }
 0xecf   : > { %v2013_v4 = vsel %vm2012_vm11, %v3412_v38, %v2009_v48  ;;  %2097 = vrot.lane.b32.xlu0 %v4482_v5, %s3782_s28 }
 0xed0   : > { %v2018_v50 = vsel %vm2015_vm12, %v2017_v12, %v2013_v4 }
 0xed1   : > { %v2019_v51 = vmul.f32 %v3406_v0, %v2018_v50 }
 0xed3   : > { %3187 = vmatmul.msk.f32.vlgmr.msrb.gmra.mxu2 %vm923_vm1, %v2019_v51 }
 0xed6   : > { %2176 = vrot.lane.b32.xlu2 %v4482_v5, %s3783_s27 }
 0xee5   : > { %2255 = vrot.lane.b32.xlu1 %v4482_v5, %s3781_s3 }
 0xf2e   : > { %v2080_v52 = vpop.xlane.xlu0 %2079 }
 0xf2f   : > { %3415 = vrcp.f32 %v2080_v52  ;;  %v2092_v57 = vand.u32 2147483648, %v2080_v52  ;;  %v2090_v17 = vand.u32 2147483647, %v2080_v52  ;;  %vm2086_vm14 = vweird.f32 %v2080_v52 }
 0xf31   : > { %v2160_v9 = vpop.xlane.xlu2 %2159  ;;  %v2093_v44 = vor.u32 1.1754944e-38, %v2092_v57  ;;  %vm2091_vm6 = vcmp.eq.f32.partialorder %v2090_v17, 8.507059e+37 }
 0xf32   : > { %3417 = vrcp.f32 %v2160_v9  ;;  %v2172_v5 = vand.u32 2147483648, %v2160_v9  ;;  %v2170_v20 = vand.u32 2147483647, %v2160_v9  ;;  %vm2166_vm7 = vweird.f32 %v2160_v9 }
 0xf34   : > { %vm2171_vm9 = vcmp.eq.f32.partialorder %v2170_v20, 8.507059e+37  ;;  %v4580_v20 = vld [vmem:[%s4828_s15 + $0x1] ss:$0 sm:$0xff] }
 0xf35   : > { %v3416_v53 = vpop.eup %3415 }
 0xf36   : > { %v2082_v54 = vmul.f32 %v3416_v53, %v2080_v52  ;;  %vm2087_vm13 = vweird.f32 %v3416_v53 }
 0xf37   : > { %vm2088_vm15 = vmor %vm2086_vm14, %vm2087_vm13 }
 0xf38   : > { %v3418_v55 = vpop.eup %3417  ;;  %v2083_v56 = vsub.f32 1.0, %v2082_v54 }
 0xf39   : > { %v2162_v58 = vmul.f32 %v3418_v55, %v2160_v9  ;;  %v2177_v59 = vpop.permute.xlu2 %2176  ;;  %vm2167_vm2 = vweird.f32 %v3418_v55 }
 0xf3a   : > { %v2084_v60 = vmul.f32 %v3416_v53, %v2083_v56  ;;  %2197 = vmatpush.msra.mxu2 %v2177_v59  ;;  %vm2168_vm8 = vmor %vm2166_vm7, %vm2167_vm2 }
 0xf3b   : > { %v2163_v41 = vsub.f32 1.0, %v2162_v58 }
 0xf3c   : > { %2368 = vmatpush.msrb.mxu2 %v4385_v14  ;;  %v2085_v18 = vadd.f32 %v3416_v53, %v2084_v60  ;;  %v2173_v14 = vor.u32 1.1754944e-38, %v2172_v5  ;;  %v4575_v5 = vld [vmem:[%s4736_s11 + $0x1] ss:$0 sm:$0xff] }
 0xf3d   : > { %v2164_v19 = vmul.f32 %v3418_v55, %v2163_v41 }
 0xf3e   : > { %2369 = vmatpush.msrb.mxu2 %v4403_v21  ;;  %v2089_v61 = vsel %vm2088_vm15, %v3416_v53, %v2085_v18 }
 0xf3f   : > { %v2239_v62 = vpop.xlane.xlu1 %2238  ;;  %v2094_v63 = vsel %vm2091_vm6, %v2093_v44, %v2089_v61  ;;  %v2165_v0 = vadd.f32 %v3418_v55, %v2164_v19 }
 0xf40   : > { %3419 = vrcp.f32 %v2239_v62  ;;  %2370 = vmatpush.msrb.mxu2 %v4420_v26  ;;  %v2095_v1 = vmul.f32 %v4508_v29, %v2094_v63  ;;  %v2251_v29 = vand.u32 2147483648, %v2239_v62  ;;  %vm2245_vm11 = vweird.f32 %v2239_v62 }
 0xf41   : > { %v2169_v3 = vsel %vm2168_vm8, %v3418_v55, %v2165_v0  ;;  %v2098_v7 = vpop.permute.xlu0 %2097  ;;  %v2249_v10 = vand.u32 2147483647, %v2239_v62  ;;  %v2393_v55 = vpop.f32.mrf.mxu3 }
 0xf42   : > { %2371 = vmatpush.msrb.mxu2 %v4436_v28  ;;  %v2174_v8 = vsel %vm2171_vm9, %v2173_v14, %v2169_v3  ;;  %2118 = vmatpush.msrb.mxu0 %v2098_v7  ;;  %v2252_v28 = vor.u32 1.1754944e-38, %v2251_v29  ;;  %v2394_v56 = vadd.f32 %v4476_v49, %v2393_v55 }
 0xf43   : > { %3190 = vmatmul.msk.f32.vlgmr.msrb.gmra.mxu0 %vm923_vm1, %v2095_v1  ;;  %v2175_v21 = vmul.f32 %v4512_v33, %v2174_v8  ;;  %vm2250_vm13 = vcmp.eq.f32.partialorder %v2249_v10, 8.507059e+37 }
 0xf45   : > { %3193 = vmatmul.msk.f32.vlgmr.msra.gmra.mxu2 %vm923_vm1, %v2175_v21 }
 0xf46   : > { %v3420_v13 = vpop.eup %3419 }
 0xf47   : > { %v2241_v15 = vmul.f32 %v3420_v13, %v2239_v62  ;;  %vm2246_vm10 = vweird.f32 %v3420_v13 }
 0xf48   : > { %vm2247_vm12 = vmor %vm2245_vm11, %vm2246_vm10 }
 0xf49   : > { %v2242_v26 = vsub.f32 1.0, %v2241_v15 }
 0xf4b   : > { %v2243_v22 = vmul.f32 %v3420_v13, %v2242_v26 }
 0xf4d   : > { %v2244_v27 = vadd.f32 %v3420_v13, %v2243_v22 }
 0xf4f   : > { %v2248_v34 = vsel %vm2247_vm12, %v3420_v13, %v2244_v27 }
 0xf50   : > { %v2253_v35 = vsel %vm2250_vm13, %v2252_v28, %v2248_v34 }
 0xf51   : > { %v2254_v36 = vmul.f32 %v4516_v40, %v2253_v35 }
 0xf56   : > { %v2040_v33 = vpop.f32.mrf.mxu2 }
 0xf57   : > { %v2256_v32 = vpop.permute.xlu1 %2255 }
 0xf58   : > { %2276 = vmatpush.msra.mxu0 %v2256_v32 }
 0xf59   : > { %3196 = vmatmul.msk.f32.vlgmr.msra.gmra.mxu0 %vm923_vm1, %v2254_v36 }
 0xf5a   : > { %2408 = vmatpush.msrb.mxu0 %v4395_v16  ;;  %v4546_v16 = vld [vmem:[#allocation10 + $0x38] sm:$0xff] }
 0xf5b   : > { %2314 = vmatpush.msra.mxu1 %v4546_v16 }
 0xf5c   : > { %2409 = vmatpush.msrb.mxu0 %v4413_v24  ;;  %v4548_v24 = vld [vmem:[#allocation10 + $0x30] sm:$0xff] }
 0xf5d   : > { %2315 = vmatpush.msra.mxu1 %v4548_v24 }
 0xf5e   : > { %2410 = vmatpush.msrb.mxu0 %v4430_v30  ;;  %v1866_v30 = vld [vmem:[#allocation10 + $0x28] sm:$0xff] }
 0xf5f   : > { %2316 = vmatpush.msra.mxu1 %v1866_v30 }
 0xf60   : > { %2411 = vmatpush.msrb.mxu0 %v4446_v23 }
 0xf61   : > { %3200 = vmatmul.msk.f32.vlgmr.msrb.gmra.mxu0 %vm853_vm0, %v4264_v31  ;;  %v1865_v31 = vld [vmem:[#allocation10 + $0x20] sm:$0xff] }
 0xf62   : > { %2317 = vmatpush.msra.mxu1 %v1865_v31 }
 0xf64   : > { %3201 = vmatpush.xpose.msk.msrb.mxu1 %vm923_vm1, %v2394_v56 }
 0xfc0   : > { %v2120_v37 = vpop.f32.mrf.mxu0 }
 0xfc1   : > { %2282 = vrot.lane.b32.xlu0 %v2120_v37, %s3784_s14 }
 0xfc8   : > { %v2199_v38 = vpop.f32.mrf.mxu2 }
 0xfc9   : > { %2286 = vrot.lane.b32.xlu2 %v2199_v38, %s3785_s29 }
 0xfd6   : > { %v2278_v39 = vpop.f32.mrf.mxu0 }
 0xfd7   : > { %2290 = vrot.lane.b32.xlu1 %v2278_v39, %s3786_s24 }
 0xfdf   : > { %2492 = vrot.lane.b32.xlu1 %v2394_v56, %s3782_s28 }
 0xfe7   : > { %2572 = vrot.lane.b32.xlu1 %v2394_v56, %s3783_s27 }
 0xfef   : > { %2651 = vrot.lane.b32.xlu1 %v2394_v56, %s3781_s3 }
0x1023   : > { %v2287_v42 = vpop.permute.xlu2 %2286 }
0x1033   : > { %v2283_v23 = vpop.permute.xlu0 %2282 }
0x1034   : > { %v2293_v40 = vsel %vm923_vm1, %v2040_v33, %v2283_v23 }
0x1035   : > { %v2294_v45 = vsel %vm1249_vm4, %v2293_v40, %v2287_v42 }
0x1049   : > { %v2291_v43 = vpop.permute.xlu1 %2290 }
0x104a   : > { %v2295_v46 = vsel %vm1251_vm5, %v2294_v45, %v2291_v43 }
0x104b   : > { %3197 = vmatmul.msk.f32.vlgmr.msra.gmra.mxu1 %vm853_vm0, %v2295_v46 }
0x1051   : > { %v2493_v63 = vpop.permute.xlu1 %2492 }
0x1052   : > { %3204 = vmatpush.xpose.msk.msra.mxu3 %vm923_vm1, %v2493_v63 }
0x1059   : > { %v2573_v0 = vpop.permute.xlu1 %2572 }
0x105a   : > { %3207 = vmatpush.xpose.msk.msra.mxu1 %vm923_vm1, %v2573_v0 }
0x1061   : > { %v2652_v14 = vpop.permute.xlu1 %2651 }
0x1062   : > { %3210 = vmatpush.xpose.msk.msrb.mxu3 %vm923_vm1, %v2652_v14 }
0x10c8   : > { %v2319_v48 = vpop.f32.mrf.mxu1 }
0x10c9   : > { %v2320_v12 = vadd.f32 %v4559_v2, %v2319_v48 }
0x10cb   : > { %v2322_v4 = vadd.f32 %v2320_v12, %v4458_v47 }
0x10cd   : > { %v2323_v50 = vsel %vm853_vm0, %v2322_v4, 0.0 }
0x10ce   : > { %2324 = vadd.xlane.f32.xlu0 %v2323_v50 }
0x1141   : > { %v2325_v51 = vpop.xlane.xlu0 %2324 }
0x1142   : > { %v2326_v52 = vmul.f32 %v2325_v51, %v4258_v25 }
0x1144   : > { %v2327_v9 = vsub.f32 %v2322_v4, %v2326_v52 }
0x1146   : > { %v2328_v53 = vmul.f32 %v2327_v9, %v2327_v9 }
0x1148   : > { %v2329_v54 = vsel %vm853_vm0, %v2328_v53, 0.0 }
0x1149   : > { %2330 = vadd.xlane.f32.xlu2 %v2329_v54 }
0x11bc   : > { %v2331_v57 = vpop.xlane.xlu2 %2330 }
0x11bd   : > { %v2332_v47 = vmul.f32 %v2331_v57, %v4258_v25 }
0x11bf   : > { %v2333_v58 = vadd.f32 1e-05, %v2332_v47 }
0x11c1   : > { %3421 = vrsqrt.f32 %v2333_v58  ;;  %vm2340_vm15 = vweird.f32 %v2333_v58 }
0x11c7   : > { %v3422_v59 = vpop.eup %3421 }
0x11c8   : > { %v2335_v60 = vmul.f32 %v3422_v59, %v2333_v58  ;;  %vm2341_vm14 = vweird.f32 %v3422_v59 }
0x11c9   : > { %vm2342_vm2 = vmor %vm2340_vm15, %vm2341_vm14 }
0x11ca   : > { %v2336_v17 = vmul.f32 %v3422_v59, %v2335_v60 }
0x11cc   : > { %v2337_v41 = vmul.f32 0.5, %v2336_v17 }
0x11ce   : > { %v2338_v18 = vsub.f32 1.5, %v2337_v41 }
0x11d0   : > { %v2339_v49 = vmul.f32 %v3422_v59, %v2338_v18 }
0x11d2   : > { %v2343_v44 = vsel %vm2342_vm2, %v3422_v59, %v2339_v49 }
0x11d3   : > { %v2344_v19 = vmul.f32 %v2343_v44, %v2327_v9 }
0x11d5   : > { %v2348_v61 = vmul.f32 %v4575_v5, %v2344_v19 }
0x11d7   : > { %v4584_v62 = vadd.f32 %v4580_v20, %v2348_v61 }
0x11d9   : > { %3198 = vmatmul.msk.f32.vlgmr.msrb.gmra.mxu2 %vm853_vm0, %v4584_v62 }
0x125c   : > { %v2373_v1 = vpop.f32.mrf.mxu2 }
0x125d   : > { %v2374_v3 = vadd.f32 %v4469_v6, %v2373_v1 }
0x125f   : > { %2649 = vrot.lane.b32.xlu0 %v2374_v3, %s3781_s3  ;;  %2490 = vrot.lane.b32.xlu1 %v2374_v3, %s3782_s28 }
0x1260   : > { %3202 = vmatmul.msk.f32.vlgmr.msrb.gmra.mxu1 %vm923_vm1, %v2374_v3 }
0x1261   : > { %2758 = vmatpush.msrb.mxu1 %v4546_v16  ;;  %v2413_v16 = vpop.f32.mrf.mxu0 }
0x1263   : > { %2759 = vmatpush.msrb.mxu1 %v4548_v24  ;;  %v2414_v24 = vadd.f32 %v4478_v11, %v2413_v16 }
0x1265   : > { %2760 = vmatpush.msrb.mxu1 %v1866_v30  ;;  %2485 = vmatpush.msra.mxu2 %v2414_v24 }
0x1267   : > { %2570 = vrot.lane.b32.xlu1 %v2374_v3, %s3783_s27  ;;  %2761 = vmatpush.msrb.mxu1 %v1865_v31 }
0x12d1   : > { %v2491_v7 = vpop.permute.xlu1 %2490  ;;  %v2650_v8 = vpop.permute.xlu0 %2649 }
0x12d2   : > { %3205 = vmatmul.msk.f32.vlgmr.msra.gmra.mxu3 %vm923_vm1, %v2491_v7 }
0x12d9   : > { %v2571_v21 = vpop.permute.xlu1 %2570 }
0x12da   : > { %3208 = vmatmul.msk.f32.vlgmr.msra.gmra.mxu1 %vm923_vm1, %v2571_v21  ;;  %3211 = vmatmul.msk.f32.vlgmr.msrb.gmra.mxu3 %vm923_vm1, %v2650_v8 }
0x12dd   : > { %v2439_v6 = vpop.f32.mrf.mxu1 }
0x12de   : > { %v2442_v13 = vmul.f32 0.35355338, %v2439_v6 }
0x12e0   : > { %v2443_v15 = vsel %vm923_vm1, %v2442_v13, -inf }
0x12e1   : > { %2444 = vmax.xlane.f32.xlu2 %v2443_v15 }
0x1354   : > { %v2445_v26 = vpop.xlane.xlu2 %2444 }
0x1355   : > { %v2446_v22 = vsub.f32 %v2442_v13, %v2445_v26  ;;  %v2515_v27 = vpop.f32.mrf.mxu3 }
0x1356   : > { %v2518_v29 = vmul.f32 0.35355338, %v2515_v27 }
0x1357   : > { %v2447_v10 = vmul.f32 1.442695, %v2446_v22  ;;  %v2595_v34 = vpop.f32.mrf.mxu1 }
0x1358   : > { %v2598_v28 = vmul.f32 0.35355338, %v2595_v34  ;;  %v2519_v35 = vsel %vm923_vm1, %v2518_v29, -inf }
0x1359   : > { %3423 = vpow2.f32 %v2447_v10  ;;  %2520 = vmax.xlane.f32.xlu1 %v2519_v35 }
0x135a   : > { %v2599_v32 = vsel %vm923_vm1, %v2598_v28, -inf }
0x135b   : > { %2600 = vmax.xlane.f32.xlu2 %v2599_v32 }
0x135d   : > { %v2674_v36 = vpop.f32.mrf.mxu3 }
0x135e   : > { %v2677_v33 = vmul.f32 0.35355338, %v2674_v36 }
0x135f   : > { %v3424_v37 = vpop.eup %3423 }
0x1360   : > { %v2449_v38 = vsel %vm923_vm1, %v3424_v37, 0.0  ;;  %v2678_v39 = vsel %vm923_vm1, %v2677_v33, -inf }
0x1361   : > { %2450 = vadd.xlane.f32.xlu0 %v2449_v38 }
0x1363   : > { %2679 = vmax.xlane.f32.xlu2 %v2678_v39 }
0x1372   : > { %2544 = vrot.lane.b32.xlu1 %v2414_v24, %s3782_s28  ;;  %s3218_s28 = sshll.u32 %s3922_s0, 3  ;;  %s2932_s0 = scalar_lea.sflag [#allocation4], %s706_s1 }
0x1375   : > { %2702 = vrot.lane.b32.xlu0 %v2414_v24, %s3781_s3  ;;  %s4833_s3 = sld [smem:[#allocation45_spill]] }
0x13cc   : > { %v2521_v30 = vpop.xlane.xlu1 %2520 }
0x13cd   : > { %v2522_v40 = vsub.f32 %v2518_v29, %v2521_v30 }
0x13ce   : > { %v2601_v31 = vpop.xlane.xlu2 %2600 }
0x13cf   : > { %v2602_v23 = vsub.f32 %v2598_v28, %v2601_v31  ;;  %v2523_v45 = vmul.f32 1.442695, %v2522_v40 }
0x13d1   : > { %v2603_v42 = vmul.f32 1.442695, %v2602_v23 }
0x13d3   : > { %3425 = vpow2.f32 %v2603_v42 }
0x13d4   : > { %v2451_v43 = vpop.xlane.xlu0 %2450 }
0x13d5   : > { %3427 = vrcp.f32 %v2451_v43  ;;  %v2463_v53 = vand.u32 2147483648, %v2451_v43  ;;  %v2461_v55 = vand.u32 2147483647, %v2451_v43  ;;  %vm2457_vm7 = vweird.f32 %v2451_v43 }
0x13d6   : > { %v2680_v46 = vpop.xlane.xlu2 %2679  ;;  %3429 = vpow2.f32 %v2523_v45 }
0x13d7   : > { %v2681_v12 = vsub.f32 %v2677_v33, %v2680_v46  ;;  %v2464_v47 = vor.u32 1.1754944e-38, %v2463_v53  ;;  %vm2462_vm9 = vcmp.eq.f32.partialorder %v2461_v55, 8.507059e+37 }
0x13d9   : > { %v4609_v48 = vpop.eup %3425  ;;  %v2682_v51 = vmul.f32 1.442695, %v2681_v12 }
0x13da   : > { %v2605_v11 = vsel %vm923_vm1, %v4609_v48, 0.0 }
0x13db   : > { %v3428_v4 = vpop.eup %3427  ;;  %2606 = vadd.xlane.f32.xlu2 %v2605_v11  ;;  %3431 = vpow2.f32 %v2682_v51 }
0x13dc   : > { %v2453_v50 = vmul.f32 %v3428_v4, %v2451_v43  ;;  %v4613_v9 = vpop.eup %3429  ;;  %vm2458_vm6 = vweird.f32 %v3428_v4 }
0x13dd   : > { %v2525_v57 = vsel %vm923_vm1, %v4613_v9, 0.0  ;;  %vm2459_vm8 = vmor %vm2457_vm7, %vm2458_vm6 }
0x13de   : > { %v2454_v52 = vsub.f32 1.0, %v2453_v50 }
0x13e0   : > { %v2455_v54 = vmul.f32 %v3428_v4, %v2454_v52 }
0x13e1   : > { %v4617_v17 = vpop.eup %3431 }
0x13e2   : > { %v2456_v56 = vadd.f32 %v3428_v4, %v2455_v54  ;;  %v2684_v41 = vsel %vm923_vm1, %v4617_v17, 0.0 }
0x13e3   : > { %2526 = vadd.xlane.f32.xlu2 %v2525_v57 }
0x13e4   : > { %v2460_v58 = vsel %vm2459_vm8, %v3428_v4, %v2456_v56  ;;  %v2545_v18 = vpop.permute.xlu1 %2544 }
0x13e5   : > { %v2465_v59 = vsel %vm2462_vm9, %v2464_v47, %v2460_v58  ;;  %2565 = vmatpush.msra.mxu0 %v2545_v18  ;;  %v1878_v18 = vld [vmem:[#allocation11 + $0x30] sm:$0xff] }
0x13e6   : > { %v2466_v60 = vmul.f32 %v3424_v37, %v2465_v59 }
0x13e7   : > { %v2703_v49 = vpop.permute.xlu0 %2702 }
0x13e8   : > { %3203 = vmatmul.msk.f32.vlgmr.msra.gmra.mxu2 %vm923_vm1, %v2466_v60  ;;  %2723 = vmatpush.msrb.mxu0 %v2703_v49  ;;  %v1877_v49 = vld [vmem:[#allocation11 + $0x28] sm:$0xff] }
0x13eb   : > { %2685 = vadd.xlane.f32.xlu2 %v2684_v41  ;;  %v1879_v41 = vld [vmem:[#allocation11 + $0x38] sm:$0xff] }
0x1403   : > { %2623 = vrot.lane.b32.xlu2 %v2414_v24, %s3783_s27 }
0x144e   : > { %v2607_v44 = vpop.xlane.xlu2 %2606 }
0x144f   : > { %3433 = vrcp.f32 %v2607_v44  ;;  %v2619_v7 = vand.u32 2147483648, %v2607_v44  ;;  %vm2613_vm11 = vweird.f32 %v2607_v44  ;;  %v2617_v8 = vand.u32 2147483647, %v2607_v44 }
0x1451   : > { %v2620_v26 = vor.u32 1.1754944e-38, %v2619_v7  ;;  %vm2618_vm13 = vcmp.eq.f32.partialorder %v2617_v8, 8.507059e+37 }
0x1455   : > { %v3434_v19 = vpop.eup %3433 }
0x1456   : > { %v2609_v61 = vmul.f32 %v3434_v19, %v2607_v44  ;;  %v2527_v63 = vpop.xlane.xlu2 %2526  ;;  %vm2614_vm10 = vweird.f32 %v3434_v19  ;;  %v1876_v44 = vld [vmem:[#allocation11 + $0x20] sm:$0xff] }
0x1457   : > { %3435 = vrcp.f32 %v2527_v63  ;;  %vm2615_vm12 = vmor %vm2613_vm11, %vm2614_vm10  ;;  %v2539_v22 = vand.u32 2147483648, %v2527_v63  ;;  %v2537_v29 = vand.u32 2147483647, %v2527_v63  ;;  %vm2533_vm15 = vweird.f32 %v2527_v63 }
0x1458   : > { %v2610_v0 = vsub.f32 1.0, %v2609_v61 }
0x1459   : > { %v2540_v35 = vor.u32 1.1754944e-38, %v2539_v22  ;;  %vm2538_vm6 = vcmp.eq.f32.partialorder %v2537_v29, 8.507059e+37  ;;  %v3173_v29 = vld [vmem:[%s4829_s8 + $0x50] sm:$0xff] }
0x145a   : > { %v2611_v14 = vmul.f32 %v3434_v19, %v2610_v0  ;;  %v3175_v0 = vld [vmem:[%s4829_s8 + $0x60] sm:$0xff] }
0x145c   : > { %v2612_v1 = vadd.f32 %v3434_v19, %v2611_v14 }
0x145d   : > { %v3436_v3 = vpop.eup %3435 }
0x145e   : > { %v2529_v21 = vmul.f32 %v3436_v3, %v2527_v63  ;;  %v2686_v6 = vpop.xlane.xlu2 %2685  ;;  %v2616_v13 = vsel %vm2615_vm12, %v3434_v19, %v2612_v1  ;;  %vm2534_vm14 = vweird.f32 %v3436_v3  ;;  %v3176_v19 = vld [vmem:[%s4829_s8 + $0x68] sm:$0xff]  ;;  %v3174_v1 = vld [vmem:[%s4829_s8 + $0x58] sm:$0xff] }
0x145f   : > { %3437 = vrcp.f32 %v2686_v6  ;;  %v2621_v10 = vsel %vm2618_vm13, %v2620_v26, %v2616_v13  ;;  %vm2535_vm2 = vmor %vm2533_vm15, %vm2534_vm14  ;;  %v2698_v24 = vand.u32 2147483648, %v2686_v6  ;;  %v2696_v31 = vand.u32 2147483647, %v2686_v6 }
0x1460   : > { %v2530_v15 = vsub.f32 1.0, %v2529_v21  ;;  %v2622_v37 = vmul.f32 %v4609_v48, %v2621_v10  ;;  %vm2692_vm8 = vweird.f32 %v2686_v6  ;;  %v3172_v10 = vld [vmem:[%s4829_s8 + $0x48] sm:$0xff] }
0x1461   : > { %v2699_v40 = vor.u32 1.1754944e-38, %v2698_v24  ;;  %vm2697_vm10 = vcmp.eq.f32.partialorder %v2696_v31, 8.507059e+37 }
0x1462   : > { %v2531_v27 = vmul.f32 %v3436_v3, %v2530_v15 }
0x1464   : > { %v2532_v34 = vadd.f32 %v3436_v3, %v2531_v27 }
0x1465   : > { %v3438_v28 = vpop.eup %3437 }
0x1466   : > { %v2536_v32 = vsel %vm2535_vm2, %v3436_v3, %v2532_v34  ;;  %v2688_v36 = vmul.f32 %v3438_v28, %v2686_v6  ;;  %v2624_v33 = vpop.permute.xlu2 %2623  ;;  %vm2693_vm7 = vweird.f32 %v3438_v28  ;;  %v3171_v34 = vld [vmem:[%s4829_s8 + $0x40] sm:$0xff] }
0x1467   : > { %v2541_v38 = vsel %vm2538_vm6, %v2540_v35, %v2536_v32  ;;  %2644 = vmatpush.msrb.mxu2 %v2624_v33  ;;  %vm2694_vm9 = vmor %vm2692_vm8, %vm2693_vm7  ;;  %v3361_v32 = vld [vmem:[%s4830_s30 + $0x1] ss:$0 sm:$0xff] }
0x1468   : > { %v2689_v39 = vsub.f32 1.0, %v2688_v36  ;;  %3209 = vmatmul.msk.f32.vlgmr.msrb.gmra.mxu2 %vm923_vm1, %v2622_v37  ;;  %v2542_v16 = vmul.f32 %v4613_v9, %v2541_v38 }
0x1469   : > { %2809 = vmatpush.msra.mxu2 %v1879_v41 }
0x146a   : > { %v2690_v30 = vmul.f32 %v3438_v28, %v2689_v39  ;;  %3206 = vmatmul.msk.f32.vlgmr.msra.gmra.mxu0 %vm923_vm1, %v2542_v16 }
0x146b   : > { %v2487_v46 = vpop.f32.mrf.mxu2  ;;  %2810 = vmatpush.msra.mxu2 %v1878_v18 }
0x146c   : > { %v2691_v23 = vadd.f32 %v3438_v28, %v2690_v30 }
0x146d   : > { %2811 = vmatpush.msra.mxu2 %v1877_v49 }
0x146e   : > { %v2695_v42 = vsel %vm2694_vm9, %v3438_v28, %v2691_v23  ;;  %v2878_v23 = vld [vmem:[#allocation14 + $0x18] sm:$0xff] }
0x146f   : > { %v2700_v43 = vsel %vm2697_vm10, %v2699_v40, %v2695_v42  ;;  %2812 = vmatpush.msra.mxu2 %v1876_v44  ;;  %2898 = vmatpush.msra.mxu0 %v2878_v23  ;;  %v2877_v40 = vld [vmem:[#allocation14 + $0x10] sm:$0xff]  ;;  %v2876_v42 = vld [vmem:[#allocation14 + $0x8] sm:$0xff] }
0x1470   : > { %v2701_v45 = vmul.f32 %v4617_v17, %v2700_v43  ;;  %v2875_v43 = vld [vmem:[#allocation14] sm:$0xff] }
0x1471   : > { %2899 = vmatpush.msra.mxu0 %v2877_v40 }
0x1472   : > { %3212 = vmatmul.msk.f32.vlgmr.msrb.gmra.mxu0 %vm923_vm1, %v2701_v45 }
0x1473   : > { %2900 = vmatpush.msra.mxu0 %v2876_v42 }
0x1475   : > { %2901 = vmatpush.msra.mxu0 %v2875_v43 }
0x14e7   : > { %v2567_v48 = vpop.f32.mrf.mxu0 }
0x14e8   : > { %2729 = vrot.lane.b32.xlu1 %v2567_v48, %s3784_s14 }
0x14eb   : > { %v2646_v12 = vpop.f32.mrf.mxu2 }
0x14ec   : > { %2733 = vrot.lane.b32.xlu2 %v2646_v12, %s3785_s29  ;;  %s4834_s29 = sld [smem:[#allocation46_spill]] }
0x14ef   : > { %v2725_v11 = vpop.f32.mrf.mxu0 }
0x14f0   : > { %2737 = vrot.lane.b32.xlu1 %v2725_v11, %s3786_s24 }
0x14f2   : > { %s2942_s24 = scalar_lea.hbm %s4834_s29, %s3218_s28  ;;  %s3707_s28 = scalar_lea.hbm %s4834_s29, 16 }
0x14f3   : > { %s2946_s21 = sshll.u32 %s2942_s24, 4  ;;  %s2947_s21 = int_to_ptr.hbm [resolvable:$true] %s2946_s21 }
0x14f4   : > { %s3701_s22 = sshra.s32 %s2947_s21, 4  ;;  %s3702_s22 = int_to_ptr.hbm [resolvable:$true] %s3701_s22 }
0x14f5   : > { %s3703_s9 = scalar_lea.hbm %s3702_s22, 8  ;;  %p3708_p0 = scmp.lt.s32.totalorder %s3702_s22, %s4834_s29 }
0x14f6   : > { %p3704_p12 = scmp.ne.s32.totalorder %s3702_s22, %s3703_s9  ;;  %p3709_p10 = scmp.lt.s32.totalorder %s3707_s28, %s3703_s9 }
0x14f8   : > { %p3705_p6 = pnand %p3704_p12, %p3981_p4  ;;  %p3710_p2 = por %p3709_p10, %p3708_p0 }
0x14fa   : > { %p3706_p13 = pneg %p3705_p6 }
0x14fc   : > { %p3711_p3 = pnand %p3710_p2, %p3706_p13 }
0x1546   : > { %v2734_v51 = vpop.permute.xlu2 %2733 }
0x155a   : > { %v2730_v4 = vpop.permute.xlu1 %2729 }
0x155b   : > { %v2740_v50 = vsel %vm923_vm1, %v2487_v46, %v2730_v4 }
0x155c   : > { %v2741_v9 = vsel %vm1249_vm4, %v2740_v50, %v2734_v51 }
0x1562   : > { %v2738_v52 = vpop.permute.xlu1 %2737 }
0x1563   : > { %v2742_v53 = vsel %vm1251_vm5, %v2741_v9, %v2738_v52  ;;  %v3362_v9 = vld [vmem:[%s4831_s17 + $0x1] ss:$0 sm:$0xff] }
0x1564   : > { %3213 = vmatmul.msk.f32.vlgmr.msrb.gmra.mxu1 %vm853_vm0, %v2742_v53 }
0x15e1   : > { %v2763_v54 = vpop.f32.mrf.mxu1 }
0x15e2   : > { %v2764_v55 = vadd.f32 %v4559_v2, %v2763_v54  ;;  %v3178_v2 = vld [vmem:[%s4829_s8 + $0x78] sm:$0xff] }
0x15e3   : > { %2832 = vmatpush.msra.mxu3 %v3178_v2 }
0x15e4   : > { %v2766_v56 = vadd.f32 %v2764_v55, %v4584_v62  ;;  %v3177_v62 = vld [vmem:[%s4829_s8 + $0x70] sm:$0xff] }
0x15e5   : > { %2833 = vmatpush.msra.mxu3 %v3177_v62 }
0x15e6   : > { %v2767_v57 = vsel %vm853_vm0, %v2766_v56, 0.0 }
0x15e7   : > { %2768 = vadd.xlane.f32.xlu0 %v2767_v57  ;;  %2834 = vmatpush.msra.mxu3 %v3176_v19  ;;  %v3364_v57 = vld [vmem:[%s4833_s3] ss:$0 sm:$0xff] }
0x15e9   : > { %2835 = vmatpush.msra.mxu3 %v3175_v0 }
0x15eb   : > { %2836 = vmatpush.msra.mxu3 %v3174_v1 }
0x15ed   : > { %2837 = vmatpush.msra.mxu3 %v3173_v29 }
0x15ef   : > { %2838 = vmatpush.msra.mxu3 %v3172_v10 }
0x15f1   : > { %2839 = vmatpush.msra.mxu3 %v3171_v34 }
0x165a   : > { %v2769_v47 = vpop.xlane.xlu0 %2768 }
0x165b   : > { %v2770_v58 = vmul.f32 %v2769_v47, %v4258_v25 }
0x165d   : > { %v2771_v59 = vsub.f32 %v2766_v56, %v2770_v58 }
0x165f   : > { %v2772_v60 = vmul.f32 %v2771_v59, %v2771_v59 }
0x1661   : > { %v2773_v17 = vsel %vm853_vm0, %v2772_v60, 0.0 }
0x1662   : > { %2774 = vadd.xlane.f32.xlu2 %v2773_v17 }
0x16d5   : > { %v2775_v61 = vpop.xlane.xlu2 %2774 }
0x16d6   : > { %v2776_v63 = vmul.f32 %v2775_v61, %v4258_v25 }
0x16d8   : > { %v2777_v14 = vadd.f32 1e-05, %v2776_v63 }
0x16da   : > { %3439 = vrsqrt.f32 %v2777_v14  ;;  %vm2784_vm4 = vweird.f32 %v2777_v14 }
0x16e0   : > { %v3440_v3 = vpop.eup %3439 }
0x16e1   : > { %v2779_v7 = vmul.f32 %v3440_v3, %v2777_v14  ;;  %vm2785_vm1 = vweird.f32 %v3440_v3 }
0x16e2   : > { %vm2786_vm5 = vmor %vm2784_vm4, %vm2785_vm1 }
0x16e3   : > { %v2780_v8 = vmul.f32 %v3440_v3, %v2779_v7 }
0x16e5   : > { %v2781_v21 = vmul.f32 0.5, %v2780_v8 }
0x16e7   : > { %v2782_v6 = vsub.f32 1.5, %v2781_v21 }
0x16e9   : > { %v2783_v13 = vmul.f32 %v3440_v3, %v2782_v6 }
0x16eb   : > { %v2787_v15 = vsel %vm2786_vm5, %v3440_v3, %v2783_v13 }
0x16ec   : > { %v2788_v26 = vmul.f32 %v2787_v15, %v2771_v59 }
0x16ee   : > { %v2789_v22 = vmul.f32 %v4575_v5, %v2788_v26  ;;  %v3360_v5 = vld [vmem:[#allocation13 + $0x1] ss:$0 sm:$0xff] }
0x16f0   : > { %v2790_v27 = vadd.f32 %v4580_v20, %v2789_v22 }
0x16f2   : > { %3214 = vmatmul.msk.f32.vlgmr.msra.gmra.mxu2 %vm853_vm0, %v2790_v27 }
0x1775   : > { %v2814_v28 = vpop.f32.mrf.mxu2 }
0x1776   : > { %v2815_v20 = vadd.f32 %v3360_v5, %v2814_v28 }
0x1778   : > { %v2817_v35 = vmax.f32 %v2815_v20, 0.0 }
0x177a   : > { %3215 = vmatmul.msk.f32.vlgmr.msra.gmra.mxu3 %vm1788_vm3, %v2817_v35 }
0x17fd   : > { %v2841_v36 = vpop.f32.mrf.mxu3 }
0x17fe   : > { %v2842_v33 = vadd.f32 %v3361_v32, %v2841_v36 }
0x1800   : > { %v2844_v37 = vadd.f32 %v2842_v33, %v2790_v27 }
0x1802   : > { %v2845_v38 = vsel %vm853_vm0, %v2844_v37, 0.0 }
0x1803   : > { %2846 = vadd.xlane.f32.xlu1 %v2845_v38 }
0x1876   : > { %v2847_v39 = vpop.xlane.xlu1 %2846 }
0x1877   : > { %v2848_v16 = vmul.f32 %v2847_v39, %v4258_v25 }
0x1879   : > { %v2849_v24 = vsub.f32 %v2844_v37, %v2848_v16 }
0x187b   : > { %v2850_v30 = vmul.f32 %v2849_v24, %v2849_v24 }
0x187d   : > { %v2851_v31 = vsel %vm853_vm0, %v2850_v30, 0.0 }
0x187e   : > { %2852 = vadd.xlane.f32.xlu0 %v2851_v31 }
0x18f1   : > { %v2853_v45 = vpop.xlane.xlu0 %2852 }
0x18f2   : > { %v2854_v46 = vmul.f32 %v2853_v45, %v4258_v25  ;;  %v3363_v25 = vld [vmem:[%s4832_s23 + $0x1] ss:$0 sm:$0xff] }
0x18f4   : > { %v2855_v48 = vadd.f32 1e-05, %v2854_v46 }
0x18f6   : > { %3441 = vrsqrt.f32 %v2855_v48  ;;  %vm2862_vm11 = vweird.f32 %v2855_v48 }
0x18fc   : > { %v3442_v12 = vpop.eup %3441 }
0x18fd   : > { %v2857_v11 = vmul.f32 %v3442_v12, %v2855_v48  ;;  %vm2863_vm3 = vweird.f32 %v3442_v12 }
0x18fe   : > { %vm2864_vm12 = vmor %vm2862_vm11, %vm2863_vm3 }
0x18ff   : > { %v2858_v4 = vmul.f32 %v3442_v12, %v2857_v11 }
0x1901   : > { %v2859_v50 = vmul.f32 0.5, %v2858_v4 }
0x1903   : > { %v2860_v51 = vsub.f32 1.5, %v2859_v50 }
0x1905   : > { %v2861_v52 = vmul.f32 %v3442_v12, %v2860_v51 }
0x1907   : > { %v2865_v53 = vsel %vm2864_vm12, %v3442_v12, %v2861_v52 }
0x1908   : > { %v2866_v54 = vmul.f32 %v2865_v53, %v2849_v24 }
0x190a   : > { %v2870_v55 = vmul.f32 %v3362_v9, %v2866_v54 }
0x190c   : > { %v2874_v56 = vadd.f32 %v3363_v25, %v2870_v55 }
0x190e   : > { %3216 = vmatmul.msk.f32.vlgmr.msra.gmra.mxu0 %vm853_vm0, %v2874_v56 }
0x198b   : > { %v2903_v47 = vpop.f32.mrf.mxu0 }
0x198c   : > { %v2904_v58 = vadd.f32 %v3364_v57, %v2903_v47 }
0x198e   : > { %v2906_v59 = vsel %vm853_vm0, %v2904_v58, -inf }
0x198f   : > { %2907 = vmax.xlane.f32.xlu2 %v2906_v59 }
0x1a02   : > { %v2908_v60 = vpop.xlane.xlu2 %2907 }
0x1a03   : > { %v2909_v17 = vsub.f32 %v2904_v58, %v2908_v60 }
0x1a05   : > { %v2910_v41 = vmul.f32 1.442695, %v2909_v17 }
0x1a07   : > { %3443 = vpow2.f32 %v2910_v41 }
0x1a0d   : > { %v3444_v18 = vpop.eup %3443 }
0x1a0e   : > { %v2912_v49 = vsel %vm853_vm0, %v3444_v18, 0.0 }
0x1a0f   : > { %2913 = vadd.xlane.f32.xlu1 %v2912_v49 }
0x1a82   : > { %v2914_v44 = vpop.xlane.xlu1 %2913 }
0x1a83   : > { %3445 = vrcp.f32 %v2914_v44  ;;  %v2926_v61 = vand.u32 2147483648, %v2914_v44  ;;  %v2924_v0 = vand.u32 2147483647, %v2914_v44  ;;  %vm2920_vm14 = vweird.f32 %v2914_v44 }
0x1a85   : > { %v2927_v1 = vor.u32 1.1754944e-38, %v2926_v61  ;;  %vm2925_vm2 = vcmp.eq.f32.partialorder %v2924_v0, 8.507059e+37 }
0x1a89   : > { %v3446_v2 = vpop.eup %3445 }
0x1a8a   : > { %v2916_v62 = vmul.f32 %v3446_v2, %v2914_v44  ;;  %vm2921_vm13 = vweird.f32 %v3446_v2 }
0x1a8b   : > { %vm2922_vm15 = vmor %vm2920_vm14, %vm2921_vm13 }
0x1a8c   : > { %v2917_v19 = vsub.f32 1.0, %v2916_v62 }
0x1a8e   : > { %v2918_v63 = vmul.f32 %v3446_v2, %v2917_v19 }
0x1a90   : > { %v2919_v14 = vadd.f32 %v3446_v2, %v2918_v63 }
0x1a92   : > { %v2923_v3 = vsel %vm2922_vm15, %v3446_v2, %v2919_v14 }
0x1a93   : > { %v2928_v7 = vsel %vm2925_vm2, %v2927_v1, %v2923_v3 }
0x1a94   : > { %v2929_v8 = vmul.f32 %v3444_v18, %v2928_v7 }
0x1a96   : > { %2930 = vst.msk [vmem:[%s807_s4] sm:$0xff] %vm853_vm0, %v2929_v8 }
0x1a97   : > { %3714 = shalt.err (!%p3711_p3)
}
0x1a98   : > { %3249 = dma.vmem_to_hbm [thread:$0]  (%p3981_p4), %s2945_s2, 128, %s2947_s21, %s2932_s0  }
0x1a99 PF: > { %s4836_s1 = sld [smem:[#allocation23_spill]] }
0x1a9a   : > { %s4838_s4 = sld [smem:[#allocation25_spill]] }
0x1a9f   : > { %s2958_s5 = sand.u32 1, %s4836_s1  }
0x1aa0   : > { %p4839_p8 = scmp.ge.s32.totalorder %s4838_s4, 2  ;;  %s2959_s16 = scalar_lea.sflag [#allocation4], %s2958_s5 }
0x1aa2   : > { %p3278_p1 = pnand %p4839_p8, %p3985_p7 }
0x1aa4   : > { %p3279_p5 = pneg %p3278_p1 }
0x1aa6   : > { %3752 = dma.done.wait (%p3279_p5), %s2959_s16, 128  }
0x1aa7   : > { %3754 = vsyncadd (%p3279_p5), %s2959_s16, 4294967168  ;;  %s4840_s27 = sld [smem:[#allocation26_spill]]  ;;  %s4843_s2 = smov %s3761_s25 }
0x1aa8   : > { %s4841_s22 = sld [smem:[#allocation24_spill]] }
0x1aa9   : > { %s4842_s26 = sld [smem:[#allocation27_spill]] }
0x1aad   : > { %p38_p9 = scmp.ge.s32.totalorder %s4840_s27, 4  }
0x1aae   : > { %s4844_s25 = smov %s4841_s22 }
0x1aaf   :  { %40 = sbr.rel (!%p38_p9) target bundleno = 27 (0x1b), region = 201 }
0x1ab4   :  { %2965 = vsyncpa [#allocation3], 1 }
0x1ab5   :  { %2967 = vsyncpa [#allocation3 + $0x1], 1 }
0x1ab6   :  { %2968 = vsyncpa [#allocation6], 1 }
0x1ab7   :  { %2970 = vsyncpa [#allocation6 + $0x1], 1 }
0x1ab8   :  { %2971 = vsyncpa [#allocation9], 1 }
0x1ab9   :  { %2972 = vsyncpa [#allocation12], 1 }
0x1aba   :  { %2973 = vsyncpa [#allocation15], 1 }
0x1abb   :  { %2974 = vsyncpa [#allocation4], 1 }
0x1abc   :  { %2976 = vsyncpa [#allocation4 + $0x1], 1 }

</bundles_post_ra>
